<compile_context>
chip_gen: v7x
topology: tpu7x:2x2x1
jax: 0.10.0
libtpu: 0.0.40
codegen_flags: <defaults>
</compile_context>

<pallas_src>
import jax
import jax.numpy as jnp
from jax import lax
from jax.experimental import pallas as pl
from jax.experimental.pallas import tpu as pltpu


def _round_up(x, m):
    return (x + m - 1) // m * m


# ---------------------------------------------------------------------------
# Fused Pallas kernel: conv1+bn1+relu -> conv2+bn2+add+relu  (one grid step
# processes one batch element; intermediate never leaves VMEM)
# ---------------------------------------------------------------------------
def _basic_block_kernel(x_ref, w1_ref, s1_ref, b1_ref, w2_ref, s2_ref, b2_ref,
                        o_ref, xpad_ref, hpad_ref, patch_ref):
    """
    x_ref:    (1, H, W, Cp)    input tile (channels padded to Cp lanes)
    w1/w2:    (9*Cp, Cp)       conv weights in im2col layout ((kh*3+kw)*Cp+cin, cout)
    s*/b*:    (1, Cp)          folded BN scale / bias
    o_ref:    (1, H, W, Cp)
    xpad_ref: (H+2, W+2, Cp)   VMEM halo scratch for conv1 input
    hpad_ref: (H+2, W+2, Cp)   VMEM halo scratch for the intermediate activation
    patch_ref:(H*W, 9*Cp)      VMEM im2col patch matrix (reused for both convs)
    """
    H, W, Cp = o_ref.shape[1], o_ref.shape[2], o_ref.shape[3]
    HW = H * W

    x = x_ref[0]                                        # (H, W, Cp)

    # ---- conv1 + bn1 + relu -------------------------------------------------
    # Zero the halo scratch every step (cheap VMEM memset; correct even when
    # the batch grid is sharded across TensorCores), then write the interior.
    xpad_ref[...] = jnp.zeros_like(xpad_ref)
    xpad_ref[1:H + 1, 1:W + 1, :] = x

    # im2col: each (kh,kw) shifted window goes into its own 128-lane-aligned
    # column slab of the patch matrix -> unmasked stores, single long-K dot.
    for dh in range(3):
        for dw in range(3):
            k = dh * 3 + dw
            patch_ref[:, k * Cp:(k + 1) * Cp] = (
                xpad_ref[dh:dh + H, dw:dw + W, :].reshape(HW, Cp))

    h = jnp.dot(patch_ref[...], w1_ref[...],
                preferred_element_type=jnp.float32)      # (HW, Cp)
    h = jnp.maximum(h * s1_ref[0] + b1_ref[0], 0.0)

    # ---- conv2 + bn2 + residual + relu --------------------------------------
    # Intermediate stays VMEM-resident: write it (with halo) into hpad_ref.
    hpad_ref[...] = jnp.zeros_like(hpad_ref)
    hpad_ref[1:H + 1, 1:W + 1, :] = h.reshape(H, W, Cp)

    for dh in range(3):
        for dw in range(3):
            k = dh * 3 + dw
            patch_ref[:, k * Cp:(k + 1) * Cp] = (
                hpad_ref[dh:dh + H, dw:dw + W, :].reshape(HW, Cp))

    y = jnp.dot(patch_ref[...], w2_ref[...],
                preferred_element_type=jnp.float32)      # (HW, Cp)
    y = y * s2_ref[0] + b2_ref[0]
    y = jnp.maximum(y + x.reshape(HW, Cp), 0.0)          # residual add + relu

    o_ref[...] = y.reshape(1, H, W, Cp)


# ---------------------------------------------------------------------------
# Wrapper: layout plumbing (NCHW<->NHWC, channel padding, BN folding)
# ---------------------------------------------------------------------------
def _fold_bn_padded(gamma, beta, mean, var, cp, eps=1e-5):
    c = gamma.shape[0]
    scale = gamma / jnp.sqrt(var + eps)
    bias = beta - mean * scale
    scale = jnp.pad(scale, (0, cp - c), constant_values=1.0).reshape(1, cp)
    bias = jnp.pad(bias, (0, cp - c)).reshape(1, cp)
    return scale, bias


def _pad_weight_im2col(w, cp):
    # (3, 3, Cin, Cout) HWIO -> zero-pad channels to cp -> (9*cp, cp)
    c_in, c_out = w.shape[2], w.shape[3]
    wp = jnp.pad(w, ((0, 0), (0, 0), (0, cp - c_in), (0, cp - c_out)))
    return wp.reshape(9 * cp, cp)


@jax.jit
def basic_block_forward(x_nchw, params):
    """BasicBlock forward. Input/output in NCHW (PyTorch convention)."""
    N, C, H, W = x_nchw.shape
    Cp = _round_up(C, 128)                       # lane-dense channel dim

    x = jnp.transpose(x_nchw, (0, 2, 3, 1))      # -> NHWC
    x = jnp.pad(x, ((0, 0), (0, 0), (0, 0), (0, Cp - C)))

    w1 = _pad_weight_im2col(params["w1"], Cp)
    w2 = _pad_weight_im2col(params["w2"], Cp)
    s1, b1 = _fold_bn_padded(params["bn1_gamma"], params["bn1_beta"],
                             params["bn1_mean"], params["bn1_var"], Cp)
    s2, b2 = _fold_bn_padded(params["bn2_gamma"], params["bn2_beta"],
                             params["bn2_mean"], params["bn2_var"], Cp)

    # NOTE: whole-image blocks are fine at these shapes (well under the 16/32
    # MiB scoped-VMEM default on every generation); for real ResNet sizes
    # (e.g. 56x56x256) add a spatial tile axis with a halo index_map.
    y = pl.pallas_call(
        _basic_block_kernel,
        out_shape=jax.ShapeDtypeStruct((N, H, W, Cp), jnp.float32),
        grid_spec=pltpu.PrefetchScalarGridSpec(
            num_scalar_prefetch=0,
            grid=(N,),
            in_specs=[
                pl.BlockSpec((1, H, W, Cp), lambda n: (n, 0, 0, 0)),
                pl.BlockSpec((9 * Cp, Cp), lambda n: (0, 0)),
                pl.BlockSpec((1, Cp), lambda n: (0, 0)),
                pl.BlockSpec((1, Cp), lambda n: (0, 0)),
                pl.BlockSpec((9 * Cp, Cp), lambda n: (0, 0)),
                pl.BlockSpec((1, Cp), lambda n: (0, 0)),
                pl.BlockSpec((1, Cp), lambda n: (0, 0)),
            ],
            out_specs=pl.BlockSpec((1, H, W, Cp), lambda n: (n, 0, 0, 0)),
            scratch_shapes=[
                pltpu.VMEM((H + 2, W + 2, Cp), jnp.float32),   # xpad
                pltpu.VMEM((H + 2, W + 2, Cp), jnp.float32),   # hpad
                pltpu.VMEM((H * W, 9 * Cp), jnp.float32),      # im2col patches
            ],
        ),
        compiler_params=pltpu.CompilerParams(
            dimension_semantics=("parallel",)),                # megacore on v7x
    )(x, w1, s1, b1, w2, s2, b2)

    y = y[..., :C]                               # drop channel padding
    return jnp.transpose(y, (0, 3, 1, 2))        # -> NCHW


# ---------------------------------------------------------------------------
# Pure-JAX reference (for correctness check)
# ---------------------------------------------------------------------------
def _ref_forward(x_nchw, params, eps=1e-5):
    def conv(x, w_hwio):
        w_oihw = jnp.transpose(w_hwio, (3, 2, 0, 1))
        return lax.conv_general_dilated(
            x, w_oihw, window_strides=(1, 1), padding=((1, 1), (1, 1)),
            dimension_numbers=("NCHW", "OIHW", "NCHW"))

    def bn(x, g, b, m, v):
        g = g[None, :, None, None]; b = b[None, :, None, None]
        m = m[None, :, None, None]; v = v[None, :, None, None]
        return g * (x - m) / jnp.sqrt(v + eps) + b

    out = conv(x_nchw, params["w1"])
    out = bn(out, params["bn1_gamma"], params["bn1_beta"],
             params["bn1_mean"], params["bn1_var"])
    out = jnp.maximum(out, 0.0)
    out = conv(out, params["w2"])
    out = bn(out, params["bn2_gamma"], params["bn2_beta"],
             params["bn2_mean"], params["bn2_var"])
    out = out + x_nchw
    return jnp.maximum(out, 0.0)


# ---------------------------------------------------------------------------
if __name__ == "__main__":
    N, C, H, W = 2, 4, 16, 16          # inplanes = planes = 4, stride = 1
    key = jax.random.PRNGKey(0)
    ks = jax.random.split(key, 10)

    x = jax.random.normal(ks[0], (N, C, H, W), jnp.float32)

    params = {
        # conv weights stored HWIO: (3, 3, Cin, Cout)
        "w1": 0.1 * jax.random.normal(ks[1], (3, 3, C, C), jnp.float32),
        "w2": 0.1 * jax.random.normal(ks[2], (3, 3, C, C), jnp.float32),
        # BN1 params + running stats (inference-mode BN)
        "bn1_gamma": 0.5 + jax.random.uniform(ks[3], (C,), jnp.float32),
        "bn1_beta": 0.1 * jax.random.normal(ks[4], (C,), jnp.float32),
        "bn1_mean": 0.1 * jax.random.normal(ks[5], (C,), jnp.float32),
        "bn1_var": 0.5 + jax.random.uniform(ks[6], (C,), jnp.float32),
        # BN2
        "bn2_gamma": 0.5 + jax.random.uniform(ks[7], (C,), jnp.float32),
        "bn2_beta": 0.1 * jax.random.normal(ks[8], (C,), jnp.float32),
        "bn2_mean": jnp.zeros((C,), jnp.float32),
        "bn2_var": 0.5 + jax.random.uniform(ks[9], (C,), jnp.float32),
    }

    out = basic_block_forward(x, params)
    out = jax.block_until_ready(out)
    assert out.shape == (N, C, H, W), out.shape

    ref = jax.block_until_ready(_ref_forward(x, params))
    err = float(jnp.max(jnp.abs(out - ref)))
    assert err < 1e-4, f"mismatch vs reference: {err}"

    print("KERNEL_OK")
</pallas_src>

<mosaic_0001>
module attributes {stable_mosaic.version = 11 : i64} {
  func.func @_basic_block_kernel(%arg0: i32, %arg1: memref<1x16x16x128xf32, #tpu.memory_space<vmem>>, %arg2: memref<1152x128xf32, #tpu.memory_space<vmem>>, %arg3: memref<1x128xf32, #tpu.memory_space<vmem>>, %arg4: memref<1x128xf32, #tpu.memory_space<vmem>>, %arg5: memref<1152x128xf32, #tpu.memory_space<vmem>>, %arg6: memref<1x128xf32, #tpu.memory_space<vmem>>, %arg7: memref<1x128xf32, #tpu.memory_space<vmem>>, %arg8: memref<1x16x16x128xf32, #tpu.memory_space<vmem>>, %arg9: memref<18x18x128xf32, #tpu.memory_space<vmem>>, %arg10: memref<18x18x128xf32, #tpu.memory_space<vmem>>, %arg11: memref<256x1152xf32, #tpu.memory_space<vmem>>) attributes {dimension_semantics = [#tpu.dimension_semantics<parallel>], iteration_bounds = array<i64: 2>, scalar_prefetch = 0 : i64, scratch_operands = 3 : i64, tpu.core_type = #tpu.core_type<tc>, window_params = [{transform_indices = @transform_0, window_bounds = array<i64: 1, 16, 16, 128>}, {pipeline_mode = #tpu.pipeline_mode<synchronous>, transform_indices = @transform_1, window_bounds = array<i64: 1152, 128>}, {pipeline_mode = #tpu.pipeline_mode<synchronous>, transform_indices = @transform_2, window_bounds = array<i64: 1, 128>}, {pipeline_mode = #tpu.pipeline_mode<synchronous>, transform_indices = @transform_3, window_bounds = array<i64: 1, 128>}, {pipeline_mode = #tpu.pipeline_mode<synchronous>, transform_indices = @transform_4, window_bounds = array<i64: 1152, 128>}, {pipeline_mode = #tpu.pipeline_mode<synchronous>, transform_indices = @transform_5, window_bounds = array<i64: 1, 128>}, {pipeline_mode = #tpu.pipeline_mode<synchronous>, transform_indices = @transform_6, window_bounds = array<i64: 1, 128>}, {transform_indices = @transform_7, window_bounds = array<i64: 1, 16, 16, 128>}]} {
    %c0 = arith.constant 0 : index
    %c0_0 = arith.constant 0 : index
    %c0_1 = arith.constant 0 : index
    %c0_2 = arith.constant 0 : index
    %0 = vector.load %arg1[%c0, %c0_0, %c0_1, %c0_2] : memref<1x16x16x128xf32, #tpu.memory_space<vmem>>, vector<1x16x16x128xf32>
    %1 = vector.shape_cast %0 : vector<1x16x16x128xf32> to vector<16x16x128xf32>
    %cst = arith.constant 0.000000e+00 : f32
    %2 = vector.broadcast %cst : f32 to vector<18x18x128xf32>
    %c0_3 = arith.constant 0 : index
    %c0_4 = arith.constant 0 : index
    %c0_5 = arith.constant 0 : index
    %3 = vector.load %arg9[%c0_3, %c0_4, %c0_5] : memref<18x18x128xf32, #tpu.memory_space<vmem>>, vector<18x18x128xf32>
    tpu.vector_store %arg9[%c0_3, %c0_4, %c0_5], %2 {strides = array<i32>} : memref<18x18x128xf32, #tpu.memory_space<vmem>>, vector<18x18x128xf32>,
    %c1 = arith.constant 1 : index
    %c1_6 = arith.constant 1 : index
    %c0_7 = arith.constant 0 : index
    %4 = vector.load %arg9[%c1, %c1_6, %c0_7] : memref<18x18x128xf32, #tpu.memory_space<vmem>>, vector<16x16x128xf32>
    tpu.vector_store %arg9[%c1, %c1_6, %c0_7], %1 {strides = array<i32>} : memref<18x18x128xf32, #tpu.memory_space<vmem>>, vector<16x16x128xf32>,
    %c0_8 = arith.constant 0 : index
    %c0_9 = arith.constant 0 : index
    %c0_10 = arith.constant 0 : index
    %5 = vector.load %arg9[%c0_8, %c0_9, %c0_10] : memref<18x18x128xf32, #tpu.memory_space<vmem>>, vector<16x16x128xf32>
    %6 = vector.shape_cast %5 : vector<16x16x128xf32> to vector<256x128xf32>
    %c0_11 = arith.constant 0 : index
    %c0_12 = arith.constant 0 : index
    %7 = vector.load %arg11[%c0_11, %c0_12] : memref<256x1152xf32, #tpu.memory_space<vmem>>, vector<256x128xf32>
    tpu.vector_store %arg11[%c0_11, %c0_12], %6 {strides = array<i32>} : memref<256x1152xf32, #tpu.memory_space<vmem>>, vector<256x128xf32>,
    %c0_13 = arith.constant 0 : index
    %c1_14 = arith.constant 1 : index
    %c0_15 = arith.constant 0 : index
    %8 = vector.load %arg9[%c0_13, %c1_14, %c0_15] : memref<18x18x128xf32, #tpu.memory_space<vmem>>, vector<16x16x128xf32>
    %9 = vector.shape_cast %8 : vector<16x16x128xf32> to vector<256x128xf32>
    %c0_16 = arith.constant 0 : index
    %c128 = arith.constant 128 : index
    %10 = vector.load %arg11[%c0_16, %c128] : memref<256x1152xf32, #tpu.memory_space<vmem>>, vector<256x128xf32>
    tpu.vector_store %arg11[%c0_16, %c128], %9 {strides = array<i32>} : memref<256x1152xf32, #tpu.memory_space<vmem>>, vector<256x128xf32>,
    %c0_17 = arith.constant 0 : index
    %c2 = arith.constant 2 : index
    %c0_18 = arith.constant 0 : index
    %11 = vector.load %arg9[%c0_17, %c2, %c0_18] : memref<18x18x128xf32, #tpu.memory_space<vmem>>, vector<16x16x128xf32>
    %12 = vector.shape_cast %11 : vector<16x16x128xf32> to vector<256x128xf32>
    %c0_19 = arith.constant 0 : index
    %c256 = arith.constant 256 : index
    %13 = vector.load %arg11[%c0_19, %c256] : memref<256x1152xf32, #tpu.memory_space<vmem>>, vector<256x128xf32>
    tpu.vector_store %arg11[%c0_19, %c256], %12 {strides = array<i32>} : memref<256x1152xf32, #tpu.memory_space<vmem>>, vector<256x128xf32>,
    %c1_20 = arith.constant 1 : index
    %c0_21 = arith.constant 0 : index
    %c0_22 = arith.constant 0 : index
    %14 = vector.load %arg9[%c1_20, %c0_21, %c0_22] : memref<18x18x128xf32, #tpu.memory_space<vmem>>, vector<16x16x128xf32>
    %15 = vector.shape_cast %14 : vector<16x16x128xf32> to vector<256x128xf32>
    %c0_23 = arith.constant 0 : index
    %c384 = arith.constant 384 : index
    %16 = vector.load %arg11[%c0_23, %c384] : memref<256x1152xf32, #tpu.memory_space<vmem>>, vector<256x128xf32>
    tpu.vector_store %arg11[%c0_23, %c384], %15 {strides = array<i32>} : memref<256x1152xf32, #tpu.memory_space<vmem>>, vector<256x128xf32>,
    %c1_24 = arith.constant 1 : index
    %c1_25 = arith.constant 1 : index
    %c0_26 = arith.constant 0 : index
    %17 = vector.load %arg9[%c1_24, %c1_25, %c0_26] : memref<18x18x128xf32, #tpu.memory_space<vmem>>, vector<16x16x128xf32>
    %18 = vector.shape_cast %17 : vector<16x16x128xf32> to vector<256x128xf32>
    %c0_27 = arith.constant 0 : index
    %c512 = arith.constant 512 : index
    %19 = vector.load %arg11[%c0_27, %c512] : memref<256x1152xf32, #tpu.memory_space<vmem>>, vector<256x128xf32>
    tpu.vector_store %arg11[%c0_27, %c512], %18 {strides = array<i32>} : memref<256x1152xf32, #tpu.memory_space<vmem>>, vector<256x128xf32>,
    %c1_28 = arith.constant 1 : index
    %c2_29 = arith.constant 2 : index
    %c0_30 = arith.constant 0 : index
    %20 = vector.load %arg9[%c1_28, %c2_29, %c0_30] : memref<18x18x128xf32, #tpu.memory_space<vmem>>, vector<16x16x128xf32>
    %21 = vector.shape_cast %20 : vector<16x16x128xf32> to vector<256x128xf32>
    %c0_31 = arith.constant 0 : index
    %c640 = arith.constant 640 : index
    %22 = vector.load %arg11[%c0_31, %c640] : memref<256x1152xf32, #tpu.memory_space<vmem>>, vector<256x128xf32>
    tpu.vector_store %arg11[%c0_31, %c640], %21 {strides = array<i32>} : memref<256x1152xf32, #tpu.memory_space<vmem>>, vector<256x128xf32>,
    %c2_32 = arith.constant 2 : index
    %c0_33 = arith.constant 0 : index
    %c0_34 = arith.constant 0 : index
    %23 = vector.load %arg9[%c2_32, %c0_33, %c0_34] : memref<18x18x128xf32, #tpu.memory_space<vmem>>, vector<16x16x128xf32>
    %24 = vector.shape_cast %23 : vector<16x16x128xf32> to vector<256x128xf32>
    %c0_35 = arith.constant 0 : index
    %c768 = arith.constant 768 : index
    %25 = vector.load %arg11[%c0_35, %c768] : memref<256x1152xf32, #tpu.memory_space<vmem>>, vector<256x128xf32>
    tpu.vector_store %arg11[%c0_35, %c768], %24 {strides = array<i32>} : memref<256x1152xf32, #tpu.memory_space<vmem>>, vector<256x128xf32>,
    %c2_36 = arith.constant 2 : index
    %c1_37 = arith.constant 1 : index
    %c0_38 = arith.constant 0 : index
    %26 = vector.load %arg9[%c2_36, %c1_37, %c0_38] : memref<18x18x128xf32, #tpu.memory_space<vmem>>, vector<16x16x128xf32>
    %27 = vector.shape_cast %26 : vector<16x16x128xf32> to vector<256x128xf32>
    %c0_39 = arith.constant 0 : index
    %c896 = arith.constant 896 : index
    %28 = vector.load %arg11[%c0_39, %c896] : memref<256x1152xf32, #tpu.memory_space<vmem>>, vector<256x128xf32>
    tpu.vector_store %arg11[%c0_39, %c896], %27 {strides = array<i32>} : memref<256x1152xf32, #tpu.memory_space<vmem>>, vector<256x128xf32>,
    %c2_40 = arith.constant 2 : index
    %c2_41 = arith.constant 2 : index
    %c0_42 = arith.constant 0 : index
    %29 = vector.load %arg9[%c2_40, %c2_41, %c0_42] : memref<18x18x128xf32, #tpu.memory_space<vmem>>, vector<16x16x128xf32>
    %30 = vector.shape_cast %29 : vector<16x16x128xf32> to vector<256x128xf32>
    %c0_43 = arith.constant 0 : index
    %c1024 = arith.constant 1024 : index
    %31 = vector.load %arg11[%c0_43, %c1024] : memref<256x1152xf32, #tpu.memory_space<vmem>>, vector<256x128xf32>
    tpu.vector_store %arg11[%c0_43, %c1024], %30 {strides = array<i32>} : memref<256x1152xf32, #tpu.memory_space<vmem>>, vector<256x128xf32>,
    %c0_44 = arith.constant 0 : index
    %c0_45 = arith.constant 0 : index
    %32 = vector.load %arg11[%c0_44, %c0_45] : memref<256x1152xf32, #tpu.memory_space<vmem>>, vector<256x1152xf32>
    %c0_46 = arith.constant 0 : index
    %c0_47 = arith.constant 0 : index
    %33 = vector.load %arg2[%c0_46, %c0_47] : memref<1152x128xf32, #tpu.memory_space<vmem>>, vector<1152x128xf32>
    %cst_48 = arith.constant dense<0.000000e+00> : vector<256x128xf32>
    %34 = tpu.matmul %32, %33, %cst_48 {dimension_numbers = #tpu.dot_dimension_numbers<[1], [0], [0], [1], [0, 0, 1, 1], [], []>} : vector<256x1152xf32>, vector<1152x128xf32>, vector<256x128xf32> -> vector<256x128xf32>
    %c0_49 = arith.constant 0 : index
    %c0_50 = arith.constant 0 : index
    %35 = vector.load %arg3[%c0_49, %c0_50] : memref<1x128xf32, #tpu.memory_space<vmem>>, vector<1x128xf32>
    %36 = vector.shape_cast %35 : vector<1x128xf32> to vector<128xf32>
    %37 = vector.shape_cast %36 : vector<128xf32> to vector<1x128xf32>
    %38 = vector.broadcast %37 : vector<1x128xf32> to vector<256x128xf32>
    %39 = arith.mulf %34, %38 : vector<256x128xf32>
    %c0_51 = arith.constant 0 : index
    %c0_52 = arith.constant 0 : index
    %40 = vector.load %arg4[%c0_51, %c0_52] : memref<1x128xf32, #tpu.memory_space<vmem>>, vector<1x128xf32>
    %41 = vector.shape_cast %40 : vector<1x128xf32> to vector<128xf32>
    %42 = vector.shape_cast %41 : vector<128xf32> to vector<1x128xf32>
    %43 = vector.broadcast %42 : vector<1x128xf32> to vector<256x128xf32>
    %44 = arith.addf %39, %43 : vector<256x128xf32>
    %cst_53 = arith.constant 0.000000e+00 : f32
    %45 = vector.broadcast %cst_53 : f32 to vector<256x128xf32>
    %46 = arith.maximumf %44, %45 : vector<256x128xf32>
    %cst_54 = arith.constant 0.000000e+00 : f32
    %47 = vector.broadcast %cst_54 : f32 to vector<18x18x128xf32>
    %c0_55 = arith.constant 0 : index
    %c0_56 = arith.constant 0 : index
    %c0_57 = arith.constant 0 : index
    %48 = vector.load %arg10[%c0_55, %c0_56, %c0_57] : memref<18x18x128xf32, #tpu.memory_space<vmem>>, vector<18x18x128xf32>
    tpu.vector_store %arg10[%c0_55, %c0_56, %c0_57], %47 {strides = array<i32>} : memref<18x18x128xf32, #tpu.memory_space<vmem>>, vector<18x18x128xf32>,
    %49 = vector.shape_cast %46 : vector<256x128xf32> to vector<16x16x128xf32>
    %c1_58 = arith.constant 1 : index
    %c1_59 = arith.constant 1 : index
    %c0_60 = arith.constant 0 : index
    %50 = vector.load %arg10[%c1_58, %c1_59, %c0_60] : memref<18x18x128xf32, #tpu.memory_space<vmem>>, vector<16x16x128xf32>
    tpu.vector_store %arg10[%c1_58, %c1_59, %c0_60], %49 {strides = array<i32>} : memref<18x18x128xf32, #tpu.memory_space<vmem>>, vector<16x16x128xf32>,
    %c0_61 = arith.constant 0 : index
    %c0_62 = arith.constant 0 : index
    %c0_63 = arith.constant 0 : index
    %51 = vector.load %arg10[%c0_61, %c0_62, %c0_63] : memref<18x18x128xf32, #tpu.memory_space<vmem>>, vector<16x16x128xf32>
    %52 = vector.shape_cast %51 : vector<16x16x128xf32> to vector<256x128xf32>
    %c0_64 = arith.constant 0 : index
    %c0_65 = arith.constant 0 : index
    %53 = vector.load %arg11[%c0_64, %c0_65] : memref<256x1152xf32, #tpu.memory_space<vmem>>, vector<256x128xf32>
    tpu.vector_store %arg11[%c0_64, %c0_65], %52 {strides = array<i32>} : memref<256x1152xf32, #tpu.memory_space<vmem>>, vector<256x128xf32>,
    %c0_66 = arith.constant 0 : index
    %c1_67 = arith.constant 1 : index
    %c0_68 = arith.constant 0 : index
    %54 = vector.load %arg10[%c0_66, %c1_67, %c0_68] : memref<18x18x128xf32, #tpu.memory_space<vmem>>, vector<16x16x128xf32>
    %55 = vector.shape_cast %54 : vector<16x16x128xf32> to vector<256x128xf32>
    %c0_69 = arith.constant 0 : index
    %c128_70 = arith.constant 128 : index
    %56 = vector.load %arg11[%c0_69, %c128_70] : memref<256x1152xf32, #tpu.memory_space<vmem>>, vector<256x128xf32>
    tpu.vector_store %arg11[%c0_69, %c128_70], %55 {strides = array<i32>} : memref<256x1152xf32, #tpu.memory_space<vmem>>, vector<256x128xf32>,
    %c0_71 = arith.constant 0 : index
    %c2_72 = arith.constant 2 : index
    %c0_73 = arith.constant 0 : index
    %57 = vector.load %arg10[%c0_71, %c2_72, %c0_73] : memref<18x18x128xf32, #tpu.memory_space<vmem>>, vector<16x16x128xf32>
    %58 = vector.shape_cast %57 : vector<16x16x128xf32> to vector<256x128xf32>
    %c0_74 = arith.constant 0 : index
    %c256_75 = arith.constant 256 : index
    %59 = vector.load %arg11[%c0_74, %c256_75] : memref<256x1152xf32, #tpu.memory_space<vmem>>, vector<256x128xf32>
    tpu.vector_store %arg11[%c0_74, %c256_75], %58 {strides = array<i32>} : memref<256x1152xf32, #tpu.memory_space<vmem>>, vector<256x128xf32>,
    %c1_76 = arith.constant 1 : index
    %c0_77 = arith.constant 0 : index
    %c0_78 = arith.constant 0 : index
    %60 = vector.load %arg10[%c1_76, %c0_77, %c0_78] : memref<18x18x128xf32, #tpu.memory_space<vmem>>, vector<16x16x128xf32>
    %61 = vector.shape_cast %60 : vector<16x16x128xf32> to vector<256x128xf32>
    %c0_79 = arith.constant 0 : index
    %c384_80 = arith.constant 384 : index
    %62 = vector.load %arg11[%c0_79, %c384_80] : memref<256x1152xf32, #tpu.memory_space<vmem>>, vector<256x128xf32>
    tpu.vector_store %arg11[%c0_79, %c384_80], %61 {strides = array<i32>} : memref<256x1152xf32, #tpu.memory_space<vmem>>, vector<256x128xf32>,
    %c1_81 = arith.constant 1 : index
    %c1_82 = arith.constant 1 : index
    %c0_83 = arith.constant 0 : index
    %63 = vector.load %arg10[%c1_81, %c1_82, %c0_83] : memref<18x18x128xf32, #tpu.memory_space<vmem>>, vector<16x16x128xf32>
    %64 = vector.shape_cast %63 : vector<16x16x128xf32> to vector<256x128xf32>
    %c0_84 = arith.constant 0 : index
    %c512_85 = arith.constant 512 : index
    %65 = vector.load %arg11[%c0_84, %c512_85] : memref<256x1152xf32, #tpu.memory_space<vmem>>, vector<256x128xf32>
    tpu.vector_store %arg11[%c0_84, %c512_85], %64 {strides = array<i32>} : memref<256x1152xf32, #tpu.memory_space<vmem>>, vector<256x128xf32>,
    %c1_86 = arith.constant 1 : index
    %c2_87 = arith.constant 2 : index
    %c0_88 = arith.constant 0 : index
    %66 = vector.load %arg10[%c1_86, %c2_87, %c0_88] : memref<18x18x128xf32, #tpu.memory_space<vmem>>, vector<16x16x128xf32>
    %67 = vector.shape_cast %66 : vector<16x16x128xf32> to vector<256x128xf32>
    %c0_89 = arith.constant 0 : index
    %c640_90 = arith.constant 640 : index
    %68 = vector.load %arg11[%c0_89, %c640_90] : memref<256x1152xf32, #tpu.memory_space<vmem>>, vector<256x128xf32>
    tpu.vector_store %arg11[%c0_89, %c640_90], %67 {strides = array<i32>} : memref<256x1152xf32, #tpu.memory_space<vmem>>, vector<256x128xf32>,
    %c2_91 = arith.constant 2 : index
    %c0_92 = arith.constant 0 : index
    %c0_93 = arith.constant 0 : index
    %69 = vector.load %arg10[%c2_91, %c0_92, %c0_93] : memref<18x18x128xf32, #tpu.memory_space<vmem>>, vector<16x16x128xf32>
    %70 = vector.shape_cast %69 : vector<16x16x128xf32> to vector<256x128xf32>
    %c0_94 = arith.constant 0 : index
    %c768_95 = arith.constant 768 : index
    %71 = vector.load %arg11[%c0_94, %c768_95] : memref<256x1152xf32, #tpu.memory_space<vmem>>, vector<256x128xf32>
    tpu.vector_store %arg11[%c0_94, %c768_95], %70 {strides = array<i32>} : memref<256x1152xf32, #tpu.memory_space<vmem>>, vector<256x128xf32>,
    %c2_96 = arith.constant 2 : index
    %c1_97 = arith.constant 1 : index
    %c0_98 = arith.constant 0 : index
    %72 = vector.load %arg10[%c2_96, %c1_97, %c0_98] : memref<18x18x128xf32, #tpu.memory_space<vmem>>, vector<16x16x128xf32>
    %73 = vector.shape_cast %72 : vector<16x16x128xf32> to vector<256x128xf32>
    %c0_99 = arith.constant 0 : index
    %c896_100 = arith.constant 896 : index
    %74 = vector.load %arg11[%c0_99, %c896_100] : memref<256x1152xf32, #tpu.memory_space<vmem>>, vector<256x128xf32>
    tpu.vector_store %arg11[%c0_99, %c896_100], %73 {strides = array<i32>} : memref<256x1152xf32, #tpu.memory_space<vmem>>, vector<256x128xf32>,
    %c2_101 = arith.constant 2 : index
    %c2_102 = arith.constant 2 : index
    %c0_103 = arith.constant 0 : index
    %75 = vector.load %arg10[%c2_101, %c2_102, %c0_103] : memref<18x18x128xf32, #tpu.memory_space<vmem>>, vector<16x16x128xf32>
    %76 = vector.shape_cast %75 : vector<16x16x128xf32> to vector<256x128xf32>
    %c0_104 = arith.constant 0 : index
    %c1024_105 = arith.constant 1024 : index
    %77 = vector.load %arg11[%c0_104, %c1024_105] : memref<256x1152xf32, #tpu.memory_space<vmem>>, vector<256x128xf32>
    tpu.vector_store %arg11[%c0_104, %c1024_105], %76 {strides = array<i32>} : memref<256x1152xf32, #tpu.memory_space<vmem>>, vector<256x128xf32>,
    %c0_106 = arith.constant 0 : index
    %c0_107 = arith.constant 0 : index
    %78 = vector.load %arg11[%c0_106, %c0_107] : memref<256x1152xf32, #tpu.memory_space<vmem>>, vector<256x1152xf32>
    %c0_108 = arith.constant 0 : index
    %c0_109 = arith.constant 0 : index
    %79 = vector.load %arg5[%c0_108, %c0_109] : memref<1152x128xf32, #tpu.memory_space<vmem>>, vector<1152x128xf32>
    %cst_110 = arith.constant dense<0.000000e+00> : vector<256x128xf32>
    %80 = tpu.matmul %78, %79, %cst_110 {dimension_numbers = #tpu.dot_dimension_numbers<[1], [0], [0], [1], [0, 0, 1, 1], [], []>} : vector<256x1152xf32>, vector<1152x128xf32>, vector<256x128xf32> -> vector<256x128xf32>
    %c0_111 = arith.constant 0 : index
    %c0_112 = arith.constant 0 : index
    %81 = vector.load %arg6[%c0_111, %c0_112] : memref<1x128xf32, #tpu.memory_space<vmem>>, vector<1x128xf32>
    %82 = vector.shape_cast %81 : vector<1x128xf32> to vector<128xf32>
    %83 = vector.shape_cast %82 : vector<128xf32> to vector<1x128xf32>
    %84 = vector.broadcast %83 : vector<1x128xf32> to vector<256x128xf32>
    %85 = arith.mulf %80, %84 : vector<256x128xf32>
    %c0_113 = arith.constant 0 : index
    %c0_114 = arith.constant 0 : index
    %86 = vector.load %arg7[%c0_113, %c0_114] : memref<1x128xf32, #tpu.memory_space<vmem>>, vector<1x128xf32>
    %87 = vector.shape_cast %86 : vector<1x128xf32> to vector<128xf32>
    %88 = vector.shape_cast %87 : vector<128xf32> to vector<1x128xf32>
    %89 = vector.broadcast %88 : vector<1x128xf32> to vector<256x128xf32>
    %90 = arith.addf %85, %89 : vector<256x128xf32>
    %91 = vector.shape_cast %1 : vector<16x16x128xf32> to vector<256x128xf32>
    %92 = arith.addf %90, %91 : vector<256x128xf32>
    %cst_115 = arith.constant 0.000000e+00 : f32
    %93 = vector.broadcast %cst_115 : f32 to vector<256x128xf32>
    %94 = arith.maximumf %92, %93 : vector<256x128xf32>
    %95 = vector.shape_cast %94 : vector<256x128xf32> to vector<1x16x16x128xf32>
    %c0_116 = arith.constant 0 : index
    %c0_117 = arith.constant 0 : index
    %c0_118 = arith.constant 0 : index
    %c0_119 = arith.constant 0 : index
    %96 = vector.load %arg8[%c0_116, %c0_117, %c0_118, %c0_119] : memref<1x16x16x128xf32, #tpu.memory_space<vmem>>, vector<1x16x16x128xf32>
    tpu.vector_store %arg8[%c0_116, %c0_117, %c0_118, %c0_119], %95 {strides = array<i32>} : memref<1x16x16x128xf32, #tpu.memory_space<vmem>>, vector<1x16x16x128xf32>,
    return
  }
  func.func @transform_0(%arg0: i32) -> (i32, i32, i32, i32) {
    %c0_i32 = arith.constant 0 : i32
    %c0_i32_0 = arith.constant 0 : i32
    %c0_i32_1 = arith.constant 0 : i32
    %c0_i32_2 = arith.constant 0 : i32
    return %arg0, %c0_i32, %c0_i32_0, %c0_i32_1 : i32, i32, i32, i32
  }
  func.func @transform_1(%arg0: i32) -> (i32, i32) {
    %c0_i32 = arith.constant 0 : i32
    %c0_i32_0 = arith.constant 0 : i32
    %c0_i32_1 = arith.constant 0 : i32
    return %c0_i32, %c0_i32_0 : i32, i32
  }
  func.func @transform_2(%arg0: i32) -> (i32, i32) {
    %c0_i32 = arith.constant 0 : i32
    %c0_i32_0 = arith.constant 0 : i32
    %c0_i32_1 = arith.constant 0 : i32
    return %c0_i32, %c0_i32_0 : i32, i32
  }
  func.func @transform_3(%arg0: i32) -> (i32, i32) {
    %c0_i32 = arith.constant 0 : i32
    %c0_i32_0 = arith.constant 0 : i32
    %c0_i32_1 = arith.constant 0 : i32
    return %c0_i32, %c0_i32_0 : i32, i32
  }
  func.func @transform_4(%arg0: i32) -> (i32, i32) {
    %c0_i32 = arith.constant 0 : i32
    %c0_i32_0 = arith.constant 0 : i32
    %c0_i32_1 = arith.constant 0 : i32
    return %c0_i32, %c0_i32_0 : i32, i32
  }
  func.func @transform_5(%arg0: i32) -> (i32, i32) {
    %c0_i32 = arith.constant 0 : i32
    %c0_i32_0 = arith.constant 0 : i32
    %c0_i32_1 = arith.constant 0 : i32
    return %c0_i32, %c0_i32_0 : i32, i32
  }
  func.func @transform_6(%arg0: i32) -> (i32, i32) {
    %c0_i32 = arith.constant 0 : i32
    %c0_i32_0 = arith.constant 0 : i32
    %c0_i32_1 = arith.constant 0 : i32
    return %c0_i32, %c0_i32_0 : i32, i32
  }
  func.func @transform_7(%arg0: i32) -> (i32, i32, i32, i32) {
    %c0_i32 = arith.constant 0 : i32
    %c0_i32_0 = arith.constant 0 : i32
    %c0_i32_1 = arith.constant 0 : i32
    %c0_i32_2 = arith.constant 0 : i32
    return %arg0, %c0_i32, %c0_i32_0, %c0_i32_1 : i32, i32, i32, i32
  }
}

</mosaic_0001>

<bundles_post_ra>
// kernel: basic_block_forward.1
= control target key start
LH: loop header
LB: loop body
LE: loop exit
PB: predicated region body
PF: predicated region fallthrough
CT: control target
= control target key end

     0   :  { %s6339_s24 = smov 0   ;;  %s8734_s0 = inlined_call_operand.vmem [shape: f32[2,16,16,128], index: 0, kind: input, shape index: {}]   ;;  %s8735_s1 = inlined_call_operand.vmem [shape: f32[1152,128], index: 1, kind: input, shape index: {}]   ;;  %s8736_s2 = inlined_call_operand.vmem [shape: f32[1,128], index: 2, kind: input, shape index: {}]   ;;  %s8737_s3 = inlined_call_operand.vmem [shape: f32[1,128], index: 3, kind: input, shape index: {}]   ;;  %s8738_s4 = inlined_call_operand.vmem [shape: f32[1152,128], index: 4, kind: input, shape index: {}]   ;;  %s8739_s5 = inlined_call_operand.vmem [shape: f32[1,128], index: 5, kind: input, shape index: {}]   ;;  %s8740_s6 = inlined_call_operand.vmem [shape: f32[1,128], index: 6, kind: input, shape index: {}]   ;;  %s8741_s7 = inlined_call_operand.vmem [shape: f32[2,16,16,128], index: 7, kind: output, shape index: {}]  }
   0x1 LB: > { %s5092_s25 = sadd.s32 4294967295, %s6295_s24   ;;  %p5096_p0 = scmp.ge.s32.totalorder %s6295_s24, 1  ;;  %s6295_s24 = sphi %s6339_s24, %s17_s24  }
   0x2   : > { %p237_p1 = scmp.lt.s32.totalorder %s6295_s24, 3 }
   0x4   : > { %p238_p2 = pnand %p5096_p0, %p237_p1 }
   0x6   : > { %241 = sbr.rel (%p238_p2) target bundleno = 1432 (0x598), region = 48 }
   0xd   : > { %v6350_v0 = vld [vmem:[%s8735_s1] sm:$0xff]  ;;  %v6355_v1 = vld [vmem:[%s8735_s1 + $0x8] sm:$0xff]  ;;  %v6360_v2 = vld [vmem:[%s8735_s1 + $0x10] sm:$0xff]  ;;  %p6364_p3 = scmp.lt.s32.totalorder %s5092_s25, 1  ;;  %v8742_v3 = vmov 0.0|0.0   ;;  %v6298_v6 = vmov 0.0  }
   0xe   : > { %5365 = vmatprep.subr.bf16.mxu0 %v8742_v3  ;;  %v5366_v4 = vpack.c.bf16 %v6355_v1, %v6350_v0  ;;  %v6374_v5 = vld [vmem:[%s8735_s1 + $0x18] sm:$0xff]  ;;  %311 = vst [vmem:[#allocation2] sm:$0xff] %v6298_v6  ;;  %312 = vst [vmem:[#allocation2 + $0x8] sm:$0xff] %v6298_v6  ;;  %v1267_v8 = vld [vmem:[%s8735_s1 + $0x20] sm:$0xff] }
   0xf   : > { %313 = vst [vmem:[#allocation2 + $0x10] sm:$0x3] %v6298_v6  ;;  %314 = vst [vmem:[#allocation2 + $0x18] sm:$0xff] %v6298_v6  ;;  %s8801_s25 = smov (!%p6364_p3, %s5092_s25), 1  ;;  %v5369_v7 = vpack.c.bf16 %v6374_v5, %v6360_v2  ;;  %v1268_v9 = vld [vmem:[%s8735_s1 + $0x28] sm:$0xff]  ;;  %v1269_v11 = vld [vmem:[%s8735_s1 + $0x30] sm:$0xff] }
  0x10   : > { %315 = vst [vmem:[#allocation2 + $0x20] sm:$0xff] %v6298_v6  ;;  %316 = vst [vmem:[#allocation2 + $0x28] sm:$0x3] %v6298_v6  ;;  %5367 = vmatpush1.bf16.msra.mxu0 %v5366_v4  ;;  %s5107_s16 = sshll.u32 %s8801_s25, 8  ;;  %v5372_v10 = vpack.c.bf16 %v1268_v9, %v1267_v8  ;;  %v1270_v12 = vld [vmem:[%s8735_s1 + $0x38] sm:$0xff]  ;;  %v1271_v15 = vld [vmem:[%s8735_s1 + $0x40] sm:$0xff] }
  0x11   : > { %317 = vst [vmem:[#allocation2 + $0x30] sm:$0xff] %v6298_v6  ;;  %318 = vst [vmem:[#allocation2 + $0x38] sm:$0xff] %v6298_v6  ;;  %5368 = vmatprep.subr.bf16.mxu0 %v8742_v3  ;;  %s6515_s23 = scalar_lea.vmem %s8734_s0, %s5107_s16  ;;  %v5375_v14 = vpack.c.bf16 %v1270_v12, %v1269_v11  ;;  %v1272_v16 = vld [vmem:[%s8735_s1 + $0x48] sm:$0xff]  ;;  %v1273_v24 = vld [vmem:[%s8735_s1 + $0x50] sm:$0xff]  ;;  %s8614_s19 = scalar_lea.vmem %s8741_s7, %s5107_s16 }
  0x12   : > { %319 = vst [vmem:[#allocation2 + $0x40] sm:$0x3] %v6298_v6  ;;  %320 = vst [vmem:[#allocation2 + $0x48] sm:$0xff] %v6298_v6  ;;  %v6525_v17 = vld [vmem:[%s6515_s23] sm:$0xff]  ;;  %v6529_v18 = vld [vmem:[%s6515_s23 + $0x8] sm:$0xff]  ;;  %v5378_v22 = vpack.c.bf16 %v1272_v16, %v1271_v15 }
  0x13   : > { %321 = vst [vmem:[#allocation2 + $0x50] sm:$0xff] %v6298_v6  ;;  %322 = vst [vmem:[#allocation2 + $0x58] sm:$0x3] %v6298_v6  ;;  %v6532_v19 = vld [vmem:[%s6515_s23 + $0x10] sm:$0xff]  ;;  %v6537_v20 = vld [vmem:[%s6515_s23 + $0x18] sm:$0xff] }
  0x14   : > { %323 = vst [vmem:[#allocation2 + $0x60] sm:$0xff] %v6298_v6  ;;  %324 = vst [vmem:[#allocation2 + $0x68] sm:$0xff] %v6298_v6  ;;  %5370 = vmatpush1.bf16.msra.mxu0 %v5369_v7  ;;  %v6540_v21 = vld [vmem:[%s6515_s23 + $0x20] sm:$0xff]  ;;  %v6545_v23 = vld [vmem:[%s6515_s23 + $0x28] sm:$0xff] }
  0x15   : > { %325 = vst [vmem:[#allocation2 + $0x70] sm:$0x3] %v6298_v6  ;;  %326 = vst [vmem:[#allocation2 + $0x78] sm:$0xff] %v6298_v6  ;;  %5371 = vmatprep.subr.bf16.mxu0 %v8742_v3  ;;  %v462_v13 = vld [vmem:[#allocation2 + $0x1] sm:$0xff]  ;;  %v1274_v25 = vld [vmem:[%s8735_s1 + $0x58] sm:$0xff] }
  0x16   : > { %327 = vst [vmem:[#allocation2 + $0x80] sm:$0xff] %v6298_v6  ;;  %328 = vst [vmem:[#allocation2 + $0x88] sm:$0x3] %v6298_v6  ;;  %1471 = vmatprep.mubr.f32.mxu0 %v462_v13  ;;  %v6556_v26 = vld [vmem:[%s6515_s23 + $0x30] sm:$0xff]  ;;  %v6560_v27 = vld [vmem:[%s6515_s23 + $0x38] sm:$0xff]  ;;  %v5381_v31 = vpack.c.bf16 %v1274_v25, %v1273_v24 }
  0x17   : > { %329 = vst [vmem:[#allocation2 + $0x90] sm:$0xff] %v6298_v6  ;;  %330 = vst [vmem:[#allocation2 + $0x98] sm:$0xff] %v6298_v6  ;;  %v6563_v28 = vld [vmem:[%s6515_s23 + $0x40] sm:$0xff]  ;;  %v6568_v29 = vld [vmem:[%s6515_s23 + $0x48] sm:$0xff] }
  0x18   : > { %331 = vst [vmem:[#allocation2 + $0xa0] sm:$0x3] %v6298_v6  ;;  %332 = vst [vmem:[#allocation2 + $0xa8] sm:$0xff] %v6298_v6  ;;  %5373 = vmatpush1.bf16.msra.mxu0 %v5372_v10  ;;  %v6571_v30 = vld [vmem:[%s6515_s23 + $0x50] sm:$0xff]  ;;  %v6576_v32 = vld [vmem:[%s6515_s23 + $0x58] sm:$0xff] }
  0x19   : > { %333 = vst [vmem:[#allocation2 + $0xb0] sm:$0xff] %v6298_v6  ;;  %334 = vst [vmem:[#allocation2 + $0xb8] sm:$0x3] %v6298_v6  ;;  %5374 = vmatprep.subr.bf16.mxu0 %v8742_v3  ;;  %v1275_v33 = vld [vmem:[%s8735_s1 + $0x60] sm:$0xff]  ;;  %v1276_v34 = vld [vmem:[%s8735_s1 + $0x68] sm:$0xff] }
  0x1a   : > { %335 = vst [vmem:[#allocation2 + $0xc0] sm:$0xff] %v6298_v6  ;;  %336 = vst [vmem:[#allocation2 + $0xc8] sm:$0xff] %v6298_v6  ;;  %v6587_v35 = vld [vmem:[%s6515_s23 + $0x60] sm:$0xff]  ;;  %v6591_v36 = vld [vmem:[%s6515_s23 + $0x68] sm:$0xff]  ;;  %v5384_v37 = vpack.c.bf16 %v1276_v34, %v1275_v33 }
  0x1b   : > { %337 = vst [vmem:[#allocation2 + $0xd0] sm:$0x3] %v6298_v6  ;;  %338 = vst [vmem:[#allocation2 + $0xd8] sm:$0xff] %v6298_v6  ;;  %v6595_v38 = vld [vmem:[%s6515_s23 + $0x70] sm:$0xff]  ;;  %v1278_v40 = vld [vmem:[%s8735_s1 + $0x78] sm:$0xff] }
  0x1c   : > { %339 = vst [vmem:[#allocation2 + $0xe0] sm:$0xff] %v6298_v6  ;;  %340 = vst [vmem:[#allocation2 + $0xe8] sm:$0x3] %v6298_v6  ;;  %5376 = vmatpush1.bf16.msra.mxu0 %v5375_v14  ;;  %v1277_v39 = vld [vmem:[%s8735_s1 + $0x70] sm:$0xff]  ;;  %v6606_v41 = vld [vmem:[%s6515_s23 + $0x78] sm:$0xff] }
  0x1d   : > { %341 = vst [vmem:[#allocation2 + $0xf0] sm:$0xff] %v6298_v6  ;;  %342 = vst [vmem:[#allocation2 + $0xf8] sm:$0xff] %v6298_v6  ;;  %5377 = vmatprep.subr.bf16.mxu0 %v8742_v3  ;;  %v6610_v42 = vld [vmem:[%s6515_s23 + $0x80] sm:$0xff]  ;;  %v5387_v43 = vpack.c.bf16 %v1278_v40, %v1277_v39  ;;  %v6614_v44 = vld [vmem:[%s6515_s23 + $0x88] sm:$0xff] }
  0x1e   : > { %343 = vst [vmem:[#allocation2 + $0x100] sm:$0x3] %v6298_v6  ;;  %344 = vst [vmem:[#allocation2 + $0x108] sm:$0xff] %v6298_v6  ;;  %v1279_v45 = vld [vmem:[%s8735_s1 + $0x80] sm:$0xff]  ;;  %v1280_v46 = vld [vmem:[%s8735_s1 + $0x88] sm:$0xff] }
  0x1f   : > { %345 = vst [vmem:[#allocation2 + $0x110] sm:$0xff] %v6298_v6  ;;  %346 = vst [vmem:[#allocation2 + $0x118] sm:$0x3] %v6298_v6  ;;  %v6625_v47 = vld [vmem:[%s6515_s23 + $0x90] sm:$0xff]  ;;  %v6629_v48 = vld [vmem:[%s6515_s23 + $0x98] sm:$0xff]  ;;  %v5390_v50 = vpack.c.bf16 %v1280_v46, %v1279_v45 }
  0x20   : > { %347 = vst [vmem:[#allocation2 + $0x120] sm:$0xff] %v6298_v6  ;;  %348 = vst [vmem:[#allocation2 + $0x128] sm:$0xff] %v6298_v6  ;;  %5379 = vmatpush1.bf16.msra.mxu0 %v5378_v22  ;;  %v6632_v49 = vld [vmem:[%s6515_s23 + $0xa0] sm:$0xff]  ;;  %v6637_v51 = vld [vmem:[%s6515_s23 + $0xa8] sm:$0xff] }
  0x21   : > { %349 = vst [vmem:[#allocation2 + $0x130] sm:$0x3] %v6298_v6  ;;  %350 = vst [vmem:[#allocation2 + $0x138] sm:$0xff] %v6298_v6  ;;  %5380 = vmatprep.subr.bf16.mxu0 %v8742_v3  ;;  %v6640_v52 = vld [vmem:[%s6515_s23 + $0xb0] sm:$0xff]  ;;  %v1282_v54 = vld [vmem:[%s8735_s1 + $0x98] sm:$0xff] }
  0x22   : > { %351 = vst [vmem:[#allocation2 + $0x140] sm:$0xff] %v6298_v6  ;;  %352 = vst [vmem:[#allocation2 + $0x148] sm:$0x3] %v6298_v6  ;;  %v1281_v53 = vld [vmem:[%s8735_s1 + $0x90] sm:$0xff]  ;;  %v6652_v55 = vld [vmem:[%s6515_s23 + $0xb8] sm:$0xff] }
  0x23   : > { %353 = vst [vmem:[#allocation2 + $0x150] sm:$0xff] %v6298_v6  ;;  %354 = vst [vmem:[#allocation2 + $0x158] sm:$0xff] %v6298_v6  ;;  %v6656_v56 = vld [vmem:[%s6515_s23 + $0xc0] sm:$0xff]  ;;  %v5393_v57 = vpack.c.bf16 %v1282_v54, %v1281_v53  ;;  %v1284_v59 = vld [vmem:[%s8735_s1 + $0xa8] sm:$0xff] }
  0x24   : > { %355 = vst [vmem:[#allocation2 + $0x160] sm:$0x3] %v6298_v6  ;;  %356 = vst [vmem:[#allocation2 + $0x168] sm:$0xff] %v6298_v6  ;;  %5382 = vmatpush1.bf16.msra.mxu0 %v5381_v31  ;;  %v1283_v58 = vld [vmem:[%s8735_s1 + $0xa0] sm:$0xff]  ;;  %v6667_v60 = vld [vmem:[%s6515_s23 + $0xc8] sm:$0xff] }
  0x25   : > { %357 = vst [vmem:[#allocation2 + $0x170] sm:$0xff] %v6298_v6  ;;  %358 = vst [vmem:[#allocation2 + $0x178] sm:$0x3] %v6298_v6  ;;  %5383 = vmatprep.subr.bf16.mxu0 %v8742_v3  ;;  %v5396_v61 = vpack.c.bf16 %v1284_v59, %v1283_v58  ;;  %v1285_v62 = vld [vmem:[%s8735_s1 + $0xb0] sm:$0xff]  ;;  %v1286_v63 = vld [vmem:[%s8735_s1 + $0xb8] sm:$0xff] }
  0x26   : > { %359 = vst [vmem:[#allocation2 + $0x180] sm:$0xff] %v6298_v6  ;;  %360 = vst [vmem:[#allocation2 + $0x188] sm:$0xff] %v6298_v6  ;;  %v6678_v0 = vld [vmem:[%s6515_s23 + $0xd0] sm:$0xff]  ;;  %v5399_v1 = vpack.c.bf16 %v1286_v63, %v1285_v62  ;;  %v1287_v2 = vld [vmem:[%s8735_s1 + $0xc0] sm:$0xff] }
  0x27   : > { %361 = vst [vmem:[#allocation2 + $0x190] sm:$0x3] %v6298_v6  ;;  %362 = vst [vmem:[#allocation2 + $0x198] sm:$0xff] %v6298_v6  ;;  %v1288_v4 = vld [vmem:[%s8735_s1 + $0xc8] sm:$0xff]  ;;  %v6689_v5 = vld [vmem:[%s6515_s23 + $0xd8] sm:$0xff] }
  0x28   : > { %363 = vst [vmem:[#allocation2 + $0x1a0] sm:$0xff] %v6298_v6  ;;  %364 = vst [vmem:[#allocation2 + $0x1a8] sm:$0x3] %v6298_v6  ;;  %5385 = vmatpush1.bf16.msra.mxu0 %v5384_v37  ;;  %v5402_v7 = vpack.c.bf16 %v1288_v4, %v1287_v2  ;;  %v1289_v8 = vld [vmem:[%s8735_s1 + $0xd0] sm:$0xff]  ;;  %v1290_v9 = vld [vmem:[%s8735_s1 + $0xd8] sm:$0xff] }
  0x29   : > { %2642 = vst [vmem:[#allocation3] sm:$0xff] %v6298_v6  ;;  %2643 = vst [vmem:[#allocation3 + $0x8] sm:$0xff] %v6298_v6  ;;  %5386 = vmatprep.subr.bf16.mxu0 %v8742_v3  ;;  %v6700_v10 = vld [vmem:[%s6515_s23 + $0xe0] sm:$0xff]  ;;  %v5405_v11 = vpack.c.bf16 %v1290_v9, %v1289_v8  ;;  %v1292_v13 = vld [vmem:[%s8735_s1 + $0xe8] sm:$0xff] }
  0x2a   : > { %2644 = vst [vmem:[#allocation3 + $0x10] sm:$0x3] %v6298_v6  ;;  %2645 = vst [vmem:[#allocation3 + $0x18] sm:$0xff] %v6298_v6  ;;  %v1291_v12 = vld [vmem:[%s8735_s1 + $0xe0] sm:$0xff]  ;;  %v6711_v14 = vld [vmem:[%s6515_s23 + $0xe8] sm:$0xff] }
  0x2b   : > { %2646 = vst [vmem:[#allocation3 + $0x20] sm:$0xff] %v6298_v6  ;;  %2647 = vst [vmem:[#allocation3 + $0x28] sm:$0x3] %v6298_v6  ;;  %v5408_v15 = vpack.c.bf16 %v1292_v13, %v1291_v12  ;;  %v1293_v16 = vld [vmem:[%s8735_s1 + $0xf0] sm:$0xff]  ;;  %v1294_v22 = vld [vmem:[%s8735_s1 + $0xf8] sm:$0xff] }
  0x2c   : > { %2648 = vst [vmem:[#allocation3 + $0x30] sm:$0xff] %v6298_v6  ;;  %2649 = vst [vmem:[#allocation3 + $0x38] sm:$0xff] %v6298_v6  ;;  %5388 = vmatpush1.bf16.msra.mxu0 %v5387_v43  ;;  %v5411_v24 = vpack.c.bf16 %v1294_v22, %v1293_v16  ;;  %v1295_v25 = vld [vmem:[%s8735_s1 + $0x100] sm:$0xff]  ;;  %v1296_v31 = vld [vmem:[%s8735_s1 + $0x108] sm:$0xff] }
  0x2d   : > { %2650 = vst [vmem:[#allocation3 + $0x40] sm:$0x3] %v6298_v6  ;;  %2651 = vst [vmem:[#allocation3 + $0x48] sm:$0xff] %v6298_v6  ;;  %5389 = vmatprep.subr.bf16.mxu0 %v8742_v3  ;;  %v5414_v33 = vpack.c.bf16 %v1296_v31, %v1295_v25  ;;  %v463_v34 = vld [vmem:[#allocation2 + $0x9] sm:$0xff]  ;;  %v1298_v39 = vld [vmem:[%s8735_s1 + $0x118] sm:$0xff] }
  0x2e   : > { %2652 = vst [vmem:[#allocation3 + $0x50] sm:$0xff] %v6298_v6  ;;  %2653 = vst [vmem:[#allocation3 + $0x58] sm:$0x3] %v6298_v6  ;;  %v1297_v37 = vld [vmem:[%s8735_s1 + $0x110] sm:$0xff]  ;;  %v1299_v43 = vld [vmem:[%s8735_s1 + $0x120] sm:$0xff] }
  0x2f   : > { %2654 = vst [vmem:[#allocation3 + $0x60] sm:$0xff] %v6298_v6  ;;  %2655 = vst [vmem:[#allocation3 + $0x68] sm:$0xff] %v6298_v6  ;;  %v5417_v40 = vpack.c.bf16 %v1298_v39, %v1297_v37  ;;  %v1300_v45 = vld [vmem:[%s8735_s1 + $0x128] sm:$0xff]  ;;  %v1301_v53 = vld [vmem:[%s8735_s1 + $0x130] sm:$0xff] }
  0x30   : > { %2656 = vst [vmem:[#allocation3 + $0x70] sm:$0x3] %v6298_v6  ;;  %2657 = vst [vmem:[#allocation3 + $0x78] sm:$0xff] %v6298_v6  ;;  %5391 = vmatpush1.bf16.msra.mxu0 %v5390_v50  ;;  %v5420_v50 = vpack.c.bf16 %v1300_v45, %v1299_v43  ;;  %v1302_v54 = vld [vmem:[%s8735_s1 + $0x138] sm:$0xff]  ;;  %v1304_v58 = vld [vmem:[%s8735_s1 + $0x148] sm:$0xff] }
  0x31   : > { %2658 = vst [vmem:[#allocation3 + $0x80] sm:$0xff] %v6298_v6  ;;  %2659 = vst [vmem:[#allocation3 + $0x88] sm:$0x3] %v6298_v6  ;;  %5392 = vmatprep.subr.bf16.mxu0 %v8742_v3  ;;  %v1305_v62 = vld [vmem:[%s8735_s1 + $0x150] sm:$0xff]  ;;  %v1306_v63 = vld [vmem:[%s8735_s1 + $0x158] sm:$0xff] }
  0x32   : > { %2660 = vst [vmem:[#allocation3 + $0x90] sm:$0xff] %v6298_v6  ;;  %2661 = vst [vmem:[#allocation3 + $0x98] sm:$0xff] %v6298_v6  ;;  %v1307_v2 = vld [vmem:[%s8735_s1 + $0x160] sm:$0xff]  ;;  %v1308_v4 = vld [vmem:[%s8735_s1 + $0x168] sm:$0xff] }
  0x33   : > { %2662 = vst [vmem:[#allocation3 + $0xa0] sm:$0x3] %v6298_v6  ;;  %2663 = vst [vmem:[#allocation3 + $0xa8] sm:$0xff] %v6298_v6  ;;  %v1309_v8 = vld [vmem:[%s8735_s1 + $0x170] sm:$0xff]  ;;  %v1310_v9 = vld [vmem:[%s8735_s1 + $0x178] sm:$0xff] }
  0x34   : > { %2664 = vst [vmem:[#allocation3 + $0xb0] sm:$0xff] %v6298_v6  ;;  %2665 = vst [vmem:[#allocation3 + $0xb8] sm:$0x3] %v6298_v6  ;;  %5394 = vmatpush1.bf16.msra.mxu0 %v5393_v57  ;;  %v1303_v57 = vld [vmem:[%s8735_s1 + $0x140] sm:$0xff]  ;;  %v1312_v13 = vld [vmem:[%s8735_s1 + $0x188] sm:$0xff] }
  0x35   : > { %2666 = vst [vmem:[#allocation3 + $0xc0] sm:$0xff] %v6298_v6  ;;  %2667 = vst [vmem:[#allocation3 + $0xc8] sm:$0xff] %v6298_v6  ;;  %5395 = vmatprep.subr.bf16.mxu0 %v8742_v3  ;;  %v1311_v12 = vld [vmem:[%s8735_s1 + $0x180] sm:$0xff]  ;;  %v1313_v16 = vld [vmem:[%s8735_s1 + $0x190] sm:$0xff] }
  0x36   : > { %2668 = vst [vmem:[#allocation3 + $0xd0] sm:$0x3] %v6298_v6  ;;  %2669 = vst [vmem:[#allocation3 + $0xd8] sm:$0xff] %v6298_v6  ;;  %v1314_v22 = vld [vmem:[%s8735_s1 + $0x198] sm:$0xff]  ;;  %v1315_v25 = vld [vmem:[%s8735_s1 + $0x1a0] sm:$0xff] }
  0x37   : > { %2670 = vst [vmem:[#allocation3 + $0xe0] sm:$0xff] %v6298_v6  ;;  %2671 = vst [vmem:[#allocation3 + $0xe8] sm:$0x3] %v6298_v6  ;;  %v1316_v31 = vld [vmem:[%s8735_s1 + $0x1a8] sm:$0xff]  ;;  %v1318_v37 = vld [vmem:[%s8735_s1 + $0x1b8] sm:$0xff] }
  0x38   : > { %2672 = vst [vmem:[#allocation3 + $0xf0] sm:$0xff] %v6298_v6  ;;  %2673 = vst [vmem:[#allocation3 + $0xf8] sm:$0xff] %v6298_v6  ;;  %5397 = vmatpush1.bf16.msra.mxu0 %v5396_v61  ;;  %v1320_v43 = vld [vmem:[%s8735_s1 + $0x1c8] sm:$0xff] }
  0x39   : > { %2674 = vst [vmem:[#allocation3 + $0x100] sm:$0x3] %v6298_v6  ;;  %2675 = vst [vmem:[#allocation3 + $0x108] sm:$0xff] %v6298_v6  ;;  %5398 = vmatprep.subr.bf16.mxu0 %v8742_v3 }
  0x3a   : > { %2676 = vst [vmem:[#allocation3 + $0x110] sm:$0xff] %v6298_v6  ;;  %2677 = vst [vmem:[#allocation3 + $0x118] sm:$0x3] %v6298_v6 }
  0x3b   : > { %2678 = vst [vmem:[#allocation3 + $0x120] sm:$0xff] %v6298_v6  ;;  %2679 = vst [vmem:[#allocation3 + $0x128] sm:$0xff] %v6298_v6 }
  0x3c   : > { %2680 = vst [vmem:[#allocation3 + $0x130] sm:$0x3] %v6298_v6  ;;  %2681 = vst [vmem:[#allocation3 + $0x138] sm:$0xff] %v6298_v6  ;;  %5400 = vmatpush1.bf16.msra.mxu0 %v5399_v1  ;;  %v5429_v1 = vpack.c.bf16 %v1306_v63, %v1305_v62  ;;  %v1326_v62 = vld [vmem:[%s8735_s1 + $0x1f8] sm:$0xff] }
  0x3d   : > { %2682 = vst [vmem:[#allocation3 + $0x140] sm:$0xff] %v6298_v6  ;;  %2683 = vst [vmem:[#allocation3 + $0x148] sm:$0x3] %v6298_v6  ;;  %5401 = vmatprep.subr.bf16.mxu0 %v8742_v3 }
  0x3e   : > { %2684 = vst [vmem:[#allocation3 + $0x150] sm:$0xff] %v6298_v6  ;;  %2685 = vst [vmem:[#allocation3 + $0x158] sm:$0xff] %v6298_v6 }
  0x3f   : > { %2686 = vst [vmem:[#allocation3 + $0x160] sm:$0x3] %v6298_v6  ;;  %2687 = vst [vmem:[#allocation3 + $0x168] sm:$0xff] %v6298_v6 }
  0x40   : > { %2688 = vst [vmem:[#allocation3 + $0x170] sm:$0xff] %v6298_v6  ;;  %2689 = vst [vmem:[#allocation3 + $0x178] sm:$0x3] %v6298_v6  ;;  %5403 = vmatpush1.bf16.msra.mxu0 %v5402_v7 }
  0x41   : > { %2690 = vst [vmem:[#allocation3 + $0x180] sm:$0xff] %v6298_v6  ;;  %2691 = vst [vmem:[#allocation3 + $0x188] sm:$0xff] %v6298_v6  ;;  %5404 = vmatprep.subr.bf16.mxu0 %v8742_v3 }
  0x42   : > { %2692 = vst [vmem:[#allocation3 + $0x190] sm:$0x3] %v6298_v6  ;;  %2693 = vst [vmem:[#allocation3 + $0x198] sm:$0xff] %v6298_v6 }
  0x43   : > { %2694 = vst [vmem:[#allocation3 + $0x1a0] sm:$0xff] %v6298_v6  ;;  %2695 = vst [vmem:[#allocation3 + $0x1a8] sm:$0x3] %v6298_v6 }
  0x44   : > { %366 = vst [vmem:[#allocation2 + $0x19] sm:$0xff] %v6525_v17  ;;  %367 = vst [vmem:[#allocation2 + $0x21] sm:$0xff] %v6529_v18  ;;  %5406 = vmatpush1.bf16.msra.mxu0 %v5405_v11 }
  0x45   : > { %368 = vst [vmem:[#allocation2 + $0x31] sm:$0xff] %v6532_v19  ;;  %369 = vst [vmem:[#allocation2 + $0x39] sm:$0xff] %v6537_v20  ;;  %5407 = vmatprep.subr.bf16.mxu0 %v8742_v3 }
  0x46   : > { %370 = vst [vmem:[#allocation2 + $0x49] sm:$0xff] %v6540_v21  ;;  %371 = vst [vmem:[#allocation2 + $0x51] sm:$0xff] %v6545_v23 }
  0x47   : > { %372 = vst [vmem:[#allocation2 + $0x61] sm:$0xff] %v6556_v26  ;;  %373 = vst [vmem:[#allocation2 + $0x69] sm:$0xff] %v6560_v27 }
  0x48   : > { %374 = vst [vmem:[#allocation2 + $0x79] sm:$0xff] %v6563_v28  ;;  %375 = vst [vmem:[#allocation2 + $0x81] sm:$0xff] %v6568_v29  ;;  %5409 = vmatpush1.bf16.msra.mxu0 %v5408_v15 }
  0x49   : > { %376 = vst [vmem:[#allocation2 + $0x91] sm:$0xff] %v6571_v30  ;;  %377 = vst [vmem:[#allocation2 + $0x99] sm:$0xff] %v6576_v32  ;;  %5410 = vmatprep.subr.bf16.mxu0 %v8742_v3 }
  0x4a   : > { %378 = vst [vmem:[#allocation2 + $0xa9] sm:$0xff] %v6587_v35  ;;  %379 = vst [vmem:[#allocation2 + $0xb1] sm:$0xff] %v6591_v36 }
  0x4b   : > { %380 = vst [vmem:[#allocation2 + $0xc1] sm:$0xff] %v6595_v38  ;;  %381 = vst [vmem:[#allocation2 + $0xc9] sm:$0xff] %v6606_v41  ;;  %v6745_v46 = vld [vmem:[#allocation2 + $0x18] sm:$0xff] }
  0x4c   : > { %382 = vst [vmem:[#allocation2 + $0xd9] sm:$0xff] %v6610_v42  ;;  %383 = vst [vmem:[#allocation2 + $0xe1] sm:$0xff] %v6614_v44  ;;  %5412 = vmatpush1.bf16.msra.mxu0 %v5411_v24  ;;  %v6767_v59 = vld [vmem:[#allocation2 + $0x30] sm:$0xff] }
  0x4d   : > { %384 = vst [vmem:[#allocation2 + $0xf1] sm:$0xff] %v6625_v47  ;;  %385 = vst [vmem:[#allocation2 + $0xf9] sm:$0xff] %v6629_v48  ;;  %5413 = vmatprep.subr.bf16.mxu0 %v8742_v3  ;;  %v6769_v61 = vld [vmem:[#allocation2 + $0x32] sm:$0xff]  ;;  %v6792_v7 = vld [vmem:[#allocation2 + $0x48] sm:$0xff] }
  0x4e   : > { %386 = vst [vmem:[#allocation2 + $0x109] sm:$0xff] %v6632_v49  ;;  %387 = vst [vmem:[#allocation2 + $0x111] sm:$0xff] %v6637_v51  ;;  %5237 = vmatprep.mubr.f32.mxu1 %v6769_v61  ;;  %v6803_v11 = vld [vmem:[#allocation2 + $0x50] sm:$0xff]  ;;  %v6814_v15 = vld [vmem:[#allocation2 + $0x60] sm:$0xff] }
  0x4f   : > { %388 = vst [vmem:[#allocation2 + $0x121] sm:$0xff] %v6640_v52  ;;  %389 = vst [vmem:[#allocation2 + $0x129] sm:$0xff] %v6652_v55  ;;  %1472 = vmatmul.mubr.f32.vlgmr.msra.gmra.mrb[0].mxu0 %v6298_v6  ;;  %v6825_v24 = vld [vmem:[#allocation2 + $0x68] sm:$0xff]  ;;  %v6847_v39 = vld [vmem:[#allocation2 + $0x80] sm:$0xff] }
  0x50   : > { %390 = vst [vmem:[#allocation2 + $0x139] sm:$0xff] %v6656_v56  ;;  %391 = vst [vmem:[#allocation2 + $0x141] sm:$0xff] %v6667_v60  ;;  %5415 = vmatpush1.bf16.msra.mxu0 %v5414_v33  ;;  %1476 = vmatprep.mubr.f32.mxu0 %v463_v34  ;;  %v6836_v33 = vld [vmem:[#allocation2 + $0x78] sm:$0xff]  ;;  %v1317_v34 = vld [vmem:[%s8735_s1 + $0x1b0] sm:$0xff] }
  0x51   : > { %392 = vst [vmem:[#allocation2 + $0x151] sm:$0xff] %v6678_v0  ;;  %393 = vst [vmem:[#allocation2 + $0x159] sm:$0xff] %v6689_v5  ;;  %5416 = vmatprep.subr.bf16.mxu0 %v8742_v3  ;;  %v6858_v45 = vld [vmem:[#allocation2 + $0x90] sm:$0xff] }
  0x52   : > { %394 = vst [vmem:[#allocation2 + $0x169] sm:$0xff] %v6700_v10  ;;  %395 = vst [vmem:[#allocation2 + $0x171] sm:$0xff] %v6711_v14  ;;  %v6891_v63 = vld [vmem:[#allocation2 + $0xb0] sm:$0xff] }
  0x53   : > { %1477 = vmatmul.mubr.f32.gmra.mrb[2].mxu0 %v6298_v6  ;;  %v6756_v6 = vld [vmem:[#allocation2 + $0x20] sm:$0xff] }
  0x54   : > { %1481 = vmatprep.mubr.f32.mxu0 %v6525_v17  ;;  %5418 = vmatpush1.bf16.msra.mxu0 %v5417_v40  ;;  %v5423_v17 = vpack.c.bf16 %v1302_v54, %v1301_v53  ;;  %v1319_v40 = vld [vmem:[%s8735_s1 + $0x1c0] sm:$0xff]  ;;  %v1322_v53 = vld [vmem:[%s8735_s1 + $0x1d8] sm:$0xff] }
  0x55   : > { %5419 = vmatprep.subr.bf16.mxu0 %v8742_v3  ;;  %v6869_v54 = vld [vmem:[#allocation2 + $0x98] sm:$0xff] }
  0x57   : > { %1482 = vmatmul.mubr.f32.gmra.mrb[4].mxu0 %v6745_v46 }
  0x58   : > { %1486 = vmatprep.mubr.f32.mxu0 %v6529_v18  ;;  %5421 = vmatpush1.bf16.msra.mxu0 %v5420_v50  ;;  %v5426_v18 = vpack.c.bf16 %v1304_v58, %v1303_v57  ;;  %v1321_v50 = vld [vmem:[%s8735_s1 + $0x1d0] sm:$0xff]  ;;  %v1324_v57 = vld [vmem:[%s8735_s1 + $0x1e8] sm:$0xff] }
  0x59   : > { %5422 = vmatprep.subr.bf16.mxu0 %v8742_v3  ;;  %v6880_v58 = vld [vmem:[#allocation2 + $0xa8] sm:$0xff] }
  0x5b   : > { %1487 = vmatmul.mubr.f32.gmra.mrb[6].mxu0 %v6756_v6 }
  0x5c   : > { %1491 = vmatprep.mubr.f32.mxu0 %v6532_v19  ;;  %5424 = vmatpush1.bf16.msra.mxu0 %v5423_v17  ;;  %v6781_v19 = vld [vmem:[#allocation2 + $0x38] sm:$0xff]  ;;  %v1323_v17 = vld [vmem:[%s8735_s1 + $0x1e0] sm:$0xff] }
  0x5d   : > { %5425 = vmatprep.subr.bf16.mxu0 %v8742_v3 }
  0x5f   : > { %1492 = vmatmul.mubr.f32.gmra.mrb[8].mxu0 %v6767_v59 }
  0x60   : > { %1496 = vmatprep.mubr.f32.mxu0 %v6537_v20  ;;  %5427 = vmatpush1.bf16.msra.mxu0 %v5426_v18  ;;  %v5432_v20 = vpack.c.bf16 %v1308_v4, %v1307_v2  ;;  %v1325_v18 = vld [vmem:[%s8735_s1 + $0x1f0] sm:$0xff]  ;;  %v6905_v2 = vld [vmem:[#allocation2 + $0xd8] sm:$0xff] }
  0x61   : > { %5428 = vmatprep.subr.bf16.mxu0 %v8742_v3  ;;  %v6913_v4 = vld [vmem:[#allocation2 + $0xf0] sm:$0xff] }
  0x63   : > { %1497 = vmatmul.mubr.f32.gmra.mrb[10].mxu0 %v6781_v19 }
  0x64   : > { %1501 = vmatprep.mubr.f32.mxu0 %v6540_v21  ;;  %5430 = vmatpush1.bf16.msra.mxu0 %v5429_v1  ;;  %v5435_v21 = vpack.c.bf16 %v1310_v9, %v1309_v8  ;;  %v6896_v1 = vld [vmem:[#allocation2 + $0xc0] sm:$0xff]  ;;  %v1328_v8 = vld [vmem:[%s8735_s1 + $0x208] sm:$0xff] }
  0x65   : > { %5431 = vmatprep.subr.bf16.mxu0 %v8742_v3 }
  0x67   : > { %1502 = vmatmul.mubr.f32.gmra.mrb[12].mxu0 %v6792_v7 }
  0x68   : > { %1506 = vmatprep.mubr.f32.mxu0 %v6545_v23  ;;  %5433 = vmatpush1.bf16.msra.mxu0 %v5432_v20  ;;  %v5438_v23 = vpack.c.bf16 %v1312_v13, %v1311_v12  ;;  %v6956_v20 = vld [vmem:[%s6515_s23 + $0xf8] sm:$0xff]  ;;  %v527_v12 = vld [vmem:[#allocation2 + $0xa] sm:$0xff] }
  0x69   : > { %5434 = vmatprep.subr.bf16.mxu0 %v8742_v3  ;;  %397 = vst [vmem:[#allocation2 + $0x189] sm:$0xff] %v6956_v20 }
  0x6b   : > { %1507 = vmatmul.mubr.f32.gmra.mrb[14].mxu0 %v6803_v11 }
  0x6c   : > { %1511 = vmatprep.mubr.f32.mxu0 %v6556_v26  ;;  %5436 = vmatpush1.bf16.msra.mxu0 %v5435_v21  ;;  %v5441_v26 = vpack.c.bf16 %v1314_v22, %v1313_v16  ;;  %v1330_v21 = vld [vmem:[%s8735_s1 + $0x218] sm:$0xff] }
  0x6d   : > { %5437 = vmatprep.subr.bf16.mxu0 %v8742_v3  ;;  %v6990_v16 = vld [vmem:[#allocation2 + $0x1a] sm:$0xff] }
  0x6f   : > { %1512 = vmatmul.mubr.f32.gmra.mrb[16].mxu0 %v6814_v15 }
  0x70   : > { %1516 = vmatprep.mubr.f32.mxu0 %v6560_v27  ;;  %5439 = vmatpush1.bf16.msra.mxu0 %v5438_v23  ;;  %v5444_v27 = vpack.c.bf16 %v1316_v31, %v1315_v25  ;;  %v1332_v23 = vld [vmem:[%s8735_s1 + $0x228] sm:$0xff]  ;;  %v1335_v31 = vld [vmem:[%s8735_s1 + $0x240] sm:$0xff] }
  0x71   : > { %5440 = vmatprep.subr.bf16.mxu0 %v8742_v3  ;;  %v7001_v25 = vld [vmem:[#allocation2 + $0x22] sm:$0xff] }
  0x73   : > { %1517 = vmatmul.mubr.f32.gmra.mrb[18].mxu0 %v6825_v24 }
  0x74   : > { %1521 = vmatprep.mubr.f32.mxu0 %v6563_v28  ;;  %5442 = vmatpush1.bf16.msra.mxu0 %v5441_v26  ;;  %v5447_v28 = vpack.c.bf16 %v1318_v37, %v1317_v34  ;;  %v1334_v26 = vld [vmem:[%s8735_s1 + $0x238] sm:$0xff]  ;;  %v1337_v34 = vld [vmem:[%s8735_s1 + $0x250] sm:$0xff] }
  0x75   : > { %5443 = vmatprep.subr.bf16.mxu0 %v8742_v3  ;;  %v1338_v37 = vld [vmem:[%s8735_s1 + $0x258] sm:$0xff] }
  0x77   : > { %1522 = vmatmul.mubr.f32.gmra.mrb[20].mxu0 %v6836_v33 }
  0x78   : > { %1526 = vmatprep.mubr.f32.mxu0 %v6568_v29  ;;  %5445 = vmatpush1.bf16.msra.mxu0 %v5444_v27  ;;  %v5450_v29 = vpack.c.bf16 %v1320_v43, %v1319_v40  ;;  %v1336_v27 = vld [vmem:[%s8735_s1 + $0x248] sm:$0xff]  ;;  %v1339_v40 = vld [vmem:[%s8735_s1 + $0x260] sm:$0xff] }
  0x79   : > { %5446 = vmatprep.subr.bf16.mxu0 %v8742_v3  ;;  %v1340_v43 = vld [vmem:[%s8735_s1 + $0x268] sm:$0xff] }
  0x7b   : > { %1527 = vmatmul.mubr.f32.gmra.mrb[22].mxu0 %v6847_v39 }
  0x7c   : > { %1531 = vmatprep.mubr.f32.mxu0 %v6571_v30  ;;  %5448 = vmatpush1.bf16.msra.mxu0 %v5447_v28  ;;  %v5453_v30 = vpack.c.bf16 %v1322_v53, %v1321_v50  ;;  %v7021_v28 = vld [vmem:[#allocation2 + $0x3a] sm:$0xff]  ;;  %v1341_v50 = vld [vmem:[%s8735_s1 + $0x270] sm:$0xff] }
  0x7d   : > { %5449 = vmatprep.subr.bf16.mxu0 %v8742_v3  ;;  %v1342_v53 = vld [vmem:[%s8735_s1 + $0x278] sm:$0xff] }
  0x7f   : > { %1532 = vmatmul.mubr.f32.gmra.mrb[24].mxu0 %v6858_v45 }
  0x80   : > { %1536 = vmatprep.mubr.f32.mxu0 %v6576_v32  ;;  %5451 = vmatpush1.bf16.msra.mxu0 %v5450_v29  ;;  %v5456_v32 = vpack.c.bf16 %v1324_v57, %v1323_v17  ;;  %v7032_v29 = vld [vmem:[#allocation2 + $0x4a] sm:$0xff]  ;;  %v1343_v17 = vld [vmem:[%s8735_s1 + $0x280] sm:$0xff] }
  0x81   : > { %5452 = vmatprep.subr.bf16.mxu0 %v8742_v3  ;;  %v1344_v57 = vld [vmem:[%s8735_s1 + $0x288] sm:$0xff] }
  0x83   : > { %1537 = vmatmul.mubr.f32.gmra.mrb[26].mxu0 %v6869_v54 }
  0x84   : > { %1541 = vmatprep.mubr.f32.mxu0 %v6587_v35  ;;  %5454 = vmatpush1.bf16.msra.mxu0 %v5453_v30  ;;  %v5459_v35 = vpack.c.bf16 %v1326_v62, %v1325_v18  ;;  %v7043_v30 = vld [vmem:[#allocation2 + $0x52] sm:$0xff] }
  0x85   : > { %5455 = vmatprep.subr.bf16.mxu0 %v8742_v3  ;;  %v1345_v18 = vld [vmem:[%s8735_s1 + $0x290] sm:$0xff]  ;;  %v1346_v62 = vld [vmem:[%s8735_s1 + $0x298] sm:$0xff] }
  0x87   : > { %1542 = vmatmul.mubr.f32.gmra.mrb[28].mxu0 %v6880_v58 }
  0x88   : > { %1546 = vmatprep.mubr.f32.mxu0 %v6591_v36  ;;  %5457 = vmatpush1.bf16.msra.mxu0 %v5456_v32  ;;  %v6901_v36 = vld [vmem:[#allocation2 + $0xc8] sm:$0xff] }
  0x89   : > { %5458 = vmatprep.subr.bf16.mxu0 %v8742_v3  ;;  %v7054_v32 = vld [vmem:[#allocation2 + $0x62] sm:$0xff] }
  0x8b   : > { %1547 = vmatmul.mubr.f32.gmra.mrb[30].mxu0 %v6891_v63 }
  0x8c   : > { %1551 = vmatprep.mubr.f32.mxu0 %v6595_v38  ;;  %5460 = vmatpush1.bf16.msra.mxu0 %v5459_v35  ;;  %v6909_v38 = vld [vmem:[#allocation2 + $0xe0] sm:$0xff]  ;;  %v7065_v35 = vld [vmem:[#allocation2 + $0x6a] sm:$0xff] }
  0x8d   : > { %5461 = vmatprep.subr.bf16.mxu0 %v8742_v3 }
  0x8f   : > { %1552 = vmatmul.mubr.f32.gmra.mrb[32].mxu0 %v6896_v1 }
  0x90   : > { %1556 = vmatprep.mubr.f32.mxu0 %v6606_v41  ;;  %v6917_v41 = vld [vmem:[#allocation2 + $0xf8] sm:$0xff] }
  0x93   : > { %1557 = vmatmul.mubr.f32.gmra.mrb[34].mxu0 %v6901_v36 }
  0x94   : > { %1561 = vmatprep.mubr.f32.mxu0 %v6610_v42  ;;  %v6921_v42 = vld [vmem:[#allocation2 + $0x108] sm:$0xff] }
  0x97   : > { %1562 = vmatmul.mubr.f32.gmra.mrb[36].mxu0 %v6905_v2 }
  0x98   : > { %1566 = vmatprep.mubr.f32.mxu0 %v6614_v44  ;;  %v6925_v44 = vld [vmem:[#allocation2 + $0x110] sm:$0xff] }
  0x9b   : > { %1567 = vmatmul.mubr.f32.gmra.mrb[38].mxu0 %v6909_v38 }
  0x9c   : > { %1571 = vmatprep.mubr.f32.mxu0 %v6625_v47  ;;  %v6929_v47 = vld [vmem:[#allocation2 + $0x120] sm:$0xff] }
  0x9f   : > { %1572 = vmatmul.mubr.f32.gmra.mrb[40].mxu0 %v6913_v4 }
  0xa0   : > { %1576 = vmatprep.mubr.f32.mxu0 %v6629_v48  ;;  %v6933_v48 = vld [vmem:[#allocation2 + $0x128] sm:$0xff] }
  0xa3   : > { %1577 = vmatmul.mubr.f32.gmra.mrb[42].mxu0 %v6917_v41 }
  0xa4   : > { %1581 = vmatprep.mubr.f32.mxu0 %v6632_v49  ;;  %v6937_v49 = vld [vmem:[#allocation2 + $0x138] sm:$0xff] }
  0xa7   : > { %1582 = vmatmul.mubr.f32.gmra.mrb[44].mxu0 %v6921_v42 }
  0xa8   : > { %1586 = vmatprep.mubr.f32.mxu0 %v6637_v51  ;;  %v6941_v51 = vld [vmem:[#allocation2 + $0x140] sm:$0xff] }
  0xab   : > { %1587 = vmatmul.mubr.f32.gmra.mrb[46].mxu0 %v6925_v44 }
  0xac   : > { %1591 = vmatprep.mubr.f32.mxu0 %v6640_v52  ;;  %v6945_v52 = vld [vmem:[#allocation2 + $0x150] sm:$0xff] }
  0xaf   : > { %1592 = vmatmul.mubr.f32.gmra.mrb[48].mxu0 %v6929_v47 }
  0xb0   : > { %1596 = vmatprep.mubr.f32.mxu0 %v6652_v55  ;;  %v6948_v55 = vld [vmem:[%s6515_s23 + $0xf0] sm:$0xff] }
  0xb1   : > { %396 = vst [vmem:[#allocation2 + $0x181] sm:$0xff] %v6948_v55 }
  0xb3   : > { %1597 = vmatmul.mubr.f32.gmra.mrb[50].mxu0 %v6933_v48 }
  0xb4   : > { %1601 = vmatprep.mubr.f32.mxu0 %v6656_v56  ;;  %v6953_v56 = vld [vmem:[#allocation2 + $0x158] sm:$0xff] }
  0xb7   : > { %1602 = vmatmul.mubr.f32.gmra.mrb[52].mxu0 %v6937_v49 }
  0xb8   : > { %1606 = vmatprep.mubr.f32.mxu0 %v6667_v60  ;;  %v6961_v60 = vld [vmem:[#allocation2 + $0x168] sm:$0xff] }
  0xbb   : > { %1607 = vmatmul.mubr.f32.gmra.mrb[54].mxu0 %v6941_v51 }
  0xbc   : > { %1611 = vmatprep.mubr.f32.mxu0 %v6678_v0  ;;  %v6965_v0 = vld [vmem:[#allocation2 + $0x170] sm:$0xff] }
  0xbf   : > { %1612 = vmatmul.mubr.f32.gmra.mrb[56].mxu0 %v6945_v52 }
  0xc0   : > { %1616 = vmatprep.mubr.f32.mxu0 %v6689_v5  ;;  %v1327_v5 = vld [vmem:[%s8735_s1 + $0x200] sm:$0xff] }
  0xc1   : > { %v5462_v9 = vpack.c.bf16 %v1328_v8, %v1327_v5  ;;  %v1347_v5 = vld [vmem:[%s8735_s1 + $0x2a0] sm:$0xff]  ;;  %v1348_v8 = vld [vmem:[%s8735_s1 + $0x2a8] sm:$0xff] }
  0xc3   : > { %1617 = vmatmul.mubr.f32.gmra.mrb[58].mxu0 %v6953_v56 }
  0xc4   : > { %1621 = vmatprep.mubr.f32.mxu0 %v6700_v10  ;;  %v526_v10 = vld [vmem:[#allocation2 + $0x2] sm:$0xff] }
  0xc7   : > { %1622 = vmatmul.mubr.f32.gmra.mrb[60].mxu0 %v6961_v60 }
  0xc8   : > { %1626 = vmatprep.mubr.f32.mxu0 %v6711_v14  ;;  %v1329_v14 = vld [vmem:[%s8735_s1 + $0x210] sm:$0xff] }
  0xc9   : > { %v5465_v13 = vpack.c.bf16 %v1330_v21, %v1329_v14  ;;  %v1350_v14 = vld [vmem:[%s8735_s1 + $0x2b8] sm:$0xff]  ;;  %v7087_v21 = vld [vmem:[#allocation2 + $0x82] sm:$0xff] }
  0xcb   : > { %1627 = vmatmul.mubr.f32.gmra.mrb[62].mxu0 %v6965_v0 }
  0xcc   : > { %1696 = vmatprep.mubr.f32.mxu0 %v6745_v46  ;;  %v1331_v46 = vld [vmem:[%s8735_s1 + $0x220] sm:$0xff] }
  0xcd   : > { %v5468_v22 = vpack.c.bf16 %v1332_v23, %v1331_v46  ;;  %v7098_v46 = vld [vmem:[#allocation2 + $0x92] sm:$0xff] }
  0xce   : > { %v1353_v23 = vld [vmem:[%s8735_s1 + $0x2d0] sm:$0xff] }
  0xcf   : > { %1697 = vmatmul.mubr.f32.vlgmr.msra.gmra.mrb[0].mxu0 %v526_v10  ;;  %v7076_v10 = vld [vmem:[#allocation2 + $0x7a] sm:$0xff] }
  0xd0   : > { %5463 = vmatpush1.bf16.msra.mxu0 %v5462_v9  ;;  %1701 = vmatprep.mubr.f32.mxu0 %v6756_v6  ;;  %v1333_v6 = vld [vmem:[%s8735_s1 + $0x230] sm:$0xff] }
  0xd1   : > { %5464 = vmatprep.subr.bf16.mxu0 %v8742_v3  ;;  %v1349_v9 = vld [vmem:[%s8735_s1 + $0x2b0] sm:$0xff] }
  0xd3   : > { %1702 = vmatmul.mubr.f32.gmra.mrb[2].mxu0 %v527_v12  ;;  %v1351_v12 = vld [vmem:[%s8735_s1 + $0x2c0] sm:$0xff] }
  0xd4   : > { %1706 = vmatprep.mubr.f32.mxu0 %v6767_v59  ;;  %5466 = vmatpush1.bf16.msra.mxu0 %v5465_v13  ;;  %v5471_v59 = vpack.c.bf16 %v1334_v26, %v1333_v6  ;;  %v1352_v13 = vld [vmem:[%s8735_s1 + $0x2c8] sm:$0xff]  ;;  %v7109_v6 = vld [vmem:[#allocation2 + $0x9a] sm:$0xff] }
  0xd5   : > { %5467 = vmatprep.subr.bf16.mxu0 %v8742_v3  ;;  %v1355_v26 = vld [vmem:[%s8735_s1 + $0x2e0] sm:$0xff] }
  0xd7   : > { %1707 = vmatmul.mubr.f32.gmra.mrb[4].mxu0 %v6990_v16 }
  0xd8   : > { %1711 = vmatprep.mubr.f32.mxu0 %v6781_v19  ;;  %5469 = vmatpush1.bf16.msra.mxu0 %v5468_v22  ;;  %v5474_v19 = vpack.c.bf16 %v1336_v27, %v1335_v31  ;;  %v1354_v22 = vld [vmem:[%s8735_s1 + $0x2d8] sm:$0xff]  ;;  %v7120_v31 = vld [vmem:[#allocation2 + $0xaa] sm:$0xff] }
  0xd9   : > { %5470 = vmatprep.subr.bf16.mxu0 %v8742_v3  ;;  %v1357_v27 = vld [vmem:[%s8735_s1 + $0x2f0] sm:$0xff] }
  0xdb   : > { %1712 = vmatmul.mubr.f32.gmra.mrb[6].mxu0 %v7001_v25 }
  0xdc   : > { %1716 = vmatprep.mubr.f32.mxu0 %v6792_v7  ;;  %5472 = vmatpush1.bf16.msra.mxu0 %v5471_v59  ;;  %v5477_v7 = vpack.c.bf16 %v1338_v37, %v1337_v34  ;;  %v1356_v59 = vld [vmem:[%s8735_s1 + $0x2e8] sm:$0xff]  ;;  %v7131_v34 = vld [vmem:[#allocation2 + $0xb2] sm:$0xff] }
  0xdd   : > { %5473 = vmatprep.subr.bf16.mxu0 %v8742_v3  ;;  %v7136_v37 = vld [vmem:[#allocation2 + $0xc2] sm:$0xff] }
  0xdf   : > { %1717 = vmatmul.mubr.f32.gmra.mrb[8].mxu0 %v6769_v61 }
  0xe0   : > { %1721 = vmatprep.mubr.f32.mxu0 %v6803_v11  ;;  %5475 = vmatpush1.bf16.msra.mxu0 %v5474_v19  ;;  %v5480_v11 = vpack.c.bf16 %v1340_v43, %v1339_v40  ;;  %v1358_v19 = vld [vmem:[%s8735_s1 + $0x2f8] sm:$0xff] }
  0xe1   : > { %5476 = vmatprep.subr.bf16.mxu0 %v8742_v3  ;;  %v7153_v40 = vld [vmem:[#allocation2 + $0xf2] sm:$0xff] }
  0xe3   : > { %1722 = vmatmul.mubr.f32.gmra.mrb[10].mxu0 %v7021_v28 }
  0xe4   : > { %1726 = vmatprep.mubr.f32.mxu0 %v6814_v15  ;;  %5478 = vmatpush1.bf16.msra.mxu0 %v5477_v7  ;;  %v5483_v15 = vpack.c.bf16 %v1342_v53, %v1341_v50  ;;  %v7145_v7 = vld [vmem:[#allocation2 + $0xda] sm:$0xff]  ;;  %v7185_v53 = vld [vmem:[#allocation2 + $0x12a] sm:$0xff] }
  0xe5   : > { %5479 = vmatprep.subr.bf16.mxu0 %v8742_v3 }
  0xe7   : > { %1727 = vmatmul.mubr.f32.gmra.mrb[12].mxu0 %v7032_v29 }
  0xe8   : > { %1731 = vmatprep.mubr.f32.mxu0 %v6825_v24  ;;  %5481 = vmatpush1.bf16.msra.mxu0 %v5480_v11  ;;  %v5486_v24 = vpack.c.bf16 %v1344_v57, %v1343_v17  ;;  %v1394_v11 = vld [vmem:[%s8735_s1 + $0x418] sm:$0xff] }
  0xe9   : > { %5482 = vmatprep.subr.bf16.mxu0 %v8742_v3  ;;  %v7195_v57 = vld [vmem:[#allocation2 + $0x13a] sm:$0xff] }
  0xeb   : > { %1732 = vmatmul.mubr.f32.gmra.mrb[14].mxu0 %v7043_v30 }
  0xec   : > { %1736 = vmatprep.mubr.f32.mxu0 %v6836_v33  ;;  %5484 = vmatpush1.bf16.msra.mxu0 %v5483_v15  ;;  %v5489_v33 = vpack.c.bf16 %v1346_v62, %v1345_v18  ;;  %v1396_v15 = vld [vmem:[%s8735_s1 + $0x428] sm:$0xff] }
  0xed   : > { %5485 = vmatprep.subr.bf16.mxu0 %v8742_v3  ;;  %v7205_v62 = vld [vmem:[#allocation2 + $0x142] sm:$0xff] }
  0xef   : > { %1737 = vmatmul.mubr.f32.gmra.mrb[16].mxu0 %v7054_v32 }
  0xf0   : > { %1741 = vmatprep.mubr.f32.mxu0 %v6847_v39  ;;  %5487 = vmatpush1.bf16.msra.mxu0 %v5486_v24  ;;  %v5492_v39 = vpack.c.bf16 %v1348_v8, %v1347_v5  ;;  %v1398_v24 = vld [vmem:[%s8735_s1 + $0x438] sm:$0xff] }
  0xf1   : > { %5488 = vmatprep.subr.bf16.mxu0 %v8742_v3  ;;  %v7215_v8 = vld [vmem:[#allocation2 + $0x152] sm:$0xff] }
  0xf3   : > { %1742 = vmatmul.mubr.f32.gmra.mrb[18].mxu0 %v7065_v35 }
  0xf4   : > { %1746 = vmatprep.mubr.f32.mxu0 %v6858_v45  ;;  %5490 = vmatpush1.bf16.msra.mxu0 %v5489_v33  ;;  %v5495_v45 = vpack.c.bf16 %v1350_v14, %v1349_v9  ;;  %v1400_v33 = vld [vmem:[%s8735_s1 + $0x448] sm:$0xff]  ;;  %v7225_v14 = vld [vmem:[#allocation2 + $0x15a] sm:$0xff] }
  0xf5   : > { %5491 = vmatprep.subr.bf16.mxu0 %v8742_v3 }
  0xf7   : > { %1747 = vmatmul.mubr.f32.gmra.mrb[20].mxu0 %v7076_v10 }
  0xf8   : > { %1751 = vmatprep.mubr.f32.mxu0 %v6869_v54  ;;  %5493 = vmatpush1.bf16.msra.mxu0 %v5492_v39  ;;  %v5498_v54 = vpack.c.bf16 %v1352_v13, %v1351_v12  ;;  %v1402_v39 = vld [vmem:[%s8735_s1 + $0x458] sm:$0xff]  ;;  %v1404_v12 = vld [vmem:[%s8735_s1 + $0x468] sm:$0xff] }
  0xf9   : > { %5494 = vmatprep.subr.bf16.mxu0 %v8742_v3 }
  0xfb   : > { %1752 = vmatmul.mubr.f32.gmra.mrb[22].mxu0 %v7087_v21 }
  0xfc   : > { %1756 = vmatprep.mubr.f32.mxu0 %v6880_v58  ;;  %5496 = vmatpush1.bf16.msra.mxu0 %v5495_v45  ;;  %v5501_v58 = vpack.c.bf16 %v1354_v22, %v1353_v23  ;;  %v1403_v45 = vld [vmem:[%s8735_s1 + $0x460] sm:$0xff]  ;;  %v1405_v23 = vld [vmem:[%s8735_s1 + $0x470] sm:$0xff]  ;;  %v1406_v22 = vld [vmem:[%s8735_s1 + $0x478] sm:$0xff] }
  0xfd   : > { %5497 = vmatprep.subr.bf16.mxu0 %v8742_v3  ;;  %v5581_v13 = vpack.c.bf16 %v1404_v12, %v1403_v45  ;;  %v6229_v45 = vld [vmem:[#allocation2 + $0x61] sm:$0xff] }
  0xfe   : > { %v1375_v12 = vld [vmem:[%s8735_s1 + $0x380] sm:$0xff] }
  0xff   : > { %1757 = vmatmul.mubr.f32.gmra.mrb[24].mxu0 %v7098_v46 }
 0x100   : > { %1761 = vmatprep.mubr.f32.mxu0 %v6891_v63  ;;  %5499 = vmatpush1.bf16.msra.mxu0 %v5498_v54  ;;  %v5504_v63 = vpack.c.bf16 %v1356_v59, %v1355_v26  ;;  %v7239_v54 = vld [vmem:[#allocation2 + $0x188] sm:$0xff]  ;;  %v7249_v26 = vld [vmem:[#allocation2 + $0x172] sm:$0xff]  ;;  %v1359_v59 = vld [vmem:[%s8735_s1 + $0x300] sm:$0xff] }
 0x101   : > { %5500 = vmatprep.subr.bf16.mxu0 %v8742_v3 }
 0x103   : > { %1762 = vmatmul.mubr.f32.gmra.mrb[26].mxu0 %v7109_v6 }
 0x104   : > { %1766 = vmatprep.mubr.f32.mxu0 %v6896_v1  ;;  %5502 = vmatpush1.bf16.msra.mxu0 %v5501_v58  ;;  %v5507_v1 = vpack.c.bf16 %v1358_v19, %v1357_v27  ;;  %v5585_v58 = vpack.c.bf16 %v1406_v22, %v1405_v23  ;;  %v1361_v19 = vld [vmem:[%s8735_s1 + $0x310] sm:$0xff] }
 0x105   : > { %5503 = vmatprep.subr.bf16.mxu0 %v8742_v3  ;;  %v6230_v23 = vld [vmem:[#allocation2 + $0x69] sm:$0xff] }
 0x106   : > { %v1377_v22 = vld [vmem:[%s8735_s1 + $0x390] sm:$0xff] }
 0x107   : > { %1767 = vmatmul.mubr.f32.gmra.mrb[28].mxu0 %v7120_v31 }
 0x108   : > { %1771 = vmatprep.mubr.f32.mxu0 %v6901_v36  ;;  %5505 = vmatpush1.bf16.msra.mxu0 %v5504_v63  ;;  %v7141_v36 = vld [vmem:[#allocation2 + $0xca] sm:$0xff] }
 0x109   : > { %5506 = vmatprep.subr.bf16.mxu0 %v8742_v3  ;;  %v1360_v63 = vld [vmem:[%s8735_s1 + $0x308] sm:$0xff] }
 0x10a   : > { %v5510_v27 = vpack.c.bf16 %v1360_v63, %v1359_v59  ;;  %v6231_v59 = vld [vmem:[#allocation2 + $0x79] sm:$0xff] }
 0x10b   : > { %1772 = vmatmul.mubr.f32.gmra.mrb[30].mxu0 %v7131_v34  ;;  %v1379_v63 = vld [vmem:[%s8735_s1 + $0x3a0] sm:$0xff] }
 0x10c   : > { %1776 = vmatprep.mubr.f32.mxu0 %v6905_v2  ;;  %5508 = vmatpush1.bf16.msra.mxu0 %v5507_v1  ;;  %v7149_v2 = vld [vmem:[#allocation2 + $0xe2] sm:$0xff]  ;;  %v1362_v1 = vld [vmem:[%s8735_s1 + $0x318] sm:$0xff] }
 0x10d   : > { %5509 = vmatprep.subr.bf16.mxu0 %v8742_v3 }
 0x10f   : > { %1777 = vmatmul.mubr.f32.gmra.mrb[32].mxu0 %v7136_v37 }
 0x110   : > { %1781 = vmatprep.mubr.f32.mxu0 %v6909_v38  ;;  %v7157_v38 = vld [vmem:[#allocation2 + $0xfa] sm:$0xff] }
 0x113   : > { %1782 = vmatmul.mubr.f32.gmra.mrb[34].mxu0 %v7141_v36 }
 0x114   : > { %1786 = vmatprep.mubr.f32.mxu0 %v6913_v4  ;;  %v7161_v4 = vld [vmem:[#allocation2 + $0x10a] sm:$0xff] }
 0x117   : > { %1787 = vmatmul.mubr.f32.gmra.mrb[36].mxu0 %v7145_v7 }
 0x118   : > { %1791 = vmatprep.mubr.f32.mxu0 %v6917_v41  ;;  %v7165_v41 = vld [vmem:[#allocation2 + $0x112] sm:$0xff] }
 0x11b   : > { %1792 = vmatmul.mubr.f32.gmra.mrb[38].mxu0 %v7149_v2 }
 0x11c   : > { %1796 = vmatprep.mubr.f32.mxu0 %v6921_v42  ;;  %v1391_v42 = vld [vmem:[%s8735_s1 + $0x400] sm:$0xff] }
 0x11f   : > { %1797 = vmatmul.mubr.f32.gmra.mrb[40].mxu0 %v7153_v40 }
 0x120   : > { %1801 = vmatprep.mubr.f32.mxu0 %v6925_v44  ;;  %v1392_v44 = vld [vmem:[%s8735_s1 + $0x408] sm:$0xff] }
 0x121   : > { %v5557_v43 = vpack.c.bf16 %v1392_v44, %v1391_v42  ;;  %v6223_v42 = vld [vmem:[#allocation2 + $0x19] sm:$0xff]  ;;  %v5513_v44 = vpack.c.bf16 %v1362_v1, %v1361_v19  ;;  %v6232_v19 = vld [vmem:[#allocation2 + $0x81] sm:$0xff]  ;;  %v1381_v1 = vld [vmem:[%s8735_s1 + $0x3b0] sm:$0xff] }
 0x123   : > { %1802 = vmatmul.mubr.f32.gmra.mrb[42].mxu0 %v7157_v38  ;;  %5558 = vmatprep.subr.bf16.mxu1 %v5557_v43 }
 0x124   : > { %1806 = vmatprep.mubr.f32.mxu0 %v6929_v47  ;;  %v7175_v47 = vld [vmem:[#allocation2 + $0x122] sm:$0xff]  ;;  %5560 = vmatpush3.bf16.msra.mxu1 %v5557_v43 }
 0x125   : > { %v1364_v43 = vld [vmem:[%s8735_s1 + $0x328] sm:$0xff] }
 0x127   : > { %1807 = vmatmul.mubr.f32.gmra.mrb[44].mxu0 %v7161_v4 }
 0x128   : > { %1811 = vmatprep.mubr.f32.mxu0 %v6933_v48  ;;  %v1393_v48 = vld [vmem:[%s8735_s1 + $0x410] sm:$0xff] }
 0x129   : > { %v5561_v50 = vpack.c.bf16 %v1394_v11, %v1393_v48  ;;  %v6224_v48 = vld [vmem:[#allocation2 + $0x21] sm:$0xff]  ;;  %v1365_v11 = vld [vmem:[%s8735_s1 + $0x330] sm:$0xff] }
 0x12b   : > { %1812 = vmatmul.mubr.f32.gmra.mrb[46].mxu0 %v7165_v41  ;;  %5562 = vmatprep.subr.bf16.mxu1 %v5561_v50 }
 0x12c   : > { %1816 = vmatprep.mubr.f32.mxu0 %v6937_v49  ;;  %5564 = vmatpush3.bf16.msra.mxu1 %v5561_v50  ;;  %v1395_v49 = vld [vmem:[%s8735_s1 + $0x420] sm:$0xff]  ;;  %v1366_v50 = vld [vmem:[%s8735_s1 + $0x338] sm:$0xff] }
 0x12d   : > { %v5565_v17 = vpack.c.bf16 %v1396_v15, %v1395_v49  ;;  %v6225_v49 = vld [vmem:[#allocation2 + $0x31] sm:$0xff]  ;;  %v1367_v15 = vld [vmem:[%s8735_s1 + $0x340] sm:$0xff] }
 0x12f   : > { %1817 = vmatmul.mubr.f32.gmra.mrb[48].mxu0 %v7175_v47  ;;  %5566 = vmatprep.subr.bf16.mxu1 %v5565_v17 }
 0x130   : > { %1821 = vmatprep.mubr.f32.mxu0 %v6941_v51  ;;  %5568 = vmatpush3.bf16.msra.mxu1 %v5565_v17  ;;  %v1397_v51 = vld [vmem:[%s8735_s1 + $0x430] sm:$0xff]  ;;  %v1368_v17 = vld [vmem:[%s8735_s1 + $0x348] sm:$0xff] }
 0x131   : > { %v5569_v18 = vpack.c.bf16 %v1398_v24, %v1397_v51  ;;  %v6226_v51 = vld [vmem:[#allocation2 + $0x39] sm:$0xff]  ;;  %v1369_v24 = vld [vmem:[%s8735_s1 + $0x350] sm:$0xff] }
 0x133   : > { %1822 = vmatmul.mubr.f32.gmra.mrb[50].mxu0 %v7185_v53  ;;  %5570 = vmatprep.subr.bf16.mxu1 %v5569_v18 }
 0x134   : > { %1826 = vmatprep.mubr.f32.mxu0 %v6945_v52  ;;  %5572 = vmatpush3.bf16.msra.mxu1 %v5569_v18  ;;  %v1399_v52 = vld [vmem:[%s8735_s1 + $0x440] sm:$0xff]  ;;  %v1370_v18 = vld [vmem:[%s8735_s1 + $0x358] sm:$0xff] }
 0x135   : > { %v5573_v5 = vpack.c.bf16 %v1400_v33, %v1399_v52  ;;  %v6227_v52 = vld [vmem:[#allocation2 + $0x49] sm:$0xff]  ;;  %v1371_v33 = vld [vmem:[%s8735_s1 + $0x360] sm:$0xff] }
 0x137   : > { %1827 = vmatmul.mubr.f32.gmra.mrb[52].mxu0 %v7195_v57  ;;  %5574 = vmatprep.subr.bf16.mxu1 %v5573_v5 }
 0x138   : > { %1831 = vmatprep.mubr.f32.mxu0 %v6953_v56  ;;  %5576 = vmatpush3.bf16.msra.mxu1 %v5573_v5  ;;  %v1401_v56 = vld [vmem:[%s8735_s1 + $0x450] sm:$0xff]  ;;  %v1372_v5 = vld [vmem:[%s8735_s1 + $0x368] sm:$0xff] }
 0x139   : > { %v5577_v9 = vpack.c.bf16 %v1402_v39, %v1401_v56  ;;  %v6228_v56 = vld [vmem:[#allocation2 + $0x51] sm:$0xff] }
 0x13a   : > { %v1373_v39 = vld [vmem:[%s8735_s1 + $0x370] sm:$0xff] }
 0x13b   : > { %1832 = vmatmul.mubr.f32.gmra.mrb[54].mxu0 %v7205_v62  ;;  %5578 = vmatprep.subr.bf16.mxu1 %v5577_v9 }
 0x13c   : > { %1836 = vmatprep.mubr.f32.mxu0 %v6961_v60  ;;  %v7227_v60 = vld [vmem:[#allocation2 + $0x180] sm:$0xff]  ;;  %5580 = vmatpush3.bf16.msra.mxu1 %v5577_v9  ;;  %v1374_v9 = vld [vmem:[%s8735_s1 + $0x378] sm:$0xff] }
 0x13d   : > { %5582 = vmatprep.subr.bf16.mxu1 %v5581_v13 }
 0x13f   : > { %1837 = vmatmul.mubr.f32.gmra.mrb[56].mxu0 %v7215_v8 }
 0x140   : > { %1841 = vmatprep.mubr.f32.mxu0 %v6965_v0  ;;  %v7237_v0 = vld [vmem:[#allocation2 + $0x16a] sm:$0xff]  ;;  %5584 = vmatpush3.bf16.msra.mxu1 %v5581_v13 }
 0x141   : > { %5586 = vmatprep.subr.bf16.mxu1 %v5585_v58  ;;  %v1376_v13 = vld [vmem:[%s8735_s1 + $0x388] sm:$0xff] }
 0x143   : > { %1842 = vmatmul.mubr.f32.gmra.mrb[58].mxu0 %v7225_v14 }
 0x144   : > { %1846 = vmatprep.mubr.f32.mxu0 %v7227_v60  ;;  %5588 = vmatpush3.bf16.msra.mxu1 %v5585_v58  ;;  %v1378_v58 = vld [vmem:[%s8735_s1 + $0x398] sm:$0xff] }
 0x145   : > { %5589 = vmatprep.subr.bf16.mxu1 %v8742_v3 }
 0x147   : > { %1847 = vmatmul.mubr.f32.gmra.mrb[60].mxu0 %v7237_v0  ;;  %5238 = vmatmul.mubr.f32.vlgmr.msra.gmra.mrb[0].mxu1 %v7021_v28 }
 0x148   : > { %1851 = vmatprep.mubr.f32.mxu0 %v7239_v54  ;;  %5240 = vmatprep.mubr.f32.mxu1 %v7032_v29 }
 0x14b   : > { %1852 = vmatmul.mubr.f32.gmra.mrb[62].mxu0 %v7249_v26  ;;  %5241 = vmatmul.mubr.f32.gmra.mrb[2].mxu1 %v7043_v30 }
 0x14c   : > { %1921 = vmatprep.mubr.f32.mxu0 %v6990_v16  ;;  %v1363_v16 = vld [vmem:[%s8735_s1 + $0x320] sm:$0xff]  ;;  %5243 = vmatprep.mubr.f32.mxu1 %v7054_v32 }
 0x14f   : > { %1922 = vmatmul.mubr.f32.vlgmr.msra.gmra.mrb[0].mxu0 %v6223_v42  ;;  %5244 = vmatmul.mubr.f32.gmra.mrb[4].mxu1 %v7065_v35  ;;  %v1382_v42 = vld [vmem:[%s8735_s1 + $0x3b8] sm:$0xff] }
 0x150   : > { %5511 = vmatpush1.bf16.msra.mxu0 %v5510_v27  ;;  %1926 = vmatprep.mubr.f32.mxu0 %v7001_v25  ;;  %v5516_v25 = vpack.c.bf16 %v1364_v43, %v1363_v16  ;;  %v1380_v27 = vld [vmem:[%s8735_s1 + $0x3a8] sm:$0xff]  ;;  %v1383_v16 = vld [vmem:[%s8735_s1 + $0x3c0] sm:$0xff] }
 0x151   : > { %5512 = vmatprep.subr.bf16.mxu0 %v8742_v3  ;;  %5246 = vmatprep.mubr.f32.mxu1 %v7076_v10  ;;  %v1384_v43 = vld [vmem:[%s8735_s1 + $0x3c8] sm:$0xff] }
 0x153   : > { %1927 = vmatmul.mubr.f32.gmra.mrb[2].mxu0 %v6224_v48  ;;  %5247 = vmatmul.mubr.f32.gmra.mrb[6].mxu1 %v7087_v21  ;;  %v6234_v48 = vld [vmem:[#allocation2 + $0x99] sm:$0xff] }
 0x154   : > { %1931 = vmatprep.mubr.f32.mxu0 %v6769_v61  ;;  %5514 = vmatpush1.bf16.msra.mxu0 %v5513_v44  ;;  %v5519_v61 = vpack.c.bf16 %v1366_v50, %v1365_v11  ;;  %v6233_v44 = vld [vmem:[#allocation2 + $0x91] sm:$0xff]  ;;  %v6235_v50 = vld [vmem:[#allocation2 + $0xa9] sm:$0xff] }
 0x155   : > { %5515 = vmatprep.subr.bf16.mxu0 %v8742_v3  ;;  %5249 = vmatprep.mubr.f32.mxu1 %v7098_v46  ;;  %v1386_v11 = vld [vmem:[%s8735_s1 + $0x3d8] sm:$0xff] }
 0x157   : > { %1932 = vmatmul.mubr.f32.gmra.mrb[4].mxu0 %v6225_v49  ;;  %5250 = vmatmul.mubr.f32.gmra.mrb[8].mxu1 %v7109_v6  ;;  %v1387_v49 = vld [vmem:[%s8735_s1 + $0x3e0] sm:$0xff] }
 0x158   : > { %1936 = vmatprep.mubr.f32.mxu0 %v7021_v28  ;;  %5517 = vmatpush1.bf16.msra.mxu0 %v5516_v25  ;;  %v5522_v28 = vpack.c.bf16 %v1368_v17, %v1367_v15  ;;  %v1385_v25 = vld [vmem:[%s8735_s1 + $0x3d0] sm:$0xff]  ;;  %v7396_v15 = vld [vmem:[#allocation2 + $0x182] sm:$0xff] }
 0x159   : > { %5518 = vmatprep.subr.bf16.mxu0 %v8742_v3  ;;  %5252 = vmatprep.mubr.f32.mxu1 %v7120_v31  ;;  %v6236_v17 = vld [vmem:[#allocation2 + $0xb1] sm:$0xff] }
 0x15b   : > { %1937 = vmatmul.mubr.f32.gmra.mrb[6].mxu0 %v6226_v51  ;;  %5253 = vmatmul.mubr.f32.gmra.mrb[10].mxu1 %v7131_v34  ;;  %v749_v51 = vld [vmem:[#allocation2 + $0x18a] sm:$0xff] }
 0x15c   : > { %1941 = vmatprep.mubr.f32.mxu0 %v7032_v29  ;;  %5520 = vmatpush1.bf16.msra.mxu0 %v5519_v61  ;;  %v5525_v29 = vpack.c.bf16 %v1370_v18, %v1369_v24  ;;  %v1388_v61 = vld [vmem:[%s8735_s1 + $0x3e8] sm:$0xff]  ;;  %v1390_v24 = vld [vmem:[%s8735_s1 + $0x3f8] sm:$0xff] }
 0x15d   : > { %5521 = vmatprep.subr.bf16.mxu0 %v8742_v3  ;;  %5255 = vmatprep.mubr.f32.mxu1 %v7136_v37  ;;  %v6237_v18 = vld [vmem:[#allocation2 + $0xc1] sm:$0xff] }
 0x15f   : > { %1942 = vmatmul.mubr.f32.gmra.mrb[8].mxu0 %v6227_v52  ;;  %5256 = vmatmul.mubr.f32.gmra.mrb[12].mxu1 %v7141_v36  ;;  %v6238_v52 = vld [vmem:[#allocation2 + $0xc9] sm:$0xff] }
 0x160   : > { %1946 = vmatprep.mubr.f32.mxu0 %v7043_v30  ;;  %5523 = vmatpush1.bf16.msra.mxu0 %v5522_v28  ;;  %v5528_v30 = vpack.c.bf16 %v1372_v5, %v1371_v33  ;;  %v1389_v28 = vld [vmem:[%s8735_s1 + $0x3f0] sm:$0xff]  ;;  %v6240_v33 = vld [vmem:[#allocation2 + $0xe1] sm:$0xff] }
 0x161   : > { %5524 = vmatprep.subr.bf16.mxu0 %v8742_v3  ;;  %5258 = vmatprep.mubr.f32.mxu1 %v7145_v7  ;;  %v6241_v5 = vld [vmem:[#allocation2 + $0xf1] sm:$0xff] }
 0x163   : > { %1947 = vmatmul.mubr.f32.gmra.mrb[10].mxu0 %v6228_v56  ;;  %5259 = vmatmul.mubr.f32.gmra.mrb[14].mxu1 %v7149_v2  ;;  %v6243_v56 = vld [vmem:[#allocation2 + $0x109] sm:$0xff] }
 0x164   : > { %1951 = vmatprep.mubr.f32.mxu0 %v7054_v32  ;;  %5526 = vmatpush1.bf16.msra.mxu0 %v5525_v29  ;;  %v5531_v32 = vpack.c.bf16 %v1374_v9, %v1373_v39  ;;  %v6239_v29 = vld [vmem:[#allocation2 + $0xd9] sm:$0xff]  ;;  %v783_v39 = vld [vmem:[#allocation2 + $0x30] sm:$0xff] }
 0x165   : > { %5527 = vmatprep.subr.bf16.mxu0 %v8742_v3  ;;  %5261 = vmatprep.mubr.f32.mxu1 %v7153_v40 }
 0x167   : > { %1952 = vmatmul.mubr.f32.gmra.mrb[12].mxu0 %v6229_v45  ;;  %5262 = vmatmul.mubr.f32.gmra.mrb[16].mxu1 %v7157_v38 }
 0x168   : > { %1956 = vmatprep.mubr.f32.mxu0 %v7065_v35  ;;  %5529 = vmatpush1.bf16.msra.mxu0 %v5528_v30  ;;  %v5534_v35 = vpack.c.bf16 %v1376_v13, %v1375_v12  ;;  %v941_v30 = vld [vmem:[#allocation2 + $0x19a] sm:$0xff]  ;;  %v3599_v12 = vld [vmem:[%s8738_s4 + $0x28] sm:$0xff] }
 0x169   : > { %5530 = vmatprep.subr.bf16.mxu0 %v8742_v3  ;;  %5264 = vmatprep.mubr.f32.mxu1 %v7161_v4  ;;  %v784_v13 = vld [vmem:[#allocation2 + $0x38] sm:$0xff] }
 0x16b   : > { %1957 = vmatmul.mubr.f32.gmra.mrb[14].mxu0 %v6230_v23  ;;  %5265 = vmatmul.mubr.f32.gmra.mrb[18].mxu1 %v7165_v41  ;;  %v849_v23 = vld [vmem:[#allocation2 + $0x49] sm:$0xff] }
 0x16c   : > { %1961 = vmatprep.mubr.f32.mxu0 %v7076_v10  ;;  %5532 = vmatpush1.bf16.msra.mxu0 %v5531_v32  ;;  %v5537_v10 = vpack.c.bf16 %v1378_v58, %v1377_v22  ;;  %v3598_v32 = vld [vmem:[%s8738_s4 + $0x20] sm:$0xff]  ;;  %v3600_v22 = vld [vmem:[%s8738_s4 + $0x30] sm:$0xff]  ;;  %v3601_v58 = vld [vmem:[%s8738_s4 + $0x38] sm:$0xff] }
 0x16d   : > { %5533 = vmatprep.subr.bf16.mxu0 %v8742_v3  ;;  %5267 = vmatprep.mubr.f32.mxu1 %v7175_v47 }
 0x16f   : > { %1962 = vmatmul.mubr.f32.gmra.mrb[16].mxu0 %v6231_v59  ;;  %5268 = vmatmul.mubr.f32.gmra.mrb[20].mxu1 %v7185_v53  ;;  %v3722_v59 = vld [vmem:[%s8738_s4 + $0x400] sm:$0xff] }
 0x170   : > { %1966 = vmatprep.mubr.f32.mxu0 %v7087_v21  ;;  %5535 = vmatpush1.bf16.msra.mxu0 %v5534_v35  ;;  %v5540_v21 = vpack.c.bf16 %v1380_v27, %v1379_v63  ;;  %v5596_v35 = vpack.c.bf16 %v3599_v12, %v3598_v32  ;;  %v3723_v63 = vld [vmem:[%s8738_s4 + $0x408] sm:$0xff]  ;;  %v850_v27 = vld [vmem:[#allocation2 + $0x51] sm:$0xff] }
 0x171   : > { %5536 = vmatprep.subr.bf16.mxu0 %v8742_v3  ;;  %5270 = vmatprep.mubr.f32.mxu1 %v7195_v57  ;;  %v860_v32 = vld [vmem:[#allocation2 + $0xc9] sm:$0xff] }
 0x173   : > { %1967 = vmatmul.mubr.f32.gmra.mrb[18].mxu0 %v6232_v19  ;;  %5271 = vmatmul.mubr.f32.gmra.mrb[22].mxu1 %v7205_v62  ;;  %v7459_v19 = vpack.c.bf16 %v3723_v63, %v3722_v59  ;;  %v863_v59 = vld [vmem:[#allocation2 + $0xf1] sm:$0xff]  ;;  %v864_v63 = vld [vmem:[#allocation2 + $0xf9] sm:$0xff] }
 0x174   : > { %1971 = vmatprep.mubr.f32.mxu0 %v7098_v46  ;;  %5538 = vmatpush1.bf16.msra.mxu0 %v5537_v10  ;;  %v5543_v46 = vpack.c.bf16 %v1382_v42, %v1381_v1  ;;  %v785_v10 = vld [vmem:[#allocation2 + $0x48] sm:$0xff]  ;;  %v3602_v1 = vld [vmem:[%s8738_s4 + $0x40] sm:$0xff] }
 0x175   : > { %5539 = vmatprep.subr.bf16.mxu0 %v8742_v3  ;;  %5273 = vmatprep.mubr.f32.mxu1 %v7215_v8  ;;  %8771 = vst [vmem:[#allocation5_spill] sm:$0xff] %v7459_v19  ;;  %v3603_v42 = vld [vmem:[%s8738_s4 + $0x48] sm:$0xff] }
 0x177   : > { %1972 = vmatmul.mubr.f32.gmra.mrb[20].mxu0 %v6233_v44  ;;  %5274 = vmatmul.mubr.f32.gmra.mrb[24].mxu1 %v7225_v14  ;;  %v786_v44 = vld [vmem:[#allocation2 + $0x50] sm:$0xff] }
 0x178   : > { %1976 = vmatprep.mubr.f32.mxu0 %v7109_v6  ;;  %5541 = vmatpush1.bf16.msra.mxu0 %v5540_v21  ;;  %v5546_v6 = vpack.c.bf16 %v1384_v43, %v1383_v16  ;;  %v5599_v21 = vpack.c.bf16 %v3601_v58, %v3600_v22  ;;  %v5602_v16 = vpack.c.bf16 %v3603_v42, %v3602_v1  ;;  %v3604_v43 = vld [vmem:[%s8738_s4 + $0x50] sm:$0xff]  ;;  %v862_v22 = vld [vmem:[#allocation2 + $0xe1] sm:$0xff] }
 0x179   : > { %5542 = vmatprep.subr.bf16.mxu0 %v8742_v3  ;;  %5276 = vmatprep.mubr.f32.mxu1 %v7237_v0  ;;  %v798_v58 = vld [vmem:[#allocation2 + $0xe0] sm:$0xff]  ;;  %v801_v1 = vld [vmem:[#allocation2 + $0x108] sm:$0xff]  ;;  %v866_v42 = vld [vmem:[#allocation2 + $0x111] sm:$0xff] }
 0x17b   : > { %1977 = vmatmul.mubr.f32.gmra.mrb[22].mxu0 %v6234_v48  ;;  %5277 = vmatmul.mubr.f32.gmra.mrb[26].mxu1 %v7249_v26  ;;  %v3605_v48 = vld [vmem:[%s8738_s4 + $0x58] sm:$0xff] }
 0x17c   : > { %1981 = vmatprep.mubr.f32.mxu0 %v7120_v31  ;;  %5544 = vmatpush1.bf16.msra.mxu0 %v5543_v46  ;;  %v5549_v31 = vpack.c.bf16 %v1386_v11, %v1385_v25  ;;  %v851_v46 = vld [vmem:[#allocation2 + $0x61] sm:$0xff]  ;;  %v852_v25 = vld [vmem:[#allocation2 + $0x69] sm:$0xff]  ;;  %v5605_v11 = vpack.c.bf16 %v3605_v48, %v3604_v43 }
 0x17d   : > { %5545 = vmatprep.subr.bf16.mxu0 %v8742_v3  ;;  %5279 = vmatprep.mubr.f32.mxu1 %v7396_v15  ;;  %v3622_v43 = vld [vmem:[%s8738_s4 + $0xe0] sm:$0xff]  ;;  %v3623_v48 = vld [vmem:[%s8738_s4 + $0xe8] sm:$0xff] }
 0x17f   : > { %1982 = vmatmul.mubr.f32.gmra.mrb[24].mxu0 %v6235_v50  ;;  %5280 = vmatmul.mubr.f32.gmra.mrb[28].mxu1 %v749_v51  ;;  %v3606_v50 = vld [vmem:[%s8738_s4 + $0x60] sm:$0xff] }
 0x180   : > { %1986 = vmatprep.mubr.f32.mxu0 %v7131_v34  ;;  %5547 = vmatpush1.bf16.msra.mxu0 %v5546_v6  ;;  %v5552_v34 = vpack.c.bf16 %v1388_v61, %v1387_v49  ;;  %v787_v6 = vld [vmem:[#allocation2 + $0x60] sm:$0xff]  ;;  %v788_v49 = vld [vmem:[#allocation2 + $0x68] sm:$0xff] }
 0x181   : > { %5548 = vmatprep.subr.bf16.mxu0 %v8742_v3  ;;  %5282 = vmatprep.mubr.f32.mxu1 %v941_v30  ;;  %v853_v61 = vld [vmem:[#allocation2 + $0x79] sm:$0xff]  ;;  %v793_v30 = vld [vmem:[#allocation2 + $0xa8] sm:$0xff] }
 0x183   : > { %1987 = vmatmul.mubr.f32.gmra.mrb[26].mxu0 %v6236_v17  ;;  %v3608_v17 = vld [vmem:[%s8738_s4 + $0x70] sm:$0xff] }
 0x184   : > { %1991 = vmatprep.mubr.f32.mxu0 %v7136_v37  ;;  %5550 = vmatpush1.bf16.msra.mxu0 %v5549_v31  ;;  %v5555_v37 = vpack.c.bf16 %v1390_v24, %v1389_v28  ;;  %v3607_v31 = vld [vmem:[%s8738_s4 + $0x68] sm:$0xff] }
 0x185   : > { %5551 = vmatprep.subr.bf16.mxu0 %v8742_v3  ;;  %v854_v28 = vld [vmem:[#allocation2 + $0x81] sm:$0xff] }
 0x187   : > { %1992 = vmatmul.mubr.f32.gmra.mrb[28].mxu0 %v6237_v18  ;;  %v3610_v18 = vld [vmem:[%s8738_s4 + $0x80] sm:$0xff] }
 0x188   : > { %1996 = vmatprep.mubr.f32.mxu0 %v7141_v36  ;;  %5553 = vmatpush1.bf16.msra.mxu0 %v5552_v34  ;;  %v6242_v36 = vld [vmem:[#allocation2 + $0xf9] sm:$0xff] }
 0x189   : > { %5554 = vmatprep.subr.bf16.mxu0 %v8742_v3  ;;  %v3609_v34 = vld [vmem:[%s8738_s4 + $0x78] sm:$0xff] }
 0x18a   : > { %v5611_v24 = vpack.c.bf16 %v3609_v34, %v3608_v17  ;;  %v3724_v17 = vld [vmem:[%s8738_s4 + $0x410] sm:$0xff]  ;;  %v3725_v34 = vld [vmem:[%s8738_s4 + $0x418] sm:$0xff] }
 0x18b   : > { %1997 = vmatmul.mubr.f32.gmra.mrb[30].mxu0 %v6238_v52  ;;  %v790_v52 = vld [vmem:[#allocation2 + $0x80] sm:$0xff] }
 0x18c   : > { %2001 = vmatprep.mubr.f32.mxu0 %v7145_v7  ;;  %5556 = vmatpush1.bf16.msra.mxu0 %v5555_v37  ;;  %v6244_v7 = vld [vmem:[#allocation2 + $0x111] sm:$0xff]  ;;  %v3611_v37 = vld [vmem:[%s8738_s4 + $0x88] sm:$0xff] }
 0x18d   : > { %5782 = vmatprep.subr.bf16.mxu0 %v7459_v19 }
 0x18f   : > { %2002 = vmatmul.mubr.f32.gmra.mrb[32].mxu0 %v6239_v29  ;;  %v855_v29 = vld [vmem:[#allocation2 + $0x91] sm:$0xff] }
 0x190   : > { %2006 = vmatprep.mubr.f32.mxu0 %v7149_v2  ;;  %v6245_v2 = vld [vmem:[#allocation2 + $0x121] sm:$0xff] }
 0x193   : > { %2007 = vmatmul.mubr.f32.gmra.mrb[34].mxu0 %v6240_v33  ;;  %v5614_v33 = vpack.c.bf16 %v3611_v37, %v3610_v18  ;;  %v2793_v18 = vld [vmem:[#allocation3 + $0x1] sm:$0xff]  ;;  %v870_v37 = vld [vmem:[#allocation2 + $0x141] sm:$0xff] }
 0x194   : > { %2011 = vmatprep.mubr.f32.mxu0 %v7153_v40  ;;  %v6246_v40 = vld [vmem:[#allocation2 + $0x129] sm:$0xff] }
 0x197   : > { %2012 = vmatmul.mubr.f32.gmra.mrb[36].mxu0 %v6241_v5  ;;  %v3612_v5 = vld [vmem:[%s8738_s4 + $0x90] sm:$0xff] }
 0x198   : > { %2016 = vmatprep.mubr.f32.mxu0 %v7157_v38  ;;  %v6247_v38 = vld [vmem:[#allocation2 + $0x139] sm:$0xff] }
 0x19b   : > { %2017 = vmatmul.mubr.f32.gmra.mrb[38].mxu0 %v6242_v36  ;;  %v3613_v36 = vld [vmem:[%s8738_s4 + $0x98] sm:$0xff] }
 0x19c   : > { %2021 = vmatprep.mubr.f32.mxu0 %v7161_v4  ;;  %v6248_v4 = vld [vmem:[#allocation2 + $0x141] sm:$0xff] }
 0x19f   : > { %2022 = vmatmul.mubr.f32.gmra.mrb[40].mxu0 %v6243_v56  ;;  %v791_v56 = vld [vmem:[#allocation2 + $0x90] sm:$0xff] }
 0x1a0   : > { %2026 = vmatprep.mubr.f32.mxu0 %v7165_v41  ;;  %v6249_v41 = vld [vmem:[#allocation2 + $0x151] sm:$0xff] }
 0x1a3   : > { %2027 = vmatmul.mubr.f32.gmra.mrb[42].mxu0 %v6244_v7  ;;  %v856_v7 = vld [vmem:[#allocation2 + $0x99] sm:$0xff] }
 0x1a4   : > { %2031 = vmatprep.mubr.f32.mxu0 %v7175_v47  ;;  %v6250_v47 = vld [vmem:[#allocation2 + $0x159] sm:$0xff] }
 0x1a7   : > { %2032 = vmatmul.mubr.f32.gmra.mrb[44].mxu0 %v6245_v2  ;;  %v5617_v2 = vpack.c.bf16 %v3613_v36, %v3612_v5  ;;  %v7570_v5 = vld [vmem:[#allocation2] sm:$0xff] }
 0x1a8   : > { %2036 = vmatprep.mubr.f32.mxu0 %v7185_v53  ;;  %v6251_v53 = vld [vmem:[#allocation2 + $0x169] sm:$0xff]  ;;  %v806_v36 = vld [vmem:[#allocation2 + $0x140] sm:$0xff] }
 0x1ab   : > { %2037 = vmatmul.mubr.f32.gmra.mrb[46].mxu0 %v6246_v40  ;;  %v3614_v40 = vld [vmem:[%s8738_s4 + $0xa0] sm:$0xff] }
 0x1ac   : > { %2041 = vmatprep.mubr.f32.mxu0 %v7195_v57  ;;  %v6252_v57 = vld [vmem:[#allocation2 + $0x171] sm:$0xff] }
 0x1af   : > { %2042 = vmatmul.mubr.f32.gmra.mrb[48].mxu0 %v6247_v38  ;;  %v3615_v38 = vld [vmem:[%s8738_s4 + $0xa8] sm:$0xff] }
 0x1b0   : > { %2046 = vmatprep.mubr.f32.mxu0 %v7205_v62  ;;  %v942_v62 = vld [vmem:[#allocation2 + $0x1a2] sm:$0xff] }
 0x1b1   : > { %5283 = vmatmul.mubr.f32.gmra.mrb[30].mxu1 %v942_v62  ;;  %v858_v62 = vld [vmem:[#allocation2 + $0xb1] sm:$0xff] }
 0x1b2   : > { %3802 = vmatprep.mubr.f32.mxu1 %v2793_v18  ;;  %v3634_v18 = vld [vmem:[%s8738_s4 + $0x140] sm:$0xff] }
 0x1b3   : > { %2047 = vmatmul.mubr.f32.gmra.mrb[50].mxu0 %v6248_v4  ;;  %v792_v4 = vld [vmem:[#allocation2 + $0x98] sm:$0xff] }
 0x1b4   : > { %2051 = vmatprep.mubr.f32.mxu0 %v7215_v8  ;;  %v847_v8 = vld [vmem:[#allocation2 + $0x31] sm:$0xff] }
 0x1b7   : > { %2052 = vmatmul.mubr.f32.gmra.mrb[52].mxu0 %v6249_v41  ;;  %v857_v41 = vld [vmem:[#allocation2 + $0xa9] sm:$0xff] }
 0x1b8   : > { %2056 = vmatprep.mubr.f32.mxu0 %v7225_v14  ;;  %v3594_v14 = vld [vmem:[%s8738_s4] sm:$0xff] }
 0x1bb   : > { %2057 = vmatmul.mubr.f32.gmra.mrb[54].mxu0 %v6250_v47  ;;  %v5620_v47 = vpack.c.bf16 %v3615_v38, %v3614_v40  ;;  %v3728_v38 = vld [vmem:[%s8738_s4 + $0x430] sm:$0xff] }
 0x1bc   : > { %2061 = vmatprep.mubr.f32.mxu0 %v7237_v0  ;;  %v3595_v0 = vld [vmem:[%s8738_s4 + $0x8] sm:$0xff] }
 0x1bd   : > { %v5590_v9 = vpack.c.bf16 %v3595_v0, %v3594_v14  ;;  %v3618_v14 = vld [vmem:[%s8738_s4 + $0xc0] sm:$0xff]  ;;  %v3619_v0 = vld [vmem:[%s8738_s4 + $0xc8] sm:$0xff] }
 0x1bf   : > { %2062 = vmatmul.mubr.f32.gmra.mrb[56].mxu0 %v6251_v53  ;;  %5591 = vmatpush1.bf16.msra.mxu1 %v5590_v9  ;;  %v3616_v53 = vld [vmem:[%s8738_s4 + $0xb0] sm:$0xff]  ;;  %v5626_v9 = vpack.c.bf16 %v3619_v0, %v3618_v14 }
 0x1c0   : > { %2066 = vmatprep.mubr.f32.mxu0 %v7249_v26  ;;  %v3596_v26 = vld [vmem:[%s8738_s4 + $0x10] sm:$0xff]  ;;  %5592 = vmatprep.subr.bf16.mxu1 %v8742_v3 }
 0x1c1   : > { %v873_v0 = vld [vmem:[#allocation2 + $0x169] sm:$0xff] }
 0x1c3   : > { %2067 = vmatmul.mubr.f32.gmra.mrb[58].mxu0 %v6252_v57  ;;  %v3617_v57 = vld [vmem:[%s8738_s4 + $0xb8] sm:$0xff] }
 0x1c4   : > { %2071 = vmatprep.mubr.f32.mxu0 %v7396_v15  ;;  %v5608_v15 = vpack.c.bf16 %v3607_v31, %v3606_v50  ;;  %v3624_v31 = vld [vmem:[%s8738_s4 + $0xf0] sm:$0xff] }
 0x1c7   : > { %2072 = vmatmul.mubr.f32.gmra.mrb[60].mxu0 %v6948_v55  ;;  %v3597_v55 = vld [vmem:[%s8738_s4 + $0x18] sm:$0xff] }
 0x1c8   : > { %2076 = vmatprep.mubr.f32.mxu0 %v749_v51  ;;  %v5593_v45 = vpack.c.bf16 %v3597_v55, %v3596_v26  ;;  %v789_v51 = vld [vmem:[#allocation2 + $0x78] sm:$0xff]  ;;  %v794_v26 = vld [vmem:[#allocation2 + $0xb0] sm:$0xff] }
 0x1c9   : > { %v3620_v55 = vld [vmem:[%s8738_s4 + $0xd0] sm:$0xff] }
 0x1ca   : > { %5594 = vmatpush1.bf16.msra.mxu1 %v5593_v45  ;;  %v795_v45 = vld [vmem:[#allocation2 + $0xc0] sm:$0xff] }
 0x1cb   : > { %2077 = vmatmul.mubr.f32.gmra.mrb[62].mxu0 %v6956_v20  ;;  %v848_v20 = vld [vmem:[#allocation2 + $0x39] sm:$0xff]  ;;  %5595 = vmatprep.subr.bf16.mxu1 %v8742_v3 }
 0x1cc   : > { %2146 = vmatprep.mubr.f32.mxu0 %v847_v8  ;;  %v5623_v8 = vpack.c.bf16 %v3617_v57, %v3616_v53  ;;  %v872_v53 = vld [vmem:[#allocation2 + $0x159] sm:$0xff] }
 0x1cd   : > { %v3730_v57 = vld [vmem:[%s8738_s4 + $0x440] sm:$0xff] }
 0x1ce   : > { %5597 = vmatpush1.bf16.msra.mxu1 %v5596_v35  ;;  %v797_v35 = vld [vmem:[#allocation2 + $0xd8] sm:$0xff] }
 0x1cf   : > { %2147 = vmatmul.mubr.f32.vlgmr.msra.gmra.mrb[0].mxu0 %v783_v39  ;;  %5598 = vmatprep.subr.bf16.mxu1 %v8742_v3  ;;  %v859_v39 = vld [vmem:[#allocation2 + $0xc1] sm:$0xff] }
 0x1d0   : > { %2151 = vmatprep.mubr.f32.mxu0 %v848_v20  ;;  %5784 = vmatpush3.bf16.msra.mxu0 %v7459_v19  ;;  %v3621_v20 = vld [vmem:[%s8738_s4 + $0xd8] sm:$0xff] }
 0x1d1   : > { %v5629_v12 = vpack.c.bf16 %v3621_v20, %v3620_v55  ;;  %v3626_v20 = vld [vmem:[%s8738_s4 + $0x100] sm:$0xff] }
 0x1d2   : > { %5600 = vmatpush1.bf16.msra.mxu1 %v5599_v21  ;;  %v865_v21 = vld [vmem:[#allocation2 + $0x109] sm:$0xff] }
 0x1d3   : > { %2152 = vmatmul.mubr.f32.gmra.mrb[2].mxu0 %v784_v13  ;;  %5601 = vmatprep.subr.bf16.mxu1 %v8742_v3  ;;  %v796_v13 = vld [vmem:[#allocation2 + $0xc8] sm:$0xff] }
 0x1d4   : > { %2156 = vmatprep.mubr.f32.mxu0 %v849_v23  ;;  %v861_v23 = vld [vmem:[#allocation2 + $0xd9] sm:$0xff] }
 0x1d6   : > { %5603 = vmatpush1.bf16.msra.mxu1 %v5602_v16  ;;  %v803_v16 = vld [vmem:[#allocation2 + $0x120] sm:$0xff] }
 0x1d7   : > { %2157 = vmatmul.mubr.f32.gmra.mrb[4].mxu0 %v785_v10  ;;  %5604 = vmatprep.subr.bf16.mxu1 %v8742_v3  ;;  %v799_v10 = vld [vmem:[#allocation2 + $0xf0] sm:$0xff] }
 0x1d8   : > { %2161 = vmatprep.mubr.f32.mxu0 %v850_v27  ;;  %v800_v27 = vld [vmem:[#allocation2 + $0xf8] sm:$0xff] }
 0x1da   : > { %5606 = vmatpush1.bf16.msra.mxu1 %v5605_v11  ;;  %v804_v11 = vld [vmem:[#allocation2 + $0x128] sm:$0xff] }
 0x1db   : > { %2162 = vmatmul.mubr.f32.gmra.mrb[6].mxu0 %v786_v44  ;;  %5607 = vmatprep.subr.bf16.mxu1 %v8742_v3  ;;  %v802_v44 = vld [vmem:[#allocation2 + $0x110] sm:$0xff] }
 0x1dc   : > { %2166 = vmatprep.mubr.f32.mxu0 %v851_v46  ;;  %v867_v46 = vld [vmem:[#allocation2 + $0x121] sm:$0xff] }
 0x1de   : > { %5609 = vmatpush1.bf16.msra.mxu1 %v5608_v15 }
 0x1df   : > { %2167 = vmatmul.mubr.f32.gmra.mrb[8].mxu0 %v787_v6  ;;  %5610 = vmatprep.subr.bf16.mxu1 %v8742_v3  ;;  %v868_v6 = vld [vmem:[#allocation2 + $0x129] sm:$0xff] }
 0x1e0   : > { %2171 = vmatprep.mubr.f32.mxu0 %v852_v25  ;;  %v5632_v25 = vpack.c.bf16 %v3623_v48, %v3622_v43  ;;  %v877_v48 = vld [vmem:[#allocation2 + $0x199] sm:$0xff] }
 0x1e2   : > { %5612 = vmatpush1.bf16.msra.mxu1 %v5611_v24  ;;  %v805_v24 = vld [vmem:[#allocation2 + $0x138] sm:$0xff] }
 0x1e3   : > { %2172 = vmatmul.mubr.f32.gmra.mrb[10].mxu0 %v788_v49  ;;  %5613 = vmatprep.subr.bf16.mxu1 %v8742_v3  ;;  %v3625_v49 = vld [vmem:[%s8738_s4 + $0xf8] sm:$0xff] }
 0x1e4   : > { %2176 = vmatprep.mubr.f32.mxu0 %v853_v61  ;;  %v869_v61 = vld [vmem:[#allocation2 + $0x139] sm:$0xff] }
 0x1e6   : > { %5615 = vmatpush1.bf16.msra.mxu1 %v5614_v33 }
 0x1e7   : > { %2177 = vmatmul.mubr.f32.gmra.mrb[12].mxu0 %v789_v51  ;;  %5616 = vmatprep.subr.bf16.mxu1 %v8742_v3  ;;  %v5635_v51 = vpack.c.bf16 %v3625_v49, %v3624_v31  ;;  %v878_v31 = vld [vmem:[#allocation2 + $0x1a1] sm:$0xff] }
 0x1e8   : > { %2181 = vmatprep.mubr.f32.mxu0 %v854_v28  ;;  %v7558_v28 = vpack.c.bf16 %v3725_v34, %v3724_v17  ;;  %v3633_v17 = vld [vmem:[%s8738_s4 + $0x138] sm:$0xff] }
 0x1ea   : > { %5618 = vmatpush1.bf16.msra.mxu1 %v5617_v2  ;;  %8772 = vst [vmem:[#allocation6_spill] sm:$0xff] %v7558_v28  ;;  %5786 = vmatprep.subr.bf16.mxu0 %v7558_v28  ;;  %v871_v2 = vld [vmem:[#allocation2 + $0x151] sm:$0xff] }
 0x1eb   : > { %2182 = vmatmul.mubr.f32.gmra.mrb[14].mxu0 %v790_v52  ;;  %5619 = vmatprep.subr.bf16.mxu1 %v8742_v3  ;;  %v3726_v52 = vld [vmem:[%s8738_s4 + $0x420] sm:$0xff] }
 0x1ec   : > { %2186 = vmatprep.mubr.f32.mxu0 %v855_v29  ;;  %5788 = vmatpush3.bf16.msra.mxu0 %v7558_v28  ;;  %v3727_v29 = vld [vmem:[%s8738_s4 + $0x428] sm:$0xff] }
 0x1ed   : > { %v7568_v33 = vpack.c.bf16 %v3727_v29, %v3726_v52 }
 0x1ee   : > { %5621 = vmatpush1.bf16.msra.mxu1 %v5620_v47  ;;  %v807_v47 = vld [vmem:[#allocation2 + $0x150] sm:$0xff] }
 0x1ef   : > { %2187 = vmatmul.mubr.f32.gmra.mrb[16].mxu0 %v791_v56  ;;  %5622 = vmatprep.subr.bf16.mxu1 %v8742_v3  ;;  %8773 = vst [vmem:[#allocation7_spill] sm:$0xff] %v7568_v33 }
 0x1f0   : > { %2191 = vmatprep.mubr.f32.mxu0 %v856_v7  ;;  %5790 = vmatprep.subr.bf16.mxu0 %v7568_v33  ;;  %v2794_v7 = vld [vmem:[#allocation3 + $0x9] sm:$0xff] }
 0x1f1   : > { %5792 = vmatpush3.bf16.msra.mxu0 %v7568_v33 }
 0x1f2   : > { %5624 = vmatpush1.bf16.msra.mxu1 %v5623_v8  ;;  %v808_v8 = vld [vmem:[#allocation2 + $0x158] sm:$0xff] }
 0x1f3   : > { %2192 = vmatmul.mubr.f32.gmra.mrb[18].mxu0 %v792_v4  ;;  %5625 = vmatprep.subr.bf16.mxu1 %v8742_v3  ;;  %v3729_v4 = vld [vmem:[%s8738_s4 + $0x438] sm:$0xff] }
 0x1f4   : > { %2196 = vmatprep.mubr.f32.mxu0 %v857_v41  ;;  %v7586_v41 = vpack.c.bf16 %v3729_v4, %v3728_v38 }
 0x1f6   : > { %5627 = vmatpush1.bf16.msra.mxu1 %v5626_v9  ;;  %8774 = vst [vmem:[#allocation8_spill] sm:$0xff] %v7586_v41  ;;  %5794 = vmatprep.subr.bf16.mxu0 %v7586_v41  ;;  %v3733_v9 = vld [vmem:[%s8738_s4 + $0x458] sm:$0xff] }
 0x1f7   : > { %2197 = vmatmul.mubr.f32.gmra.mrb[20].mxu0 %v793_v30  ;;  %5628 = vmatprep.subr.bf16.mxu1 %v8742_v3  ;;  %v3731_v30 = vld [vmem:[%s8738_s4 + $0x448] sm:$0xff] }
 0x1f8   : > { %2201 = vmatprep.mubr.f32.mxu0 %v858_v62  ;;  %5796 = vmatpush3.bf16.msra.mxu0 %v7586_v41  ;;  %v7597_v62 = vpack.c.bf16 %v3731_v30, %v3730_v57 }
 0x1fa   : > { %5630 = vmatpush1.bf16.msra.mxu1 %v5629_v12  ;;  %8775 = vst [vmem:[#allocation9_spill] sm:$0xff] %v7597_v62  ;;  %5798 = vmatprep.subr.bf16.mxu0 %v7597_v62 }
 0x1fb   : > { %2202 = vmatmul.mubr.f32.gmra.mrb[22].mxu0 %v794_v26  ;;  %5631 = vmatprep.subr.bf16.mxu1 %v8742_v3 }
 0x1fc   : > { %2206 = vmatprep.mubr.f32.mxu0 %v859_v39  ;;  %5800 = vmatpush3.bf16.msra.mxu0 %v7597_v62  ;;  %v3732_v39 = vld [vmem:[%s8738_s4 + $0x450] sm:$0xff] }
 0x1fd   : > { %v7611_v55 = vpack.c.bf16 %v3733_v9, %v3732_v39  ;;  %v3641_v39 = vld [vmem:[%s8738_s4 + $0x178] sm:$0xff] }
 0x1fe   : > { %5633 = vmatpush1.bf16.msra.mxu1 %v5632_v25  ;;  %v3630_v25 = vld [vmem:[%s8738_s4 + $0x120] sm:$0xff] }
 0x1ff   : > { %2207 = vmatmul.mubr.f32.gmra.mrb[24].mxu0 %v795_v45  ;;  %5634 = vmatprep.subr.bf16.mxu1 %v8742_v3  ;;  %8776 = vst [vmem:[#allocation10_spill] sm:$0xff] %v7611_v55  ;;  %v3627_v45 = vld [vmem:[%s8738_s4 + $0x108] sm:$0xff] }
 0x200   : > { %2211 = vmatprep.mubr.f32.mxu0 %v860_v32  ;;  %v809_v32 = vld [vmem:[#allocation2 + $0x168] sm:$0xff]  ;;  %v5638_v12 = vpack.c.bf16 %v3627_v45, %v3626_v20  ;;  %5802 = vmatprep.subr.bf16.mxu0 %v7611_v55 }
 0x201   : > { %5804 = vmatpush3.bf16.msra.mxu0 %v7611_v55 }
 0x202   : > { %5636 = vmatpush1.bf16.msra.mxu1 %v5635_v51 }
 0x203   : > { %2212 = vmatmul.mubr.f32.gmra.mrb[26].mxu0 %v796_v13  ;;  %5637 = vmatprep.subr.bf16.mxu1 %v8742_v3  ;;  %v874_v13 = vld [vmem:[#allocation2 + $0x171] sm:$0xff] }
 0x204   : > { %2216 = vmatprep.mubr.f32.mxu0 %v861_v23  ;;  %v3734_v23 = vld [vmem:[%s8738_s4 + $0x460] sm:$0xff] }
 0x205   : > { %3803 = vmatmul.mubr.f32.vlgmr.msra.gmra.mrb[32].mxu1 %v7570_v5 }
 0x206   : > { %3807 = vmatprep.mubr.f32.mxu1 %v2794_v7  ;;  %5639 = vmatpush1.bf16.msra.mxu1 %v5638_v12  ;;  %v3637_v7 = vld [vmem:[%s8738_s4 + $0x158] sm:$0xff]  ;;  %v3643_v12 = vld [vmem:[%s8738_s4 + $0x188] sm:$0xff] }
 0x207   : > { %2217 = vmatmul.mubr.f32.gmra.mrb[28].mxu0 %v797_v35  ;;  %v3735_v35 = vld [vmem:[%s8738_s4 + $0x468] sm:$0xff]  ;;  %5640 = vmatprep.subr.bf16.mxu1 %v8742_v3 }
 0x208   : > { %2221 = vmatprep.mubr.f32.mxu0 %v862_v22  ;;  %v7627_v22 = vpack.c.bf16 %v3735_v35, %v3734_v23 }
 0x209   : > { %3808 = vmatmul.mubr.f32.gmra.mrb[34].mxu1 %v7570_v5 }
 0x20a   : > { %8777 = vst [vmem:[#allocation11_spill] sm:$0xff] %v7627_v22  ;;  %5806 = vmatprep.subr.bf16.mxu0 %v7627_v22 }
 0x20b   : > { %2222 = vmatmul.mubr.f32.gmra.mrb[30].mxu0 %v798_v58  ;;  %v810_v58 = vld [vmem:[#allocation2 + $0x170] sm:$0xff] }
 0x20c   : > { %2226 = vmatprep.mubr.f32.mxu0 %v863_v59  ;;  %5808 = vmatpush3.bf16.msra.mxu0 %v7627_v22 }
 0x20f   : > { %2227 = vmatmul.mubr.f32.gmra.mrb[32].mxu0 %v799_v10 }
 0x210   : > { %2231 = vmatprep.mubr.f32.mxu0 %v864_v63  ;;  %v3736_v63 = vld [vmem:[%s8738_s4 + $0x470] sm:$0xff] }
 0x213   : > { %2232 = vmatmul.mubr.f32.gmra.mrb[34].mxu0 %v800_v27  ;;  %v3737_v27 = vld [vmem:[%s8738_s4 + $0x478] sm:$0xff] }
 0x214   : > { %2236 = vmatprep.mubr.f32.mxu0 %v865_v21  ;;  %v7642_v21 = vpack.c.bf16 %v3737_v27, %v3736_v63  ;;  %v3645_v63 = vld [vmem:[%s8738_s4 + $0x198] sm:$0xff] }
 0x216   : > { %8778 = vst [vmem:[#allocation12_spill] sm:$0xff] %v7642_v21  ;;  %5810 = vmatprep.subr.bf16.mxu0 %v7642_v21 }
 0x217   : > { %2237 = vmatmul.mubr.f32.gmra.mrb[36].mxu0 %v801_v1  ;;  %v3628_v1 = vld [vmem:[%s8738_s4 + $0x110] sm:$0xff] }
 0x218   : > { %2241 = vmatprep.mubr.f32.mxu0 %v866_v42  ;;  %v3629_v42 = vld [vmem:[%s8738_s4 + $0x118] sm:$0xff]  ;;  %5812 = vmatpush3.bf16.msra.mxu0 %v7642_v21 }
 0x21a   : > { %v7541_v50 = vpop.f32.mrb[0].mxu1 }
 0x21b   : > { %2242 = vmatmul.mubr.f32.gmra.mrb[38].mxu0 %v802_v44  ;;  %v7550_v15 = vpop.f32.mrb[1].mxu1  ;;  %v6254_v44 = vld [vmem:[#allocation2 + $0x181] sm:$0xff] }
 0x21c   : > { %2246 = vmatprep.mubr.f32.mxu0 %v867_v46  ;;  %v5641_v46 = vpack.c.bf16 %v3629_v42, %v3628_v1 }
 0x21e   : > { %v7575_v56 = vpop.f32.mrb[2].mxu1  ;;  %5642 = vmatpush1.bf16.msra.mxu1 %v5641_v46  ;;  %v3647_v46 = vld [vmem:[%s8738_s4 + $0x1a8] sm:$0xff] }
 0x21f   : > { %2247 = vmatmul.mubr.f32.gmra.mrb[40].mxu0 %v803_v16  ;;  %v7578_v40 = vpop.f32.mrb[3].mxu1  ;;  %5643 = vmatprep.subr.bf16.mxu1 %v8742_v3  ;;  %v6255_v16 = vld [vmem:[#allocation2 + $0x189] sm:$0xff] }
 0x220   : > { %2251 = vmatprep.mubr.f32.mxu0 %v868_v6 }
 0x222   : > { %v7600_v14 = vpop.f32.mrb[4].mxu1 }
 0x223   : > { %2252 = vmatmul.mubr.f32.gmra.mrb[42].mxu0 %v804_v11  ;;  %v7603_v26 = vpop.f32.mrb[5].mxu1  ;;  %v3631_v11 = vld [vmem:[%s8738_s4 + $0x128] sm:$0xff] }
 0x224   : > { %2256 = vmatprep.mubr.f32.mxu0 %v869_v61  ;;  %v3632_v61 = vld [vmem:[%s8738_s4 + $0x130] sm:$0xff] }
 0x225   : > { %v5647_v34 = vpack.c.bf16 %v3633_v17, %v3632_v61 }
 0x226   : > { %v7631_v59 = vpop.f32.mrb[6].mxu1 }
 0x227   : > { %2257 = vmatmul.mubr.f32.gmra.mrb[44].mxu0 %v805_v24  ;;  %v7634_v10 = vpop.f32.mrb[7].mxu1 }
 0x228   : > { %2261 = vmatprep.mubr.f32.mxu0 %v870_v37  ;;  %v3635_v37 = vld [vmem:[%s8738_s4 + $0x148] sm:$0xff] }
 0x229   : > { %v5650_v52 = vpack.c.bf16 %v3635_v37, %v3634_v18  ;;  %v3651_v18 = vld [vmem:[%s8738_s4 + $0x1c8] sm:$0xff] }
 0x22a   : > { %v7654_v43 = vpop.f32.mrb[8].mxu1 }
 0x22b   : > { %2262 = vmatmul.mubr.f32.gmra.mrb[46].mxu0 %v806_v36  ;;  %v7656_v6 = vpop.f32.mrb[9].mxu1  ;;  %v3636_v36 = vld [vmem:[%s8738_s4 + $0x150] sm:$0xff] }
 0x22c   : > { %2266 = vmatprep.mubr.f32.mxu0 %v871_v2  ;;  %v5653_v2 = vpack.c.bf16 %v3637_v7, %v3636_v36  ;;  %v3652_v7 = vld [vmem:[%s8738_s4 + $0x1d0] sm:$0xff] }
 0x22e   : > { %v7667_v49 = vpop.f32.mrb[10].mxu1 }
 0x22f   : > { %2267 = vmatmul.mubr.f32.gmra.mrb[48].mxu0 %v807_v47  ;;  %v3638_v47 = vld [vmem:[%s8738_s4 + $0x160] sm:$0xff] }
 0x230   : > { %2271 = vmatprep.mubr.f32.mxu0 %v872_v53  ;;  %v3639_v53 = vld [vmem:[%s8738_s4 + $0x168] sm:$0xff] }
 0x231   : > { %v5656_v57 = vpack.c.bf16 %v3639_v53, %v3638_v47  ;;  %v3654_v53 = vld [vmem:[%s8738_s4 + $0x1e0] sm:$0xff] }
 0x233   : > { %2272 = vmatmul.mubr.f32.gmra.mrb[50].mxu0 %v808_v8 }
 0x234   : > { %2276 = vmatprep.mubr.f32.mxu0 %v873_v0  ;;  %v3640_v0 = vld [vmem:[%s8738_s4 + $0x170] sm:$0xff] }
 0x235   : > { %v5659_v9 = vpack.c.bf16 %v3641_v39, %v3640_v0  ;;  %v7798_v39 = vld [vmem:[%s8736_s2] ss:$0 sm:$0xff] }
 0x237   : > { %2277 = vmatmul.mubr.f32.gmra.mrb[52].mxu0 %v809_v32  ;;  %v3642_v32 = vld [vmem:[%s8738_s4 + $0x180] sm:$0xff] }
 0x238   : > { %2281 = vmatprep.mubr.f32.mxu0 %v874_v13  ;;  %v5662_v13 = vpack.c.bf16 %v3643_v12, %v3642_v32 }
 0x23b   : > { %2282 = vmatmul.mubr.f32.gmra.mrb[54].mxu0 %v810_v58  ;;  %v3644_v58 = vld [vmem:[%s8738_s4 + $0x190] sm:$0xff] }
 0x23c   : > { %2286 = vmatprep.mubr.f32.mxu0 %v6254_v44  ;;  %v5665_v27 = vpack.c.bf16 %v3645_v63, %v3644_v58  ;;  %v3646_v44 = vld [vmem:[%s8738_s4 + $0x1a0] sm:$0xff]  ;;  %v3656_v63 = vld [vmem:[%s8738_s4 + $0x1f0] sm:$0xff] }
 0x23f   : > { %2287 = vmatmul.mubr.f32.gmra.mrb[56].mxu0 %v7227_v60  ;;  %v5644_v60 = vpack.c.bf16 %v3631_v11, %v3630_v25  ;;  %v3648_v11 = vld [vmem:[%s8738_s4 + $0x1b0] sm:$0xff] }
 0x240   : > { %2291 = vmatprep.mubr.f32.mxu0 %v6255_v16  ;;  %v5668_v16 = vpack.c.bf16 %v3647_v46, %v3646_v44 }
 0x241   : > { %5645 = vmatpush1.bf16.msra.mxu1 %v5644_v60  ;;  %v3649_v60 = vld [vmem:[%s8738_s4 + $0x1b8] sm:$0xff] }
 0x242   : > { %5646 = vmatprep.subr.bf16.mxu1 %v8742_v3 }
 0x243   : > { %2292 = vmatmul.mubr.f32.gmra.mrb[58].mxu0 %v7239_v54  ;;  %v7669_v54 = vpop.f32.mrb[11].mxu1 }
 0x244   : > { %2296 = vmatprep.mubr.f32.mxu0 %v877_v48  ;;  %v7679_v51 = vpop.f32.mrb[12].mxu1 }
 0x245   : > { %5648 = vmatpush1.bf16.msra.mxu1 %v5647_v34  ;;  %v7681_v24 = vpop.f32.mrb[13].mxu1  ;;  %v3650_v34 = vld [vmem:[%s8738_s4 + $0x1c0] sm:$0xff] }
 0x246   : > { %5649 = vmatprep.subr.bf16.mxu1 %v8742_v3  ;;  %v7690_v29 = vpop.f32.mrb[14].mxu1  ;;  %v5674_v37 = vpack.c.bf16 %v3651_v18, %v3650_v34 }
 0x247   : > { %2297 = vmatmul.mubr.f32.gmra.mrb[60].mxu0 %v7570_v5 }
 0x248   : > { %2301 = vmatprep.mubr.f32.mxu0 %v878_v31  ;;  %v5671_v31 = vpack.c.bf16 %v3649_v60, %v3648_v11 }
 0x249   : > { %5651 = vmatpush1.bf16.msra.mxu1 %v5650_v52 }
 0x24a   : > { %5652 = vmatprep.subr.bf16.mxu1 %v8742_v3 }
 0x24b   : > { %2302 = vmatmul.mubr.f32.gmra.mrb[62].mxu0 %v7570_v5  ;;  %v7692_v5 = vpop.f32.mrb[15].mxu1 }
 0x24c   : > { %v7701_v38 = vpop.f32.mrb[16].mxu1 }
 0x24d   : > { %5654 = vmatpush1.bf16.msra.mxu1 %v5653_v2  ;;  %v7703_v4 = vpop.f32.mrb[17].mxu1  ;;  %v3653_v2 = vld [vmem:[%s8738_s4 + $0x1d8] sm:$0xff] }
 0x24e   : > { %5655 = vmatprep.subr.bf16.mxu1 %v8742_v3  ;;  %v7712_v30 = vpop.f32.mrb[18].mxu1  ;;  %v5677_v47 = vpack.c.bf16 %v3653_v2, %v3652_v7 }
 0x24f   : > { %v7714_v8 = vpop.f32.mrb[19].mxu1 }
 0x250   : > { %v7723_v20 = vpop.f32.mrb[20].mxu1 }
 0x251   : > { %5657 = vmatpush1.bf16.msra.mxu1 %v5656_v57  ;;  %v7725_v45 = vpop.f32.mrb[21].mxu1  ;;  %v3655_v57 = vld [vmem:[%s8738_s4 + $0x1e8] sm:$0xff] }
 0x252   : > { %5658 = vmatprep.subr.bf16.mxu1 %v8742_v3  ;;  %v7734_v23 = vpop.f32.mrb[22].mxu1 }
 0x253   : > { %v7736_v35 = vpop.f32.mrb[23].mxu1 }
 0x254   : > { %v7745_v1 = vpop.f32.mrb[24].mxu1 }
 0x255   : > { %5660 = vmatpush1.bf16.msra.mxu1 %v5659_v9  ;;  %v7747_v42 = vpop.f32.mrb[25].mxu1  ;;  %v5680_v9 = vpack.c.bf16 %v3655_v57, %v3654_v53 }
 0x256   : > { %5661 = vmatprep.subr.bf16.mxu1 %v8742_v3  ;;  %v7756_v48 = vpop.f32.mrb[26].mxu1 }
 0x257   : > { %v7758_v25 = vpop.f32.mrb[27].mxu1 }
 0x258   : > { %v7767_v61 = vpop.f32.mrb[28].mxu1 }
 0x259   : > { %5663 = vmatpush1.bf16.msra.mxu1 %v5662_v13  ;;  %v7769_v17 = vpop.f32.mrb[29].mxu1  ;;  %v7804_v13 = vld [vmem:[%s8737_s3] ss:$0 sm:$0xff] }
 0x25a   : > { %5664 = vmatprep.subr.bf16.mxu1 %v8742_v3 }
 0x25d   : > { %5666 = vmatpush1.bf16.msra.mxu1 %v5665_v27  ;;  %v3657_v27 = vld [vmem:[%s8738_s4 + $0x1f8] sm:$0xff] }
 0x25e   : > { %5667 = vmatprep.subr.bf16.mxu1 %v8742_v3  ;;  %v5683_v44 = vpack.c.bf16 %v3657_v27, %v3656_v63 }
 0x261   : > { %5669 = vmatpush1.bf16.msra.mxu1 %v5668_v16 }
 0x262   : > { %5670 = vmatprep.subr.bf16.mxu1 %v8742_v3 }
 0x265   : > { %5672 = vmatpush1.bf16.msra.mxu1 %v5671_v31 }
 0x266   : > { %5673 = vmatprep.subr.bf16.mxu1 %v8742_v3 }
 0x269   : > { %5675 = vmatpush1.bf16.msra.mxu1 %v5674_v37 }
 0x26a   : > { %5676 = vmatprep.subr.bf16.mxu1 %v8742_v3 }
 0x26d   : > { %5678 = vmatpush1.bf16.msra.mxu1 %v5677_v47 }
 0x26e   : > { %5679 = vmatprep.subr.bf16.mxu1 %v8742_v3 }
 0x271   : > { %5681 = vmatpush1.bf16.msra.mxu1 %v5680_v9 }
 0x272   : > { %5682 = vmatprep.subr.bf16.mxu1 %v8742_v3 }
 0x275   : > { %5684 = vmatpush1.bf16.msra.mxu1 %v5683_v44 }
 0x276   : > { %5685 = vmatprep.subr.bf16.mxu1 %v8742_v3 }
 0x284   : > { %v7778_v52 = vpop.f32.mrb[30].mxu1 }
 0x285   : > { %v7780_v36 = vpop.f32.mrb[31].mxu1 }
 0x2a2   : > { %v2148_v0 = vpop.f32.mrb[0].mxu0 }
 0x2a3   : > { %v2374_v32 = vadd.f32 %v7550_v15, %v2148_v0  ;;  %v2150_v12 = vpop.f32.mrb[1].mxu0 }
 0x2a5   : > { %v2539_v58 = vmul.f32 %v7798_v39, %v2374_v32 }
 0x2a6   : > { %v2153_v15 = vpop.f32.mrb[2].mxu0 }
 0x2a7   : > { %v2578_v46 = vadd.f32 %v7804_v13, %v2539_v58  ;;  %v2379_v16 = vadd.f32 %v7541_v50, %v2153_v15  ;;  %v2155_v11 = vpop.f32.mrb[3].mxu0 }
 0x2a9   : > { %v2610_v60 = vmax.f32 %v2578_v46, 0.0  ;;  %v2540_v31 = vmul.f32 %v7798_v39, %v2379_v16 }
 0x2aa   : > { %v2158_v34 = vpop.f32.mrb[4].mxu0 }
 0x2ab   : > { %2697 = vst [vmem:[#allocation3 + $0x19] sm:$0xff] %v2610_v60  ;;  %v2579_v18 = vadd.f32 %v7804_v13, %v2540_v31  ;;  %v2384_v37 = vadd.f32 %v7578_v40, %v2158_v34  ;;  %v2160_v7 = vpop.f32.mrb[5].mxu0  ;;  %3812 = vmatprep.mubr.f32.mxu1 %v2610_v60 }
 0x2ad   : > { %v2611_v2 = vmax.f32 %v2579_v18, 0.0  ;;  %v2541_v47 = vmul.f32 %v7798_v39, %v2384_v37 }
 0x2ae   : > { %v2163_v53 = vpop.f32.mrb[6].mxu0 }
 0x2af   : > { %2698 = vst [vmem:[#allocation3 + $0x21] sm:$0xff] %v2611_v2  ;;  %v2580_v50 = vadd.f32 %v7804_v13, %v2541_v47  ;;  %v2389_v57 = vadd.f32 %v7575_v56, %v2163_v53  ;;  %v2165_v0 = vpop.f32.mrb[7].mxu0 }
 0x2b1   : > { %v2612_v9 = vmax.f32 %v2580_v50, 0.0  ;;  %v2542_v32 = vmul.f32 %v7798_v39, %v2389_v57 }
 0x2b2   : > { %v2168_v12 = vpop.f32.mrb[8].mxu0  ;;  %v7824_v58 = vld [vmem:[#allocation3 + $0x18] sm:$0xff] }
 0x2b3   : > { %2699 = vst [vmem:[#allocation3 + $0x31] sm:$0xff] %v2612_v9  ;;  %v2581_v40 = vadd.f32 %v7804_v13, %v2542_v32  ;;  %v2394_v63 = vadd.f32 %v7603_v26, %v2168_v12  ;;  %v2170_v27 = vpop.f32.mrb[9].mxu0  ;;  %3813 = vmatmul.mubr.f32.gmra.mrb[36].mxu1 %v7824_v58 }
 0x2b4   : > { %3817 = vmatprep.mubr.f32.mxu1 %v2611_v2 }
 0x2b5   : > { %v2613_v15 = vmax.f32 %v2581_v40, 0.0  ;;  %v2543_v44 = vmul.f32 %v7798_v39, %v2394_v63 }
 0x2b6   : > { %v2173_v56 = vpop.f32.mrb[10].mxu0  ;;  %v7830_v46 = vld [vmem:[#allocation3 + $0x20] sm:$0xff] }
 0x2b7   : > { %2700 = vst [vmem:[#allocation3 + $0x39] sm:$0xff] %v2613_v15  ;;  %v2582_v16 = vadd.f32 %v7804_v13, %v2543_v44  ;;  %v2399_v11 = vadd.f32 %v7600_v14, %v2173_v56  ;;  %v2175_v60 = vpop.f32.mrb[11].mxu0  ;;  %3818 = vmatmul.mubr.f32.gmra.mrb[38].mxu1 %v7830_v46 }
 0x2b8   : > { %3822 = vmatprep.mubr.f32.mxu1 %v2612_v9 }
 0x2b9   : > { %v2614_v26 = vmax.f32 %v2582_v16, 0.0  ;;  %v2544_v31 = vmul.f32 %v7798_v39, %v2399_v11 }
 0x2ba   : > { %v2178_v34 = vpop.f32.mrb[12].mxu0  ;;  %v7836_v18 = vld [vmem:[#allocation3 + $0x30] sm:$0xff] }
 0x2bb   : > { %2701 = vst [vmem:[#allocation3 + $0x49] sm:$0xff] %v2614_v26  ;;  %v2583_v37 = vadd.f32 %v7804_v13, %v2544_v31  ;;  %v2404_v7 = vadd.f32 %v7634_v10, %v2178_v34  ;;  %v2180_v2 = vpop.f32.mrb[13].mxu0  ;;  %3823 = vmatmul.mubr.f32.gmra.mrb[40].mxu1 %v7836_v18 }
 0x2bc   : > { %3827 = vmatprep.mubr.f32.mxu1 %v2613_v15 }
 0x2bd   : > { %v2615_v14 = vmax.f32 %v2583_v37, 0.0  ;;  %v2545_v47 = vmul.f32 %v7798_v39, %v2404_v7 }
 0x2be   : > { %v2183_v53 = vpop.f32.mrb[14].mxu0  ;;  %v7842_v50 = vld [vmem:[#allocation3 + $0x32] sm:$0xff]  ;;  %v7846_v0 = vld [vmem:[#allocation3 + $0x3a] sm:$0xff] }
 0x2bf   : > { %v7844_v57 = vld [vmem:[#allocation3 + $0x38] sm:$0xff]  ;;  %2702 = vst [vmem:[#allocation3 + $0x51] sm:$0xff] %v2615_v14  ;;  %v2584_v9 = vadd.f32 %v7804_v13, %v2545_v47  ;;  %v2409_v32 = vadd.f32 %v7631_v59, %v2183_v53  ;;  %v2185_v10 = vpop.f32.mrb[15].mxu0  ;;  %5317 = vmatprep.mubr.f32.mxu0 %v7842_v50 }
 0x2c0   : > { %3828 = vmatmul.mubr.f32.gmra.mrb[42].mxu1 %v7844_v57  ;;  %5318 = vmatmul.mubr.f32.vlgmr.msra.gmra.mrb[64].mxu0 %v7846_v0 }
 0x2c1   : > { %3832 = vmatprep.mubr.f32.mxu1 %v2614_v26  ;;  %v2616_v12 = vmax.f32 %v2584_v9, 0.0  ;;  %v2546_v40 = vmul.f32 %v7798_v39, %v2409_v32 }
 0x2c2   : > { %v2188_v63 = vpop.f32.mrb[16].mxu0  ;;  %v7854_v27 = vld [vmem:[#allocation3 + $0x48] sm:$0xff] }
 0x2c3   : > { %2703 = vst [vmem:[#allocation3 + $0x61] sm:$0xff] %v2616_v12  ;;  %v2585_v15 = vadd.f32 %v7804_v13, %v2546_v40  ;;  %v2414_v44 = vadd.f32 %v7656_v6, %v2188_v63  ;;  %v2190_v59 = vpop.f32.mrb[17].mxu0 }
 0x2c4   : > { %3833 = vmatmul.mubr.f32.gmra.mrb[44].mxu1 %v7854_v27 }
 0x2c5   : > { %3837 = vmatprep.mubr.f32.mxu1 %v2615_v14  ;;  %v2617_v56 = vmax.f32 %v2585_v15, 0.0  ;;  %v2547_v16 = vmul.f32 %v7798_v39, %v2414_v44 }
 0x2c6   : > { %v2193_v11 = vpop.f32.mrb[18].mxu0  ;;  %v7860_v60 = vld [vmem:[#allocation3 + $0x4a] sm:$0xff]  ;;  %v7864_v31 = vld [vmem:[#allocation3 + $0x52] sm:$0xff] }
 0x2c7   : > { %v7862_v26 = vld [vmem:[#allocation3 + $0x50] sm:$0xff]  ;;  %2704 = vst [vmem:[#allocation3 + $0x69] sm:$0xff] %v2617_v56  ;;  %v2586_v34 = vadd.f32 %v7804_v13, %v2547_v16  ;;  %v2419_v37 = vadd.f32 %v7654_v43, %v2193_v11  ;;  %v2195_v6 = vpop.f32.mrb[19].mxu0  ;;  %5320 = vmatprep.mubr.f32.mxu0 %v7860_v60 }
 0x2c8   : > { %3838 = vmatmul.mubr.f32.gmra.mrb[46].mxu1 %v7862_v26  ;;  %5321 = vmatmul.mubr.f32.gmra.mrb[66].mxu0 %v7864_v31 }
 0x2c9   : > { %3842 = vmatprep.mubr.f32.mxu1 %v2616_v12  ;;  %v2618_v7 = vmax.f32 %v2586_v34, 0.0  ;;  %v2548_v2 = vmul.f32 %v7798_v39, %v2419_v37 }
 0x2ca   : > { %v2198_v14 = vpop.f32.mrb[20].mxu0  ;;  %v7872_v47 = vld [vmem:[#allocation3 + $0x60] sm:$0xff] }
 0x2cb   : > { %2705 = vst [vmem:[#allocation3 + $0x79] sm:$0xff] %v2618_v7  ;;  %v2587_v53 = vadd.f32 %v7804_v13, %v2548_v2  ;;  %v2424_v9 = vadd.f32 %v7669_v54, %v2198_v14  ;;  %v2200_v43 = vpop.f32.mrb[21].mxu0 }
 0x2cc   : > { %3843 = vmatmul.mubr.f32.gmra.mrb[48].mxu1 %v7872_v47 }
 0x2cd   : > { %3847 = vmatprep.mubr.f32.mxu1 %v2617_v56  ;;  %v2619_v32 = vmax.f32 %v2587_v53, 0.0  ;;  %v2549_v10 = vmul.f32 %v7798_v39, %v2424_v9 }
 0x2ce   : > { %v2203_v40 = vpop.f32.mrb[22].mxu0  ;;  %v7878_v12 = vld [vmem:[#allocation3 + $0x62] sm:$0xff]  ;;  %v7882_v15 = vld [vmem:[#allocation3 + $0x6a] sm:$0xff] }
 0x2cf   : > { %v7880_v63 = vld [vmem:[#allocation3 + $0x68] sm:$0xff]  ;;  %2706 = vst [vmem:[#allocation3 + $0x81] sm:$0xff] %v2619_v32  ;;  %v2588_v44 = vadd.f32 %v7804_v13, %v2549_v10  ;;  %v2429_v59 = vadd.f32 %v7667_v49, %v2203_v40  ;;  %v2205_v54 = vpop.f32.mrb[23].mxu0  ;;  %5323 = vmatprep.mubr.f32.mxu0 %v7878_v12 }
 0x2d0   : > { %3848 = vmatmul.mubr.f32.gmra.mrb[50].mxu1 %v7880_v63  ;;  %5324 = vmatmul.mubr.f32.gmra.mrb[68].mxu0 %v7882_v15 }
 0x2d1   : > { %3852 = vmatprep.mubr.f32.mxu1 %v2618_v7  ;;  %v2620_v56 = vmax.f32 %v2588_v44, 0.0  ;;  %v2550_v16 = vmul.f32 %v7798_v39, %v2429_v59 }
 0x2d2   : > { %v2208_v11 = vpop.f32.mrb[24].mxu0  ;;  %v7890_v34 = vld [vmem:[#allocation3 + $0x78] sm:$0xff] }
 0x2d3   : > { %2707 = vst [vmem:[#allocation3 + $0x91] sm:$0xff] %v2620_v56  ;;  %v2589_v37 = vadd.f32 %v7804_v13, %v2550_v16  ;;  %v2434_v6 = vadd.f32 %v7681_v24, %v2208_v11  ;;  %v2210_v49 = vpop.f32.mrb[25].mxu0 }
 0x2d4   : > { %3853 = vmatmul.mubr.f32.gmra.mrb[52].mxu1 %v7890_v34 }
 0x2d5   : > { %3857 = vmatprep.mubr.f32.mxu1 %v2619_v32  ;;  %v2621_v2 = vmax.f32 %v2589_v37, 0.0  ;;  %v2551_v14 = vmul.f32 %v7798_v39, %v2434_v6 }
 0x2d6   : > { %v2213_v53 = vpop.f32.mrb[26].mxu0  ;;  %v7896_v7 = vld [vmem:[#allocation3 + $0x7a] sm:$0xff]  ;;  %v7900_v43 = vld [vmem:[#allocation3 + $0x82] sm:$0xff] }
 0x2d7   : > { %v7898_v9 = vld [vmem:[#allocation3 + $0x80] sm:$0xff]  ;;  %2708 = vst [vmem:[#allocation3 + $0x99] sm:$0xff] %v2621_v2  ;;  %v2590_v10 = vadd.f32 %v7804_v13, %v2551_v14  ;;  %v2439_v40 = vadd.f32 %v7679_v51, %v2213_v53  ;;  %v2215_v24 = vpop.f32.mrb[27].mxu0  ;;  %5326 = vmatprep.mubr.f32.mxu0 %v7896_v7 }
 0x2d8   : > { %3858 = vmatmul.mubr.f32.gmra.mrb[54].mxu1 %v7898_v9  ;;  %5327 = vmatmul.mubr.f32.gmra.mrb[70].mxu0 %v7900_v43 }
 0x2d9   : > { %3862 = vmatprep.mubr.f32.mxu1 %v2620_v56  ;;  %v2622_v32 = vmax.f32 %v2590_v10, 0.0  ;;  %v2552_v44 = vmul.f32 %v7798_v39, %v2439_v40 }
 0x2da   : > { %v2218_v59 = vpop.f32.mrb[28].mxu0  ;;  %v7908_v54 = vld [vmem:[#allocation3 + $0x90] sm:$0xff] }
 0x2db   : > { %2709 = vst [vmem:[#allocation3 + $0xa9] sm:$0xff] %v2622_v32  ;;  %v2591_v16 = vadd.f32 %v7804_v13, %v2552_v44  ;;  %v2444_v11 = vadd.f32 %v7692_v5, %v2218_v59  ;;  %v2220_v51 = vpop.f32.mrb[29].mxu0 }
 0x2dc   : > { %3863 = vmatmul.mubr.f32.gmra.mrb[56].mxu1 %v7908_v54 }
 0x2dd   : > { %3867 = vmatprep.mubr.f32.mxu1 %v2621_v2  ;;  %v2623_v37 = vmax.f32 %v2591_v16, 0.0  ;;  %v2553_v6 = vmul.f32 %v7798_v39, %v2444_v11 }
 0x2de   : > { %v2223_v49 = vpop.f32.mrb[30].mxu0  ;;  %v7914_v56 = vld [vmem:[#allocation3 + $0x92] sm:$0xff]  ;;  %v7918_v53 = vld [vmem:[#allocation3 + $0x9a] sm:$0xff] }
 0x2df   : > { %v7916_v14 = vld [vmem:[#allocation3 + $0x98] sm:$0xff]  ;;  %2710 = vst [vmem:[#allocation3 + $0xb1] sm:$0xff] %v2623_v37  ;;  %v2592_v10 = vadd.f32 %v7804_v13, %v2553_v6  ;;  %v2449_v40 = vadd.f32 %v7690_v29, %v2223_v49  ;;  %v2225_v5 = vpop.f32.mrb[31].mxu0  ;;  %5329 = vmatprep.mubr.f32.mxu0 %v7914_v56 }
 0x2e0   : > { %3868 = vmatmul.mubr.f32.gmra.mrb[58].mxu1 %v7916_v14  ;;  %5330 = vmatmul.mubr.f32.gmra.mrb[72].mxu0 %v7918_v53 }
 0x2e1   : > { %3872 = vmatprep.mubr.f32.mxu1 %v2622_v32  ;;  %v2624_v2 = vmax.f32 %v2592_v10, 0.0  ;;  %v2554_v24 = vmul.f32 %v7798_v39, %v2449_v40 }
 0x2e2   : > { %v2228_v44 = vpop.f32.mrb[32].mxu0  ;;  %v7926_v59 = vld [vmem:[#allocation3 + $0xa8] sm:$0xff] }
 0x2e3   : > { %2711 = vst [vmem:[#allocation3 + $0xc1] sm:$0xff] %v2624_v2  ;;  %v2593_v16 = vadd.f32 %v7804_v13, %v2554_v24  ;;  %v2454_v11 = vadd.f32 %v7703_v4, %v2228_v44  ;;  %v2230_v29 = vpop.f32.mrb[33].mxu0 }
 0x2e4   : > { %3873 = vmatmul.mubr.f32.gmra.mrb[60].mxu1 %v7926_v59 }
 0x2e5   : > { %3877 = vmatprep.mubr.f32.mxu1 %v2623_v37  ;;  %v2625_v51 = vmax.f32 %v2593_v16, 0.0  ;;  %v2555_v6 = vmul.f32 %v7798_v39, %v2454_v11 }
 0x2e6   : > { %v2233_v49 = vpop.f32.mrb[34].mxu0  ;;  %v7932_v32 = vld [vmem:[#allocation3 + $0xaa] sm:$0xff]  ;;  %v7936_v40 = vld [vmem:[#allocation3 + $0xb2] sm:$0xff] }
 0x2e7   : > { %v7934_v10 = vld [vmem:[#allocation3 + $0xb0] sm:$0xff]  ;;  %2712 = vst [vmem:[#allocation3 + $0xc9] sm:$0xff] %v2625_v51  ;;  %v2594_v5 = vadd.f32 %v7804_v13, %v2555_v6  ;;  %v2459_v24 = vadd.f32 %v7701_v38, %v2233_v49  ;;  %v2235_v4 = vpop.f32.mrb[35].mxu0  ;;  %5332 = vmatprep.mubr.f32.mxu0 %v7932_v32 }
 0x2e8   : > { %3878 = vmatmul.mubr.f32.gmra.mrb[62].mxu1 %v7934_v10  ;;  %5333 = vmatmul.mubr.f32.gmra.mrb[74].mxu0 %v7936_v40 }
 0x2e9   : > { %3882 = vmatprep.mubr.f32.mxu1 %v2624_v2  ;;  %v2626_v37 = vmax.f32 %v2594_v5, 0.0  ;;  %v2556_v44 = vmul.f32 %v7798_v39, %v2459_v24 }
 0x2ea   : > { %v2238_v16 = vpop.f32.mrb[36].mxu0  ;;  %v7944_v11 = vld [vmem:[#allocation3 + $0xc0] sm:$0xff] }
 0x2eb   : > { %2713 = vst [vmem:[#allocation3 + $0xd9] sm:$0xff] %v2626_v37  ;;  %v2595_v29 = vadd.f32 %v7804_v13, %v2556_v44  ;;  %v2464_v6 = vadd.f32 %v7714_v8, %v2238_v16  ;;  %v2240_v38 = vpop.f32.mrb[37].mxu0 }
 0x2ec   : > { %3883 = vmatmul.mubr.f32.gmra.mrb[64].mxu1 %v7944_v11 }
 0x2ed   : > { %3887 = vmatprep.mubr.f32.mxu1 %v2625_v51  ;;  %v2627_v49 = vmax.f32 %v2595_v29, 0.0  ;;  %v2557_v4 = vmul.f32 %v7798_v39, %v2464_v6 }
 0x2ee   : > { %v2243_v3 = vpop.f32.mrb[38].mxu0  ;;  %v7950_v2 = vld [vmem:[#allocation3 + $0xc2] sm:$0xff]  ;;  %v7954_v24 = vld [vmem:[#allocation3 + $0xca] sm:$0xff] }
 0x2ef   : > { %v7952_v5 = vld [vmem:[#allocation3 + $0xc8] sm:$0xff]  ;;  %2714 = vst [vmem:[#allocation3 + $0xe1] sm:$0xff] %v2627_v49  ;;  %v2596_v21 = vadd.f32 %v7804_v13, %v2557_v4  ;;  %v2469_v44 = vadd.f32 %v7712_v30, %v2243_v3  ;;  %v2245_v8 = vpop.f32.mrb[39].mxu0  ;;  %5335 = vmatprep.mubr.f32.mxu0 %v7950_v2 }
 0x2f0   : > { %3888 = vmatmul.mubr.f32.gmra.mrb[66].mxu1 %v7952_v5  ;;  %5336 = vmatmul.mubr.f32.gmra.mrb[76].mxu0 %v7954_v24 }
 0x2f1   : > { %3892 = vmatprep.mubr.f32.mxu1 %v2626_v37  ;;  %v2628_v51 = vmax.f32 %v2596_v21, 0.0  ;;  %v2558_v16 = vmul.f32 %v7798_v39, %v2469_v44 }
 0x2f2   : > { %v2248_v29 = vpop.f32.mrb[40].mxu0  ;;  %v7962_v6 = vld [vmem:[#allocation3 + $0xd8] sm:$0xff] }
 0x2f3   : > { %2715 = vst [vmem:[#allocation3 + $0xf1] sm:$0xff] %v2628_v51  ;;  %v2597_v38 = vadd.f32 %v7804_v13, %v2558_v16  ;;  %v2474_v4 = vadd.f32 %v7725_v45, %v2248_v29  ;;  %v2250_v3 = vpop.f32.mrb[41].mxu0 }
 0x2f4   : > { %3893 = vmatmul.mubr.f32.gmra.mrb[68].mxu1 %v7962_v6 }
 0x2f5   : > { %3897 = vmatprep.mubr.f32.mxu1 %v2627_v49  ;;  %v2629_v30 = vmax.f32 %v2597_v38, 0.0  ;;  %v2559_v8 = vmul.f32 %v7798_v39, %v2474_v4 }
 0x2f6   : > { %v2253_v22 = vpop.f32.mrb[42].mxu0  ;;  %v7968_v37 = vld [vmem:[#allocation3 + $0xda] sm:$0xff]  ;;  %v7972_v44 = vld [vmem:[#allocation3 + $0xe2] sm:$0xff] }
 0x2f7   : > { %v7970_v21 = vld [vmem:[#allocation3 + $0xe0] sm:$0xff]  ;;  %2716 = vst [vmem:[#allocation3 + $0xf9] sm:$0xff] %v2629_v30  ;;  %v2598_v55 = vadd.f32 %v7804_v13, %v2559_v8  ;;  %v2479_v16 = vadd.f32 %v7723_v20, %v2253_v22  ;;  %v2255_v45 = vpop.f32.mrb[43].mxu0  ;;  %5338 = vmatprep.mubr.f32.mxu0 %v7968_v37 }
 0x2f8   : > { %3898 = vmatmul.mubr.f32.gmra.mrb[70].mxu1 %v7970_v21  ;;  %5339 = vmatmul.mubr.f32.gmra.mrb[78].mxu0 %v7972_v44 }
 0x2f9   : > { %3902 = vmatprep.mubr.f32.mxu1 %v2628_v51  ;;  %v2630_v49 = vmax.f32 %v2598_v55, 0.0  ;;  %v2560_v29 = vmul.f32 %v7798_v39, %v2479_v16 }
 0x2fa   : > { %v2258_v38 = vpop.f32.mrb[44].mxu0  ;;  %v7980_v4 = vld [vmem:[#allocation3 + $0xf0] sm:$0xff] }
 0x2fb   : > { %2717 = vst [vmem:[#allocation3 + $0x109] sm:$0xff] %v2630_v49  ;;  %v2599_v3 = vadd.f32 %v7804_v13, %v2560_v29  ;;  %v2484_v8 = vadd.f32 %v7736_v35, %v2258_v38  ;;  %v2260_v22 = vpop.f32.mrb[45].mxu0 }
 0x2fc   : > { %3903 = vmatmul.mubr.f32.gmra.mrb[72].mxu1 %v7980_v4 }
 0x2fd   : > { %3907 = vmatprep.mubr.f32.mxu1 %v2629_v30  ;;  %v2631_v20 = vmax.f32 %v2599_v3, 0.0  ;;  %v2561_v45 = vmul.f32 %v7798_v39, %v2484_v8 }
 0x2fe   : > { %v2263_v62 = vpop.f32.mrb[46].mxu0  ;;  %v7986_v51 = vld [vmem:[#allocation3 + $0xf2] sm:$0xff]  ;;  %v7990_v16 = vld [vmem:[#allocation3 + $0xfa] sm:$0xff] }
 0x2ff   : > { %v7988_v55 = vld [vmem:[#allocation3 + $0xf8] sm:$0xff]  ;;  %2718 = vst [vmem:[#allocation3 + $0x111] sm:$0xff] %v2631_v20  ;;  %v2600_v41 = vadd.f32 %v7804_v13, %v2561_v45  ;;  %v2489_v29 = vadd.f32 %v7734_v23, %v2263_v62  ;;  %v2265_v35 = vpop.f32.mrb[47].mxu0  ;;  %5341 = vmatprep.mubr.f32.mxu0 %v7986_v51 }
 0x300   : > { %3908 = vmatmul.mubr.f32.gmra.mrb[74].mxu1 %v7988_v55  ;;  %5342 = vmatmul.mubr.f32.gmra.mrb[80].mxu0 %v7990_v16 }
 0x301   : > { %3912 = vmatprep.mubr.f32.mxu1 %v2630_v49  ;;  %v2632_v30 = vmax.f32 %v2600_v41, 0.0  ;;  %v2562_v38 = vmul.f32 %v7798_v39, %v2489_v29 }
 0x302   : > { %v2268_v3 = vpop.f32.mrb[48].mxu0  ;;  %v7998_v8 = vld [vmem:[#allocation3 + $0x108] sm:$0xff] }
 0x303   : > { %2719 = vst [vmem:[#allocation3 + $0x121] sm:$0xff] %v2632_v30  ;;  %v2601_v22 = vadd.f32 %v7804_v13, %v2562_v38  ;;  %v2494_v45 = vadd.f32 %v7747_v42, %v2268_v3  ;;  %v2270_v62 = vpop.f32.mrb[49].mxu0 }
 0x304   : > { %3913 = vmatmul.mubr.f32.gmra.mrb[76].mxu1 %v7998_v8 }
 0x305   : > { %3917 = vmatprep.mubr.f32.mxu1 %v2631_v20  ;;  %v2633_v23 = vmax.f32 %v2601_v22, 0.0  ;;  %v2563_v35 = vmul.f32 %v7798_v39, %v2494_v45 }
 0x306   : > { %v2273_v33 = vpop.f32.mrb[50].mxu0  ;;  %v8004_v49 = vld [vmem:[#allocation3 + $0x10a] sm:$0xff]  ;;  %v8008_v29 = vld [vmem:[#allocation3 + $0x112] sm:$0xff] }
 0x307   : > { %v8006_v41 = vld [vmem:[#allocation3 + $0x110] sm:$0xff]  ;;  %8779 = vst [vmem:[#allocation13_spill] sm:$0xff] %v8008_v29  ;;  %2720 = vst [vmem:[#allocation3 + $0x129] sm:$0xff] %v2633_v23  ;;  %v2602_v28 = vadd.f32 %v7804_v13, %v2563_v35  ;;  %v2499_v38 = vadd.f32 %v7745_v1, %v2273_v33  ;;  %v2275_v42 = vpop.f32.mrb[51].mxu0  ;;  %5344 = vmatprep.mubr.f32.mxu0 %v8004_v49 }
 0x308   : > { %3918 = vmatmul.mubr.f32.gmra.mrb[78].mxu1 %v8006_v41  ;;  %5345 = vmatmul.mubr.f32.gmra.mrb[82].mxu0 %v8008_v29 }
 0x309   : > { %3922 = vmatprep.mubr.f32.mxu1 %v2632_v30  ;;  %v2634_v20 = vmax.f32 %v2602_v28, 0.0  ;;  %v2564_v3 = vmul.f32 %v7798_v39, %v2499_v38 }
 0x30a   : > { %v2278_v22 = vpop.f32.mrb[52].mxu0  ;;  %v8016_v45 = vld [vmem:[#allocation3 + $0x120] sm:$0xff] }
 0x30b   : > { %2721 = vst [vmem:[#allocation3 + $0x139] sm:$0xff] %v2634_v20  ;;  %v2603_v62 = vadd.f32 %v7804_v13, %v2564_v3  ;;  %v2504_v35 = vadd.f32 %v7758_v25, %v2278_v22  ;;  %v2280_v33 = vpop.f32.mrb[53].mxu0 }
 0x30c   : > { %3923 = vmatmul.mubr.f32.gmra.mrb[80].mxu1 %v8016_v45 }
 0x30d   : > { %3927 = vmatprep.mubr.f32.mxu1 %v2633_v23  ;;  %v2635_v1 = vmax.f32 %v2603_v62, 0.0  ;;  %v2565_v42 = vmul.f32 %v7798_v39, %v2504_v35 }
 0x30e   : > { %v2283_v19 = vpop.f32.mrb[54].mxu0  ;;  %v8022_v30 = vld [vmem:[#allocation3 + $0x122] sm:$0xff]  ;;  %v8026_v38 = vld [vmem:[#allocation3 + $0x12a] sm:$0xff] }
 0x30f   : > { %v8024_v28 = vld [vmem:[#allocation3 + $0x128] sm:$0xff]  ;;  %8780 = vst [vmem:[#allocation14_spill] sm:$0xff] %v8026_v38  ;;  %2722 = vst [vmem:[#allocation3 + $0x141] sm:$0xff] %v2635_v1  ;;  %v2604_v29 = vadd.f32 %v7804_v13, %v2565_v42  ;;  %v2509_v3 = vadd.f32 %v7756_v48, %v2283_v19  ;;  %v2285_v25 = vpop.f32.mrb[55].mxu0  ;;  %5347 = vmatprep.mubr.f32.mxu0 %v8022_v30 }
 0x310   : > { %3928 = vmatmul.mubr.f32.gmra.mrb[82].mxu1 %v8024_v28  ;;  %5348 = vmatmul.mubr.f32.gmra.mrb[84].mxu0 %v8026_v38 }
 0x311   : > { %3932 = vmatprep.mubr.f32.mxu1 %v2634_v20  ;;  %v8033_v23 = vmax.f32 %v2604_v29, 0.0  ;;  %v2566_v22 = vmul.f32 %v7798_v39, %v2509_v3 }
 0x312   : > { %v2288_v62 = vpop.f32.mrb[56].mxu0  ;;  %v8036_v35 = vld [vmem:[#allocation3 + $0x138] sm:$0xff] }
 0x313   : > { %8781 = vst [vmem:[#allocation15_spill] sm:$0xff] %v8033_v23  ;;  %2723 = vst [vmem:[#allocation3 + $0x151] sm:$0xff] %v8033_v23  ;;  %v2605_v33 = vadd.f32 %v7804_v13, %v2566_v22  ;;  %v2514_v19 = vadd.f32 %v7769_v17, %v2288_v62  ;;  %v2290_v48 = vpop.f32.mrb[57].mxu0 }
 0x314   : > { %3933 = vmatmul.mubr.f32.gmra.mrb[84].mxu1 %v8036_v35 }
 0x315   : > { %3937 = vmatprep.mubr.f32.mxu1 %v2635_v1  ;;  %v8042_v42 = vmax.f32 %v2605_v33, 0.0  ;;  %v2567_v29 = vmul.f32 %v7798_v39, %v2514_v19 }
 0x316   : > { %v2293_v20 = vpop.f32.mrb[58].mxu0  ;;  %v8045_v25 = vld [vmem:[#allocation3 + $0x13a] sm:$0xff]  ;;  %v8049_v38 = vld [vmem:[#allocation3 + $0x142] sm:$0xff] }
 0x317   : > { %v8047_v3 = vld [vmem:[#allocation3 + $0x140] sm:$0xff]  ;;  %8782 = vst [vmem:[#allocation16_spill] sm:$0xff] %v8049_v38  ;;  %2724 = vst [vmem:[#allocation3 + $0x159] sm:$0xff] %v8042_v42  ;;  %v2606_v22 = vadd.f32 %v7804_v13, %v2567_v29  ;;  %v2519_v17 = vadd.f32 %v7767_v61, %v2293_v20  ;;  %v2295_v62 = vpop.f32.mrb[59].mxu0  ;;  %5350 = vmatprep.mubr.f32.mxu0 %v8045_v25 }
 0x318   : > { %3938 = vmatmul.mubr.f32.gmra.mrb[86].mxu1 %v8047_v3  ;;  %5351 = vmatmul.mubr.f32.gmra.mrb[86].mxu0 %v8049_v38 }
 0x319   : > { %3942 = vmatprep.mubr.f32.mxu1 %v8033_v23  ;;  %v8058_v1 = vmax.f32 %v2606_v22, 0.0  ;;  %v2568_v33 = vmul.f32 %v7798_v39, %v2519_v17 }
 0x31a   : > { %v2298_v19 = vpop.f32.mrb[60].mxu0  ;;  %v8061_v48 = vld [vmem:[#allocation3 + $0x150] sm:$0xff] }
 0x31b   : > { %2725 = vst [vmem:[#allocation3 + $0x169] sm:$0xff] %v8058_v1  ;;  %v2607_v61 = vadd.f32 %v7804_v13, %v2568_v33  ;;  %v2524_v29 = vadd.f32 %v7780_v36, %v2298_v19  ;;  %v2300_v20 = vpop.f32.mrb[61].mxu0 }
 0x31c   : > { %3943 = vmatmul.mubr.f32.gmra.mrb[88].mxu1 %v8061_v48 }
 0x31d   : > { %3947 = vmatprep.mubr.f32.mxu1 %v8042_v42  ;;  %v8068_v62 = vmax.f32 %v2607_v61, 0.0  ;;  %v2569_v22 = vmul.f32 %v7798_v39, %v2524_v29 }
 0x31e   : > { %v2303_v23 = vpop.f32.mrb[62].mxu0  ;;  %v8071_v17 = vld [vmem:[#allocation3 + $0x158] sm:$0xff] }
 0x31f   : > { %2726 = vst [vmem:[#allocation3 + $0x171] sm:$0xff] %v8068_v62  ;;  %v8075_v38 = vadd.f32 %v7804_v13, %v2569_v22  ;;  %v2529_v33 = vadd.f32 %v7778_v52, %v2303_v23  ;;  %v2305_v36 = vpop.f32.mrb[63].mxu0  ;;  %v3658_v23 = vld [vmem:[%s8738_s4 + $0x200] sm:$0xff] }
 0x320   : > { %3948 = vmatmul.mubr.f32.gmra.mrb[90].mxu1 %v8071_v17  ;;  %v3660_v36 = vld [vmem:[%s8738_s4 + $0x210] sm:$0xff] }
 0x321   : > { %3952 = vmatprep.mubr.f32.mxu1 %v8058_v1  ;;  %v8767_v19 = vmax.f32 %v8075_v38, 0.0  ;;  %v2570_v61 = vmul.f32 %v7798_v39, %v2529_v33  ;;  %v3659_v39 = vld [vmem:[%s8738_s4 + $0x208] sm:$0xff] }
 0x322   : > { %v8082_v29 = vld [vmem:[#allocation3 + $0x168] sm:$0xff]  ;;  %v5686_v33 = vpack.c.bf16 %v3659_v39, %v3658_v23  ;;  %v3663_v23 = vld [vmem:[%s8738_s4 + $0x228] sm:$0xff] }
 0x323   : > { %2727 = vst [vmem:[#allocation3 + $0x181] sm:$0xff] %v8767_v19  ;;  %v8087_v20 = vadd.f32 %v7804_v13, %v2570_v61  ;;  %v2857_v13 = vld [vmem:[#allocation3 + $0x2] sm:$0xff]  ;;  %v2858_v19 = vld [vmem:[#allocation3 + $0xa] sm:$0xff] }
 0x324   : > { %3953 = vmatmul.mubr.f32.gmra.mrb[92].mxu1 %v8082_v29  ;;  %v3661_v61 = vld [vmem:[%s8738_s4 + $0x218] sm:$0xff] }
 0x325   : > { %8783 = vst [vmem:[#allocation17_spill] sm:$0xff] %v8087_v20  ;;  %3957 = vmatprep.mubr.f32.mxu1 %v8068_v62  ;;  %v8768_v52 = vmax.f32 %v8087_v20, 0.0  ;;  %v8784_v20 = vmov 0.0|0.0  }
 0x326   : > { %v8098_v22 = vld [vmem:[#allocation3 + $0x170] sm:$0xff] }
 0x327   : > { %2728 = vst [vmem:[#allocation3 + $0x189] sm:$0xff] %v8768_v52  ;;  %v5689_v52 = vpack.c.bf16 %v3661_v61, %v3660_v36  ;;  %v8137_v36 = vld [vmem:[#allocation3 + $0x22] sm:$0xff] }
 0x328   : > { %3958 = vmatmul.mubr.f32.gmra.mrb[94].mxu1 %v8098_v22  ;;  %v3668_v61 = vld [vmem:[%s8738_s4 + $0x250] sm:$0xff] }
 0x329   : > { %4027 = vmatprep.mubr.f32.mxu1 %v7824_v58  ;;  %v3662_v58 = vld [vmem:[%s8738_s4 + $0x220] sm:$0xff] }
 0x32a   : > { %v5692_v39 = vpack.c.bf16 %v3663_v23, %v3662_v58  ;;  %v3669_v58 = vld [vmem:[%s8738_s4 + $0x258] sm:$0xff] }
 0x32b   : > { %v5701_v23 = vpack.c.bf16 %v3669_v58, %v3668_v61  ;;  %v3685_v61 = vld [vmem:[%s8738_s4 + $0x2d8] sm:$0xff]  ;;  %v3687_v58 = vld [vmem:[%s8738_s4 + $0x2e8] sm:$0xff] }
 0x32c   : > { %4028 = vmatmul.mubr.f32.vlgmr.msra.gmra.mrb[32].mxu1 %v2857_v13  ;;  %v3665_v13 = vld [vmem:[%s8738_s4 + $0x238] sm:$0xff] }
 0x32d   : > { %4032 = vmatprep.mubr.f32.mxu1 %v7830_v46  ;;  %5687 = vmatpush1.bf16.msra.mxu1 %v5686_v33  ;;  %v3664_v46 = vld [vmem:[%s8738_s4 + $0x230] sm:$0xff] }
 0x32e   : > { %5688 = vmatprep.subr.bf16.mxu1 %v8784_v20  ;;  %v8126_v33 = vld [vmem:[#allocation3 + $0x1a] sm:$0xff] }
 0x330   : > { %4033 = vmatmul.mubr.f32.gmra.mrb[34].mxu1 %v2858_v19  ;;  %v3666_v19 = vld [vmem:[%s8738_s4 + $0x240] sm:$0xff] }
 0x331   : > { %4037 = vmatprep.mubr.f32.mxu1 %v7836_v18  ;;  %5690 = vmatpush1.bf16.msra.mxu1 %v5689_v52  ;;  %v5695_v18 = vpack.c.bf16 %v3665_v13, %v3664_v46  ;;  %v3667_v52 = vld [vmem:[%s8738_s4 + $0x248] sm:$0xff]  ;;  %v3673_v46 = vld [vmem:[%s8738_s4 + $0x278] sm:$0xff] }
 0x332   : > { %5691 = vmatprep.subr.bf16.mxu1 %v8784_v20  ;;  %v3675_v13 = vld [vmem:[%s8738_s4 + $0x288] sm:$0xff] }
 0x334   : > { %4038 = vmatmul.mubr.f32.gmra.mrb[36].mxu1 %v8126_v33 }
 0x335   : > { %4042 = vmatprep.mubr.f32.mxu1 %v7844_v57  ;;  %5693 = vmatpush1.bf16.msra.mxu1 %v5692_v39  ;;  %v5698_v57 = vpack.c.bf16 %v3667_v52, %v3666_v19  ;;  %v3671_v39 = vld [vmem:[%s8738_s4 + $0x268] sm:$0xff]  ;;  %v3681_v52 = vld [vmem:[%s8738_s4 + $0x2b8] sm:$0xff] }
 0x336   : > { %5694 = vmatprep.subr.bf16.mxu1 %v8784_v20  ;;  %v3679_v19 = vld [vmem:[%s8738_s4 + $0x2a8] sm:$0xff] }
 0x338   : > { %4043 = vmatmul.mubr.f32.gmra.mrb[38].mxu1 %v8137_v36 }
 0x339   : > { %4047 = vmatprep.mubr.f32.mxu1 %v7854_v27  ;;  %5696 = vmatpush1.bf16.msra.mxu1 %v5695_v18  ;;  %v3670_v27 = vld [vmem:[%s8738_s4 + $0x260] sm:$0xff]  ;;  %v3677_v18 = vld [vmem:[%s8738_s4 + $0x298] sm:$0xff] }
 0x33a   : > { %5697 = vmatprep.subr.bf16.mxu1 %v8784_v20 }
 0x33c   : > { %4048 = vmatmul.mubr.f32.gmra.mrb[40].mxu1 %v7842_v50  ;;  %v5704_v50 = vpack.c.bf16 %v3671_v39, %v3670_v27 }
 0x33d   : > { %4052 = vmatprep.mubr.f32.mxu1 %v7862_v26  ;;  %5699 = vmatpush1.bf16.msra.mxu1 %v5698_v57  ;;  %v3672_v26 = vld [vmem:[%s8738_s4 + $0x270] sm:$0xff]  ;;  %v3683_v57 = vld [vmem:[%s8738_s4 + $0x2c8] sm:$0xff] }
 0x33e   : > { %5700 = vmatprep.subr.bf16.mxu1 %v8784_v20 }
 0x340   : > { %4053 = vmatmul.mubr.f32.gmra.mrb[42].mxu1 %v7846_v0  ;;  %v5707_v0 = vpack.c.bf16 %v3673_v46, %v3672_v26  ;;  %v2986_v26 = vld [vmem:[#allocation3 + $0x21] sm:$0xff]  ;;  %v3051_v46 = vld [vmem:[#allocation3 + $0x32] sm:$0xff] }
 0x341   : > { %4057 = vmatprep.mubr.f32.mxu1 %v7872_v47  ;;  %5702 = vmatpush1.bf16.msra.mxu1 %v5701_v23  ;;  %v3674_v47 = vld [vmem:[%s8738_s4 + $0x280] sm:$0xff]  ;;  %v3689_v23 = vld [vmem:[%s8738_s4 + $0x2f8] sm:$0xff] }
 0x342   : > { %5703 = vmatprep.subr.bf16.mxu1 %v8784_v20 }
 0x344   : > { %4058 = vmatmul.mubr.f32.gmra.mrb[44].mxu1 %v7860_v60  ;;  %v5710_v60 = vpack.c.bf16 %v3675_v13, %v3674_v47  ;;  %v3697_v47 = vld [vmem:[%s8738_s4 + $0x338] sm:$0xff]  ;;  %v8331_v13 = vld [vmem:[#allocation3 + $0x31] sm:$0xff] }
 0x345   : > { %4062 = vmatprep.mubr.f32.mxu1 %v7880_v63  ;;  %5705 = vmatpush1.bf16.msra.mxu1 %v5704_v50  ;;  %v3676_v63 = vld [vmem:[%s8738_s4 + $0x290] sm:$0xff]  ;;  %v3695_v50 = vld [vmem:[%s8738_s4 + $0x328] sm:$0xff] }
 0x346   : > { %5706 = vmatprep.subr.bf16.mxu1 %v8784_v20 }
 0x348   : > { %4063 = vmatmul.mubr.f32.gmra.mrb[46].mxu1 %v7864_v31  ;;  %v5713_v31 = vpack.c.bf16 %v3677_v18, %v3676_v63  ;;  %v3052_v63 = vld [vmem:[#allocation3 + $0x3a] sm:$0xff] }
 0x349   : > { %4067 = vmatprep.mubr.f32.mxu1 %v7890_v34  ;;  %5708 = vmatpush1.bf16.msra.mxu1 %v5707_v0  ;;  %v3678_v34 = vld [vmem:[%s8738_s4 + $0x2a0] sm:$0xff] }
 0x34a   : > { %5709 = vmatprep.subr.bf16.mxu1 %v8784_v20 }
 0x34c   : > { %4068 = vmatmul.mubr.f32.gmra.mrb[48].mxu1 %v7878_v12  ;;  %v5716_v12 = vpack.c.bf16 %v3679_v19, %v3678_v34  ;;  %v3698_v34 = vld [vmem:[%s8738_s4 + $0x340] sm:$0xff]  ;;  %v3699_v19 = vld [vmem:[%s8738_s4 + $0x348] sm:$0xff] }
 0x34d   : > { %4072 = vmatprep.mubr.f32.mxu1 %v7898_v9  ;;  %5711 = vmatpush1.bf16.msra.mxu1 %v5710_v60  ;;  %v3680_v9 = vld [vmem:[%s8738_s4 + $0x2b0] sm:$0xff] }
 0x34e   : > { %5712 = vmatprep.subr.bf16.mxu1 %v8784_v20 }
 0x350   : > { %4073 = vmatmul.mubr.f32.gmra.mrb[50].mxu1 %v7882_v15  ;;  %v5719_v15 = vpack.c.bf16 %v3681_v52, %v3680_v9  ;;  %v3053_v9 = vld [vmem:[#allocation3 + $0x4a] sm:$0xff]  ;;  %v5746_v52 = vpack.c.bf16 %v3699_v19, %v3698_v34 }
 0x351   : > { %4077 = vmatprep.mubr.f32.mxu1 %v7908_v54  ;;  %5714 = vmatpush1.bf16.msra.mxu1 %v5713_v31  ;;  %v3682_v54 = vld [vmem:[%s8738_s4 + $0x2c0] sm:$0xff] }
 0x352   : > { %5715 = vmatprep.subr.bf16.mxu1 %v8784_v20 }
 0x354   : > { %4078 = vmatmul.mubr.f32.gmra.mrb[52].mxu1 %v7896_v7  ;;  %v5722_v7 = vpack.c.bf16 %v3683_v57, %v3682_v54  ;;  %v3701_v54 = vld [vmem:[%s8738_s4 + $0x358] sm:$0xff] }
 0x355   : > { %4082 = vmatprep.mubr.f32.mxu1 %v7916_v14  ;;  %5717 = vmatpush1.bf16.msra.mxu1 %v5716_v12  ;;  %v3684_v14 = vld [vmem:[%s8738_s4 + $0x2d0] sm:$0xff]  ;;  %v8355_v57 = vld [vmem:[#allocation3 + $0x49] sm:$0xff] }
 0x356   : > { %5718 = vmatprep.subr.bf16.mxu1 %v8784_v20  ;;  %v8345_v12 = vld [vmem:[#allocation3 + $0x39] sm:$0xff] }
 0x358   : > { %4083 = vmatmul.mubr.f32.gmra.mrb[54].mxu1 %v7900_v43  ;;  %v5725_v43 = vpack.c.bf16 %v3685_v61, %v3684_v14  ;;  %v3054_v14 = vld [vmem:[#allocation3 + $0x52] sm:$0xff] }
 0x359   : > { %4087 = vmatprep.mubr.f32.mxu1 %v7926_v59  ;;  %5720 = vmatpush1.bf16.msra.mxu1 %v5719_v15  ;;  %v3686_v59 = vld [vmem:[%s8738_s4 + $0x2e0] sm:$0xff]  ;;  %v3700_v15 = vld [vmem:[%s8738_s4 + $0x350] sm:$0xff] }
 0x35a   : > { %5721 = vmatprep.subr.bf16.mxu1 %v8784_v20 }
 0x35c   : > { %4088 = vmatmul.mubr.f32.gmra.mrb[56].mxu1 %v7914_v56  ;;  %v5728_v56 = vpack.c.bf16 %v3687_v58, %v3686_v59  ;;  %v3702_v59 = vld [vmem:[%s8738_s4 + $0x360] sm:$0xff]  ;;  %v3703_v58 = vld [vmem:[%s8738_s4 + $0x368] sm:$0xff] }
 0x35d   : > { %4092 = vmatprep.mubr.f32.mxu1 %v7934_v10  ;;  %5723 = vmatpush1.bf16.msra.mxu1 %v5722_v7  ;;  %v3688_v10 = vld [vmem:[%s8738_s4 + $0x2f0] sm:$0xff] }
 0x35e   : > { %5724 = vmatprep.subr.bf16.mxu1 %v8784_v20 }
 0x360   : > { %4093 = vmatmul.mubr.f32.gmra.mrb[58].mxu1 %v7918_v53  ;;  %v5731_v53 = vpack.c.bf16 %v3689_v23, %v3688_v10  ;;  %v3055_v10 = vld [vmem:[#allocation3 + $0x62] sm:$0xff]  ;;  %v5752_v23 = vpack.c.bf16 %v3703_v58, %v3702_v59  ;;  %v8427_v58 = vld [vmem:[#allocation3 + $0x91] sm:$0xff] }
 0x361   : > { %4097 = vmatprep.mubr.f32.mxu1 %v7944_v11  ;;  %5726 = vmatpush1.bf16.msra.mxu1 %v5725_v43  ;;  %v5749_v43 = vpack.c.bf16 %v3701_v54, %v3700_v15  ;;  %v8417_v15 = vld [vmem:[#allocation3 + $0x81] sm:$0xff]  ;;  %v3059_v54 = vld [vmem:[#allocation3 + $0x92] sm:$0xff] }
 0x362   : > { %5727 = vmatprep.subr.bf16.mxu1 %v8784_v20  ;;  %v3713_v59 = vld [vmem:[%s8738_s4 + $0x3b8] sm:$0xff] }
 0x364   : > { %4098 = vmatmul.mubr.f32.gmra.mrb[60].mxu1 %v7932_v32  ;;  %v8785_v32 = vld [vmem:[#allocation13_spill] sm:$0xff] }
 0x365   : > { %4102 = vmatprep.mubr.f32.mxu1 %v7952_v5  ;;  %5729 = vmatpush1.bf16.msra.mxu1 %v5728_v56  ;;  %v8787_v5 = vld [vmem:[#allocation16_spill] sm:$0xff]  ;;  %v8369_v56 = vld [vmem:[#allocation3 + $0x51] sm:$0xff] }
 0x366   : > { %5730 = vmatprep.subr.bf16.mxu1 %v8784_v20 }
 0x368   : > { %4103 = vmatmul.mubr.f32.gmra.mrb[62].mxu1 %v7936_v40  ;;  %v8786_v40 = vld [vmem:[#allocation14_spill] sm:$0xff] }
 0x369   : > { %4107 = vmatprep.mubr.f32.mxu1 %v7962_v6  ;;  %5732 = vmatpush1.bf16.msra.mxu1 %v5731_v53  ;;  %v3704_v53 = vld [vmem:[%s8738_s4 + $0x370] sm:$0xff] }
 0x36a   : > { %5733 = vmatprep.subr.bf16.mxu1 %v8784_v20 }
 0x36c   : > { %4108 = vmatmul.mubr.f32.gmra.mrb[64].mxu1 %v7950_v2 }
 0x36d   : > { %4112 = vmatprep.mubr.f32.mxu1 %v7970_v21  ;;  %v8280_v21 = vld [vmem:[#allocation3 + $0x15a] sm:$0xff] }
 0x370   : > { %4113 = vmatmul.mubr.f32.gmra.mrb[66].mxu1 %v7954_v24  ;;  %v8272_v24 = vld [vmem:[#allocation3 + $0x152] sm:$0xff] }
 0x371   : > { %4117 = vmatprep.mubr.f32.mxu1 %v7980_v4  ;;  %v8286_v4 = vld [vmem:[#allocation3 + $0x16a] sm:$0xff] }
 0x374   : > { %4118 = vmatmul.mubr.f32.gmra.mrb[68].mxu1 %v7968_v37 }
 0x375   : > { %4122 = vmatprep.mubr.f32.mxu1 %v7988_v55 }
 0x378   : > { %4123 = vmatmul.mubr.f32.gmra.mrb[70].mxu1 %v7972_v44  ;;  %v8283_v44 = vld [vmem:[#allocation3 + $0x180] sm:$0xff] }
 0x379   : > { %4127 = vmatprep.mubr.f32.mxu1 %v7998_v8  ;;  %v8291_v8 = vld [vmem:[#allocation3 + $0x188] sm:$0xff] }
 0x37c   : > { %4128 = vmatmul.mubr.f32.gmra.mrb[72].mxu1 %v7986_v51 }
 0x37d   : > { %4132 = vmatprep.mubr.f32.mxu1 %v8006_v41 }
 0x380   : > { %4133 = vmatmul.mubr.f32.gmra.mrb[74].mxu1 %v7990_v16 }
 0x381   : > { %4137 = vmatprep.mubr.f32.mxu1 %v8016_v45  ;;  %v3690_v45 = vld [vmem:[%s8738_s4 + $0x300] sm:$0xff] }
 0x384   : > { %4138 = vmatmul.mubr.f32.gmra.mrb[76].mxu1 %v8004_v49 }
 0x385   : > { %4142 = vmatprep.mubr.f32.mxu1 %v8024_v28  ;;  %v3691_v28 = vld [vmem:[%s8738_s4 + $0x308] sm:$0xff] }
 0x388   : > { %4143 = vmatmul.mubr.f32.gmra.mrb[78].mxu1 %v8785_v32 }
 0x389   : > { %4147 = vmatprep.mubr.f32.mxu1 %v8036_v35  ;;  %v8302_v35 = vld [vmem:[#allocation3 + $0x172] sm:$0xff] }
 0x38c   : > { %4148 = vmatmul.mubr.f32.gmra.mrb[80].mxu1 %v8022_v30 }
 0x38d   : > { %4152 = vmatprep.mubr.f32.mxu1 %v8047_v3  ;;  %v5734_v3 = vpack.c.bf16 %v3691_v28, %v3690_v45  ;;  %v3705_v45 = vld [vmem:[%s8738_s4 + $0x378] sm:$0xff] }
 0x38e   : > { %v8379_v28 = vld [vmem:[#allocation3 + $0x61] sm:$0xff] }
 0x390   : > { %4153 = vmatmul.mubr.f32.gmra.mrb[82].mxu1 %v8786_v40 }
 0x391   : > { %4157 = vmatprep.mubr.f32.mxu1 %v8061_v48  ;;  %v3692_v48 = vld [vmem:[%s8738_s4 + $0x310] sm:$0xff] }
 0x393   : > { %v8264_v11 = vpop.f32.mrb[64].mxu0 }
 0x394   : > { %4158 = vmatmul.mubr.f32.gmra.mrb[84].mxu1 %v8045_v25  ;;  %v8267_v2 = vpop.f32.mrb[65].mxu0 }
 0x395   : > { %4162 = vmatprep.mubr.f32.mxu1 %v8071_v17  ;;  %v3693_v17 = vld [vmem:[%s8738_s4 + $0x318] sm:$0xff] }
 0x396   : > { %v5737_v39 = vpack.c.bf16 %v3693_v17, %v3692_v48  ;;  %v3056_v48 = vld [vmem:[#allocation3 + $0x6a] sm:$0xff] }
 0x398   : > { %4163 = vmatmul.mubr.f32.gmra.mrb[86].mxu1 %v8787_v5 }
 0x399   : > { %4167 = vmatprep.mubr.f32.mxu1 %v8082_v29  ;;  %v2985_v29 = vld [vmem:[#allocation3 + $0x19] sm:$0xff] }
 0x39b   : > { %v8274_v6 = vpop.f32.mrb[66].mxu0 }
 0x39c   : > { %4168 = vmatmul.mubr.f32.gmra.mrb[88].mxu1 %v8272_v24  ;;  %v8277_v37 = vpop.f32.mrb[67].mxu0 }
 0x39d   : > { %4172 = vmatprep.mubr.f32.mxu1 %v8098_v22 }
 0x3a0   : > { %4173 = vmatmul.mubr.f32.gmra.mrb[90].mxu1 %v8280_v21 }
 0x3a1   : > { %4177 = vmatprep.mubr.f32.mxu1 %v8283_v44 }
 0x3a3   : > { %v8288_v55 = vpop.f32.mrb[68].mxu0 }
 0x3a4   : > { %4178 = vmatmul.mubr.f32.gmra.mrb[92].mxu1 %v8286_v4  ;;  %v8293_v41 = vpop.f32.mrb[69].mxu0 }
 0x3a5   : > { %4182 = vmatprep.mubr.f32.mxu1 %v8291_v8 }
 0x3a8   : > { %4183 = vmatmul.mubr.f32.gmra.mrb[94].mxu1 %v8302_v35 }
 0x3a9   : > { %4252 = vmatprep.mubr.f32.mxu1 %v8126_v33  ;;  %v3694_v33 = vld [vmem:[%s8738_s4 + $0x320] sm:$0xff] }
 0x3aa   : > { %v5740_v0 = vpack.c.bf16 %v3695_v50, %v3694_v33  ;;  %v3707_v33 = vld [vmem:[%s8738_s4 + $0x388] sm:$0xff]  ;;  %v8393_v50 = vld [vmem:[#allocation3 + $0x69] sm:$0xff] }
 0x3ab   : > { %v8312_v22 = vpop.f32.mrb[70].mxu0 }
 0x3ac   : > { %4253 = vmatmul.mubr.f32.vlgmr.msra.gmra.mrb[32].mxu1 %v2985_v29  ;;  %v8314_v27 = vpop.f32.mrb[71].mxu0  ;;  %v5755_v29 = vpack.c.bf16 %v3705_v45, %v3704_v53 }
 0x3ad   : > { %4257 = vmatprep.mubr.f32.mxu1 %v8137_v36  ;;  %5735 = vmatpush1.bf16.msra.mxu1 %v5734_v3  ;;  %v3696_v36 = vld [vmem:[%s8738_s4 + $0x330] sm:$0xff] }
 0x3ae   : > { %5736 = vmatprep.subr.bf16.mxu1 %v8784_v20  ;;  %v5743_v31 = vpack.c.bf16 %v3697_v47, %v3696_v36  ;;  %v3709_v36 = vld [vmem:[%s8738_s4 + $0x398] sm:$0xff]  ;;  %v8403_v47 = vld [vmem:[#allocation3 + $0x79] sm:$0xff] }
 0x3b0   : > { %4258 = vmatmul.mubr.f32.gmra.mrb[34].mxu1 %v2986_v26  ;;  %v3057_v26 = vld [vmem:[#allocation3 + $0x7a] sm:$0xff] }
 0x3b1   : > { %4262 = vmatprep.mubr.f32.mxu1 %v3051_v46  ;;  %5738 = vmatpush1.bf16.msra.mxu1 %v5737_v39  ;;  %v3706_v39 = vld [vmem:[%s8738_s4 + $0x380] sm:$0xff] }
 0x3b2   : > { %5739 = vmatprep.subr.bf16.mxu1 %v8784_v20  ;;  %v5758_v46 = vpack.c.bf16 %v3707_v33, %v3706_v39  ;;  %v8441_v39 = vld [vmem:[#allocation3 + $0x99] sm:$0xff]  ;;  %v3061_v33 = vld [vmem:[#allocation3 + $0xaa] sm:$0xff] }
 0x3b3   : > { %v8333_v60 = vpop.f32.mrb[72].mxu0 }
 0x3b4   : > { %4263 = vmatmul.mubr.f32.gmra.mrb[36].mxu1 %v8331_v13  ;;  %v8336_v18 = vpop.f32.mrb[73].mxu0 }
 0x3b5   : > { %4267 = vmatprep.mubr.f32.mxu1 %v3052_v63  ;;  %5741 = vmatpush1.bf16.msra.mxu1 %v5740_v0  ;;  %v3708_v0 = vld [vmem:[%s8738_s4 + $0x390] sm:$0xff] }
 0x3b6   : > { %5742 = vmatprep.subr.bf16.mxu1 %v8784_v20  ;;  %v5761_v19 = vpack.c.bf16 %v3709_v36, %v3708_v0  ;;  %v3717_v0 = vld [vmem:[%s8738_s4 + $0x3d8] sm:$0xff] }
 0x3b7   : > { %v8451_v36 = vld [vmem:[#allocation3 + $0xa9] sm:$0xff] }
 0x3b8   : > { %4268 = vmatmul.mubr.f32.gmra.mrb[38].mxu1 %v8345_v12 }
 0x3b9   : > { %4272 = vmatprep.mubr.f32.mxu1 %v3053_v9  ;;  %5744 = vmatpush1.bf16.msra.mxu1 %v5743_v31  ;;  %v3058_v31 = vld [vmem:[#allocation3 + $0x82] sm:$0xff]  ;;  %v3710_v9 = vld [vmem:[%s8738_s4 + $0x3a0] sm:$0xff] }
 0x3ba   : > { %5745 = vmatprep.subr.bf16.mxu1 %v8784_v20 }
 0x3bb   : > { %v8357_v7 = vpop.f32.mrb[74].mxu0 }
 0x3bc   : > { %4273 = vmatmul.mubr.f32.gmra.mrb[40].mxu1 %v8355_v57  ;;  %v8360_v61 = vpop.f32.mrb[75].mxu0 }
 0x3bd   : > { %4277 = vmatprep.mubr.f32.mxu1 %v3054_v14  ;;  %5747 = vmatpush1.bf16.msra.mxu1 %v5746_v52  ;;  %v3711_v52 = vld [vmem:[%s8738_s4 + $0x3a8] sm:$0xff] }
 0x3be   : > { %5748 = vmatprep.subr.bf16.mxu1 %v8784_v20  ;;  %v5764_v14 = vpack.c.bf16 %v3711_v52, %v3710_v9 }
 0x3c0   : > { %4278 = vmatmul.mubr.f32.gmra.mrb[42].mxu1 %v8369_v56 }
 0x3c1   : > { %4282 = vmatprep.mubr.f32.mxu1 %v3055_v10  ;;  %5750 = vmatpush1.bf16.msra.mxu1 %v5749_v43  ;;  %v3712_v43 = vld [vmem:[%s8738_s4 + $0x3b0] sm:$0xff] }
 0x3c2   : > { %5751 = vmatprep.subr.bf16.mxu1 %v8784_v20  ;;  %v5767_v45 = vpack.c.bf16 %v3713_v59, %v3712_v43  ;;  %v8465_v43 = vld [vmem:[#allocation3 + $0xb1] sm:$0xff]  ;;  %v3063_v59 = vld [vmem:[#allocation3 + $0xc2] sm:$0xff] }
 0x3c3   : > { %v8381_v3 = vpop.f32.mrb[76].mxu0 }
 0x3c4   : > { %4283 = vmatmul.mubr.f32.gmra.mrb[44].mxu1 %v8379_v28  ;;  %v8384_v17 = vpop.f32.mrb[77].mxu0 }
 0x3c5   : > { %4287 = vmatprep.mubr.f32.mxu1 %v3056_v48  ;;  %5753 = vmatpush1.bf16.msra.mxu1 %v5752_v23  ;;  %v3060_v23 = vld [vmem:[#allocation3 + $0x9a] sm:$0xff]  ;;  %v3714_v48 = vld [vmem:[%s8738_s4 + $0x3c0] sm:$0xff] }
 0x3c6   : > { %5754 = vmatprep.subr.bf16.mxu1 %v8784_v20 }
 0x3c8   : > { %4288 = vmatmul.mubr.f32.gmra.mrb[46].mxu1 %v8393_v50 }
 0x3c9   : > { %4292 = vmatprep.mubr.f32.mxu1 %v3057_v26  ;;  %5756 = vmatpush1.bf16.msra.mxu1 %v5755_v29  ;;  %v3715_v29 = vld [vmem:[%s8738_s4 + $0x3c8] sm:$0xff] }
 0x3ca   : > { %5757 = vmatprep.subr.bf16.mxu1 %v8784_v20  ;;  %v5770_v26 = vpack.c.bf16 %v3715_v29, %v3714_v48  ;;  %v3721_v48 = vld [vmem:[%s8738_s4 + $0x3f8] sm:$0xff] }
 0x3cb   : > { %v8405_v63 = vpop.f32.mrb[78].mxu0  ;;  %v8475_v29 = vld [vmem:[#allocation3 + $0xc1] sm:$0xff] }
 0x3cc   : > { %4293 = vmatmul.mubr.f32.gmra.mrb[48].mxu1 %v8403_v47  ;;  %v8408_v34 = vpop.f32.mrb[79].mxu0 }
 0x3cd   : > { %4297 = vmatprep.mubr.f32.mxu1 %v3058_v31  ;;  %5759 = vmatpush1.bf16.msra.mxu1 %v5758_v46  ;;  %v3716_v46 = vld [vmem:[%s8738_s4 + $0x3d0] sm:$0xff] }
 0x3ce   : > { %5760 = vmatprep.subr.bf16.mxu1 %v8784_v20  ;;  %v5773_v52 = vpack.c.bf16 %v3717_v0, %v3716_v46 }
 0x3d0   : > { %4298 = vmatmul.mubr.f32.gmra.mrb[50].mxu1 %v8417_v15 }
 0x3d1   : > { %4302 = vmatprep.mubr.f32.mxu1 %v3059_v54  ;;  %5762 = vmatpush1.bf16.msra.mxu1 %v5761_v19  ;;  %v3062_v19 = vld [vmem:[#allocation3 + $0xb2] sm:$0xff] }
 0x3d2   : > { %5763 = vmatprep.subr.bf16.mxu1 %v8784_v20  ;;  %v3718_v54 = vld [vmem:[%s8738_s4 + $0x3e0] sm:$0xff] }
 0x3d3   : > { %v8429_v10 = vpop.f32.mrb[80].mxu0 }
 0x3d4   : > { %4303 = vmatmul.mubr.f32.gmra.mrb[52].mxu1 %v8427_v58  ;;  %v8432_v53 = vpop.f32.mrb[81].mxu0 }
 0x3d5   : > { %4307 = vmatprep.mubr.f32.mxu1 %v3060_v23  ;;  %5765 = vmatpush1.bf16.msra.mxu1 %v5764_v14  ;;  %v3719_v14 = vld [vmem:[%s8738_s4 + $0x3e8] sm:$0xff] }
 0x3d6   : > { %5766 = vmatprep.subr.bf16.mxu1 %v8784_v20  ;;  %v5776_v23 = vpack.c.bf16 %v3719_v14, %v3718_v54  ;;  %v8788_v54 = vld [vmem:[#allocation5_spill] sm:$0xff]  ;;  %v8487_v14 = vld [vmem:[#allocation3 + $0xd9] sm:$0xff] }
 0x3d8   : > { %4308 = vmatmul.mubr.f32.gmra.mrb[54].mxu1 %v8441_v39 }
 0x3d9   : > { %4312 = vmatprep.mubr.f32.mxu1 %v3061_v33  ;;  %5768 = vmatpush1.bf16.msra.mxu1 %v5767_v45  ;;  %v3720_v45 = vld [vmem:[%s8738_s4 + $0x3f0] sm:$0xff] }
 0x3da   : > { %5769 = vmatprep.subr.bf16.mxu1 %v8784_v20  ;;  %v5779_v0 = vpack.c.bf16 %v3721_v48, %v3720_v45  ;;  %v8498_v45 = vld [vmem:[#allocation3 + $0xf1] sm:$0xff]  ;;  %v8502_v48 = vld [vmem:[#allocation3 + $0xf9] sm:$0xff] }
 0x3db   : > { %v8453_v31 = vpop.f32.mrb[82].mxu0 }
 0x3dc   : > { %4313 = vmatmul.mubr.f32.gmra.mrb[56].mxu1 %v8451_v36  ;;  %v8456_v9 = vpop.f32.mrb[83].mxu0 }
 0x3dd   : > { %4317 = vmatprep.mubr.f32.mxu1 %v3062_v19  ;;  %5771 = vmatpush1.bf16.msra.mxu1 %v5770_v26  ;;  %v3064_v26 = vld [vmem:[#allocation3 + $0xca] sm:$0xff] }
 0x3de   : > { %5772 = vmatprep.subr.bf16.mxu1 %v8784_v20  ;;  %v8483_v19 = vld [vmem:[#allocation3 + $0xc9] sm:$0xff] }
 0x3e0   : > { %4318 = vmatmul.mubr.f32.gmra.mrb[58].mxu1 %v8465_v43 }
 0x3e1   : > { %4322 = vmatprep.mubr.f32.mxu1 %v3063_v59  ;;  %5774 = vmatpush1.bf16.msra.mxu1 %v5773_v52  ;;  %v3065_v52 = vld [vmem:[#allocation3 + $0xda] sm:$0xff] }
 0x3e2   : > { %5775 = vmatprep.subr.bf16.mxu1 %v8784_v20 }
 0x3e3   : > { %v8477_v33 = vpop.f32.mrb[84].mxu0 }
 0x3e4   : > { %4323 = vmatmul.mubr.f32.gmra.mrb[60].mxu1 %v8475_v29  ;;  %v8480_v46 = vpop.f32.mrb[85].mxu0 }
 0x3e5   : > { %4327 = vmatprep.mubr.f32.mxu1 %v3064_v26  ;;  %5777 = vmatpush1.bf16.msra.mxu1 %v5776_v23  ;;  %v3066_v26 = vld [vmem:[#allocation3 + $0xe2] sm:$0xff] }
 0x3e6   : > { %5778 = vmatprep.subr.bf16.mxu1 %v8784_v20  ;;  %v8494_v20 = vld [vmem:[#allocation3 + $0xe1] sm:$0xff] }
 0x3e8   : > { %4328 = vmatmul.mubr.f32.gmra.mrb[62].mxu1 %v8483_v19 }
 0x3e9   : > { %4332 = vmatprep.mubr.f32.mxu1 %v3065_v52  ;;  %5780 = vmatpush1.bf16.msra.mxu1 %v5779_v0  ;;  %v8506_v0 = vld [vmem:[#allocation3 + $0x109] sm:$0xff]  ;;  %v8510_v52 = vld [vmem:[#allocation3 + $0x111] sm:$0xff] }
 0x3ea   : > { %5813 = vmatprep.subr.bf16.mxu1 %v8788_v54 }
 0x3eb   : > { %v8489_v59 = vpop.f32.mrb[86].mxu0 }
 0x3ec   : > { %4333 = vmatmul.mubr.f32.gmra.mrb[64].mxu1 %v8487_v14  ;;  %v8492_v23 = vpop.f32.mrb[87].mxu0 }
 0x3ed   : > { %4337 = vmatprep.mubr.f32.mxu1 %v3066_v26 }
 0x3f0   : > { %4338 = vmatmul.mubr.f32.gmra.mrb[66].mxu1 %v8494_v20 }
 0x3f1   : > { %4342 = vmatprep.mubr.f32.mxu1 %v7986_v51  ;;  %v8514_v51 = vld [vmem:[#allocation3 + $0x121] sm:$0xff] }
 0x3f4   : > { %4343 = vmatmul.mubr.f32.gmra.mrb[68].mxu1 %v8498_v45 }
 0x3f5   : > { %4347 = vmatprep.mubr.f32.mxu1 %v7990_v16  ;;  %v8518_v16 = vld [vmem:[#allocation3 + $0x129] sm:$0xff] }
 0x3f8   : > { %4348 = vmatmul.mubr.f32.gmra.mrb[70].mxu1 %v8502_v48 }
 0x3f9   : > { %4352 = vmatprep.mubr.f32.mxu1 %v8004_v49  ;;  %v8522_v49 = vld [vmem:[#allocation3 + $0x139] sm:$0xff] }
 0x3fc   : > { %4353 = vmatmul.mubr.f32.gmra.mrb[72].mxu1 %v8506_v0 }
 0x3fd   : > { %4357 = vmatprep.mubr.f32.mxu1 %v8785_v32  ;;  %v8526_v32 = vld [vmem:[#allocation3 + $0x141] sm:$0xff] }
 0x400   : > { %4358 = vmatmul.mubr.f32.gmra.mrb[74].mxu1 %v8510_v52 }
 0x401   : > { %4362 = vmatprep.mubr.f32.mxu1 %v8022_v30  ;;  %v8789_v30 = vld [vmem:[#allocation15_spill] sm:$0xff] }
 0x404   : > { %4363 = vmatmul.mubr.f32.gmra.mrb[76].mxu1 %v8514_v51 }
 0x405   : > { %4367 = vmatprep.mubr.f32.mxu1 %v8786_v40  ;;  %v8790_v40 = vmax.f32 %v8075_v38, 0.0  ;;  %v8794_v38 = vld [vmem:[#allocation7_spill] sm:$0xff] }
 0x408   : > { %4368 = vmatmul.mubr.f32.gmra.mrb[78].mxu1 %v8518_v16 }
 0x409   : > { %4372 = vmatprep.mubr.f32.mxu1 %v8045_v25  ;;  %v8537_v25 = vld [vmem:[#allocation3 + $0x182] sm:$0xff] }
 0x40c   : > { %4373 = vmatmul.mubr.f32.gmra.mrb[80].mxu1 %v8522_v49 }
 0x40d   : > { %4377 = vmatprep.mubr.f32.mxu1 %v8787_v5  ;;  %v8542_v5 = vld [vmem:[#allocation3 + $0x18a] sm:$0xff] }
 0x410   : > { %4378 = vmatmul.mubr.f32.gmra.mrb[82].mxu1 %v8526_v32 }
 0x411   : > { %4382 = vmatprep.mubr.f32.mxu1 %v8272_v24 }
 0x414   : > { %4383 = vmatmul.mubr.f32.gmra.mrb[84].mxu1 %v8789_v30  ;;  %v3115_v30 = vld [vmem:[#allocation3 + $0x38] sm:$0xff] }
 0x415   : > { %4387 = vmatprep.mubr.f32.mxu1 %v8280_v21 }
 0x418   : > { %4388 = vmatmul.mubr.f32.gmra.mrb[86].mxu1 %v8042_v42  ;;  %v8791_v42 = vld [vmem:[#allocation17_spill] sm:$0xff] }
 0x419   : > { %4392 = vmatprep.mubr.f32.mxu1 %v8286_v4  ;;  %v8792_v26 = vmax.f32 %v8791_v42, 0.0  ;;  %v8797_v42 = vld [vmem:[#allocation10_spill] sm:$0xff] }
 0x41c   : > { %4393 = vmatmul.mubr.f32.gmra.mrb[88].mxu1 %v8058_v1  ;;  %v3114_v1 = vld [vmem:[#allocation3 + $0x30] sm:$0xff] }
 0x41d   : > { %4397 = vmatprep.mubr.f32.mxu1 %v8302_v35 }
 0x420   : > { %4398 = vmatmul.mubr.f32.gmra.mrb[90].mxu1 %v8068_v62  ;;  %v8793_v62 = vld [vmem:[#allocation6_spill] sm:$0xff] }
 0x421   : > { %4402 = vmatprep.mubr.f32.mxu1 %v8537_v25 }
 0x424   : > { %4403 = vmatmul.mubr.f32.gmra.mrb[92].mxu1 %v8790_v40  ;;  %v3116_v40 = vld [vmem:[#allocation3 + $0x48] sm:$0xff] }
 0x425   : > { %4407 = vmatprep.mubr.f32.mxu1 %v8542_v5 }
 0x428   : > { %4408 = vmatmul.mubr.f32.gmra.mrb[94].mxu1 %v8792_v26  ;;  %v8798_v26 = vld [vmem:[#allocation11_spill] sm:$0xff] }
 0x429   : > { %4477 = vmatprep.mubr.f32.mxu1 %v8331_v13  ;;  %v8795_v13 = vld [vmem:[#allocation8_spill] sm:$0xff] }
 0x42c   : > { %4478 = vmatmul.mubr.f32.vlgmr.msra.gmra.mrb[32].mxu1 %v3114_v1  ;;  %v8799_v1 = vld [vmem:[#allocation12_spill] sm:$0xff] }
 0x42d   : > { %4482 = vmatprep.mubr.f32.mxu1 %v8345_v12  ;;  %5821 = vmatpush3.bf16.msra.mxu1 %v8788_v54  ;;  %v3117_v12 = vld [vmem:[#allocation3 + $0x50] sm:$0xff] }
 0x42e   : > { %5814 = vmatprep.subr.bf16.mxu1 %v8793_v62  ;;  %v8796_v54 = vld [vmem:[#allocation9_spill] sm:$0xff] }
 0x430   : > { %4483 = vmatmul.mubr.f32.gmra.mrb[34].mxu1 %v3115_v30  ;;  %v3124_v30 = vld [vmem:[#allocation3 + $0xa8] sm:$0xff] }
 0x431   : > { %4487 = vmatprep.mubr.f32.mxu1 %v8355_v57  ;;  %5822 = vmatpush3.bf16.msra.mxu1 %v8793_v62  ;;  %v3118_v57 = vld [vmem:[#allocation3 + $0x60] sm:$0xff]  ;;  %v3122_v62 = vld [vmem:[#allocation3 + $0x90] sm:$0xff] }
 0x432   : > { %5815 = vmatprep.subr.bf16.mxu1 %v8794_v38 }
 0x434   : > { %4488 = vmatmul.mubr.f32.gmra.mrb[36].mxu1 %v3116_v40  ;;  %v3202_v40 = vld [vmem:[#allocation3 + $0x151] sm:$0xff] }
 0x435   : > { %4492 = vmatprep.mubr.f32.mxu1 %v8369_v56  ;;  %5823 = vmatpush3.bf16.msra.mxu1 %v8794_v38  ;;  %v3119_v56 = vld [vmem:[#allocation3 + $0x68] sm:$0xff]  ;;  %v3126_v38 = vld [vmem:[#allocation3 + $0xc0] sm:$0xff] }
 0x436   : > { %5816 = vmatprep.subr.bf16.mxu1 %v8795_v13 }
 0x438   : > { %4493 = vmatmul.mubr.f32.gmra.mrb[38].mxu1 %v3117_v12  ;;  %v3204_v12 = vld [vmem:[#allocation3 + $0x169] sm:$0xff] }
 0x439   : > { %4497 = vmatprep.mubr.f32.mxu1 %v8379_v28  ;;  %5824 = vmatpush3.bf16.msra.mxu1 %v8795_v13  ;;  %v3120_v28 = vld [vmem:[#allocation3 + $0x78] sm:$0xff] }
 0x43a   : > { %5817 = vmatprep.subr.bf16.mxu1 %v8796_v54  ;;  %v3203_v13 = vld [vmem:[#allocation3 + $0x159] sm:$0xff] }
 0x43c   : > { %4498 = vmatmul.mubr.f32.gmra.mrb[40].mxu1 %v3118_v57  ;;  %v3206_v57 = vld [vmem:[#allocation3 + $0x181] sm:$0xff] }
 0x43d   : > { %4502 = vmatprep.mubr.f32.mxu1 %v8393_v50  ;;  %5825 = vmatpush3.bf16.msra.mxu1 %v8796_v54  ;;  %v3121_v50 = vld [vmem:[#allocation3 + $0x80] sm:$0xff]  ;;  %v3205_v54 = vld [vmem:[#allocation3 + $0x171] sm:$0xff] }
 0x43e   : > { %5818 = vmatprep.subr.bf16.mxu1 %v8797_v42 }
 0x440   : > { %4503 = vmatmul.mubr.f32.gmra.mrb[42].mxu1 %v3119_v56  ;;  %v3209_v56 = vld [vmem:[#allocation3 + $0x1a1] sm:$0xff] }
 0x441   : > { %4507 = vmatprep.mubr.f32.mxu1 %v8403_v47  ;;  %5826 = vmatpush3.bf16.msra.mxu1 %v8797_v42  ;;  %v3123_v47 = vld [vmem:[#allocation3 + $0x98] sm:$0xff] }
 0x442   : > { %5819 = vmatprep.subr.bf16.mxu1 %v8798_v26  ;;  %v3208_v42 = vld [vmem:[#allocation3 + $0x199] sm:$0xff] }
 0x444   : > { %4508 = vmatmul.mubr.f32.gmra.mrb[44].mxu1 %v3120_v28 }
 0x445   : > { %4512 = vmatprep.mubr.f32.mxu1 %v8417_v15  ;;  %5827 = vmatpush3.bf16.msra.mxu1 %v8798_v26  ;;  %v3125_v15 = vld [vmem:[#allocation3 + $0xb0] sm:$0xff] }
 0x446   : > { %5820 = vmatprep.subr.bf16.mxu1 %v8799_v1  ;;  %v6256_v26 = vld [vmem:[#allocation2] sm:$0xff] }
 0x448   : > { %4513 = vmatmul.mubr.f32.gmra.mrb[46].mxu1 %v3121_v50 }
 0x449   : > { %4517 = vmatprep.mubr.f32.mxu1 %v8427_v58  ;;  %5828 = vmatpush3.bf16.msra.mxu1 %v8799_v1  ;;  %v3127_v58 = vld [vmem:[#allocation3 + $0xc8] sm:$0xff] }
 0x44c   : > { %4518 = vmatmul.mubr.f32.gmra.mrb[48].mxu1 %v3122_v62 }
 0x44d   : > { %4522 = vmatprep.mubr.f32.mxu1 %v8441_v39  ;;  %v3128_v39 = vld [vmem:[#allocation3 + $0xd8] sm:$0xff] }
 0x450   : > { %4523 = vmatmul.mubr.f32.gmra.mrb[50].mxu1 %v3123_v47  ;;  %v6257_v47 = vld [vmem:[#allocation2 + $0x19] sm:$0xff] }
 0x451   : > { %4527 = vmatprep.mubr.f32.mxu1 %v8451_v36  ;;  %v3129_v36 = vld [vmem:[#allocation3 + $0xe0] sm:$0xff] }
 0x454   : > { %4528 = vmatmul.mubr.f32.gmra.mrb[52].mxu1 %v3124_v30 }
 0x455   : > { %4532 = vmatprep.mubr.f32.mxu1 %v8465_v43  ;;  %v3130_v43 = vld [vmem:[#allocation3 + $0xf0] sm:$0xff] }
 0x458   : > { %4533 = vmatmul.mubr.f32.gmra.mrb[54].mxu1 %v3125_v15 }
 0x459   : > { %4537 = vmatprep.mubr.f32.mxu1 %v8475_v29  ;;  %v3131_v29 = vld [vmem:[#allocation3 + $0xf8] sm:$0xff] }
 0x45c   : > { %4538 = vmatmul.mubr.f32.gmra.mrb[56].mxu1 %v3126_v38 }
 0x45d   : > { %4542 = vmatprep.mubr.f32.mxu1 %v8483_v19  ;;  %v3132_v19 = vld [vmem:[#allocation3 + $0x108] sm:$0xff] }
 0x460   : > { %4543 = vmatmul.mubr.f32.gmra.mrb[58].mxu1 %v3127_v58 }
 0x461   : > { %4547 = vmatprep.mubr.f32.mxu1 %v8487_v14  ;;  %v3133_v14 = vld [vmem:[#allocation3 + $0x110] sm:$0xff] }
 0x464   : > { %4548 = vmatmul.mubr.f32.gmra.mrb[60].mxu1 %v3128_v39 }
 0x465   : > { %4552 = vmatprep.mubr.f32.mxu1 %v8494_v20  ;;  %v3134_v20 = vld [vmem:[#allocation3 + $0x120] sm:$0xff] }
 0x468   : > { %4553 = vmatmul.mubr.f32.gmra.mrb[62].mxu1 %v3129_v36  ;;  %v6258_v36 = vld [vmem:[#allocation2 + $0x21] sm:$0xff] }
 0x469   : > { %4557 = vmatprep.mubr.f32.mxu1 %v8498_v45  ;;  %v3135_v45 = vld [vmem:[#allocation3 + $0x128] sm:$0xff] }
 0x46c   : > { %4558 = vmatmul.mubr.f32.gmra.mrb[64].mxu1 %v3130_v43 }
 0x46d   : > { %4562 = vmatprep.mubr.f32.mxu1 %v8502_v48  ;;  %v3136_v48 = vld [vmem:[#allocation3 + $0x138] sm:$0xff] }
 0x470   : > { %4563 = vmatmul.mubr.f32.gmra.mrb[66].mxu1 %v3131_v29 }
 0x471   : > { %4567 = vmatprep.mubr.f32.mxu1 %v8506_v0  ;;  %v3137_v0 = vld [vmem:[#allocation3 + $0x140] sm:$0xff] }
 0x474   : > { %4568 = vmatmul.mubr.f32.gmra.mrb[68].mxu1 %v3132_v19 }
 0x475   : > { %4572 = vmatprep.mubr.f32.mxu1 %v8510_v52  ;;  %v3138_v52 = vld [vmem:[#allocation3 + $0x150] sm:$0xff] }
 0x478   : > { %4573 = vmatmul.mubr.f32.gmra.mrb[70].mxu1 %v3133_v14 }
 0x479   : > { %4577 = vmatprep.mubr.f32.mxu1 %v8514_v51  ;;  %v3139_v51 = vld [vmem:[#allocation3 + $0x158] sm:$0xff] }
 0x47c   : > { %4578 = vmatmul.mubr.f32.gmra.mrb[72].mxu1 %v3134_v20 }
 0x47d   : > { %4582 = vmatprep.mubr.f32.mxu1 %v8518_v16  ;;  %v3140_v16 = vld [vmem:[#allocation3 + $0x168] sm:$0xff] }
 0x480   : > { %4583 = vmatmul.mubr.f32.gmra.mrb[74].mxu1 %v3135_v45 }
 0x481   : > { %4587 = vmatprep.mubr.f32.mxu1 %v8522_v49  ;;  %v3141_v49 = vld [vmem:[#allocation3 + $0x170] sm:$0xff] }
 0x484   : > { %4588 = vmatmul.mubr.f32.gmra.mrb[76].mxu1 %v3136_v48 }
 0x485   : > { %4592 = vmatprep.mubr.f32.mxu1 %v8526_v32  ;;  %v3207_v32 = vld [vmem:[#allocation3 + $0x189] sm:$0xff] }
 0x488   : > { %4593 = vmatmul.mubr.f32.gmra.mrb[78].mxu1 %v3137_v0  ;;  %v6259_v0 = vld [vmem:[#allocation2 + $0x31] sm:$0xff] }
 0x489   : > { %4597 = vmatprep.mubr.f32.mxu1 %v3202_v40 }
 0x48c   : > { %4598 = vmatmul.mubr.f32.gmra.mrb[80].mxu1 %v3138_v52 }
 0x48d   : > { %4602 = vmatprep.mubr.f32.mxu1 %v3203_v13 }
 0x490   : > { %4603 = vmatmul.mubr.f32.gmra.mrb[82].mxu1 %v3139_v51 }
 0x491   : > { %4607 = vmatprep.mubr.f32.mxu1 %v3204_v12 }
 0x494   : > { %4608 = vmatmul.mubr.f32.gmra.mrb[84].mxu1 %v3140_v16 }
 0x495   : > { %4612 = vmatprep.mubr.f32.mxu1 %v3205_v54  ;;  %v6260_v54 = vld [vmem:[#allocation2 + $0x39] sm:$0xff] }
 0x498   : > { %4613 = vmatmul.mubr.f32.gmra.mrb[86].mxu1 %v3141_v49 }
 0x499   : > { %4617 = vmatprep.mubr.f32.mxu1 %v3206_v57 }
 0x49c   : > { %4618 = vmatmul.mubr.f32.gmra.mrb[88].mxu1 %v8283_v44  ;;  %v3272_v44 = vld [vmem:[#allocation3 + $0x19a] sm:$0xff] }
 0x49d   : > { %4622 = vmatprep.mubr.f32.mxu1 %v3207_v32 }
 0x4a0   : > { %4623 = vmatmul.mubr.f32.gmra.mrb[90].mxu1 %v8291_v8  ;;  %v3273_v8 = vld [vmem:[#allocation3 + $0x1a2] sm:$0xff] }
 0x4a1   : > { %4627 = vmatprep.mubr.f32.mxu1 %v3208_v42 }
 0x4a4   : > { %4628 = vmatmul.mubr.f32.gmra.mrb[92].mxu1 %v6256_v26 }
 0x4a5   : > { %4632 = vmatprep.mubr.f32.mxu1 %v3209_v56 }
 0x4a8   : > { %4633 = vmatmul.mubr.f32.gmra.mrb[94].mxu1 %v6256_v26 }
 0x4a9   : > { %5353 = vmatprep.mubr.f32.mxu1 %v8272_v24  ;;  %v8597_v24 = vld [vmem:[%s8739_s5] ss:$0 sm:$0xff] }
 0x4ac   : > { %5354 = vmatmul.mubr.f32.vlgmr.msra.gmra.mrb[96].mxu1 %v8280_v21 }
 0x4ad   : > { %5356 = vmatprep.mubr.f32.mxu1 %v8286_v4 }
 0x4b0   : > { %5357 = vmatmul.mubr.f32.gmra.mrb[98].mxu1 %v8302_v35  ;;  %v8603_v35 = vld [vmem:[%s8740_s6] ss:$0 sm:$0xff] }
 0x4b1   : > { %5359 = vmatprep.mubr.f32.mxu1 %v8537_v25 }
 0x4b4   : > { %5360 = vmatmul.mubr.f32.gmra.mrb[100].mxu1 %v8542_v5 }
 0x4b5   : > { %5362 = vmatprep.mubr.f32.mxu1 %v3272_v44  ;;  %v6261_v44 = vld [vmem:[#allocation2 + $0x49] sm:$0xff] }
 0x4b8   : > { %5363 = vmatmul.mubr.f32.gmra.mrb[102].mxu1 %v3273_v8 }
 0x4ff   : > { %v4479_v28 = vpop.f32.mrb[32].mxu1 }
 0x500   : > { %v4705_v21 = vadd.f32 %v8267_v2, %v4479_v28  ;;  %v4481_v4 = vpop.f32.mrb[33].mxu1 }
 0x502   : > { %v4870_v25 = vmul.f32 %v8597_v24, %v4705_v21 }
 0x503   : > { %v4484_v5 = vpop.f32.mrb[34].mxu1 }
 0x504   : > { %v4909_v1 = vadd.f32 %v8603_v35, %v4870_v25  ;;  %v4710_v50 = vadd.f32 %v8264_v11, %v4484_v5  ;;  %v4486_v62 = vpop.f32.mrb[35].mxu1 }
 0x506   : > { %v4941_v30 = vadd.f32 %v6257_v47, %v4909_v1  ;;  %v4871_v15 = vmul.f32 %v8597_v24, %v4710_v50  ;;  %v6262_v1 = vld [vmem:[#allocation2 + $0x51] sm:$0xff] }
 0x507   : > { %v4489_v2 = vpop.f32.mrb[36].mxu1 }
 0x508   : > { %v4973_v38 = vmax.f32 %v4941_v30, 0.0  ;;  %v4910_v58 = vadd.f32 %v8603_v35, %v4871_v15  ;;  %v4715_v39 = vadd.f32 %v8277_v37, %v4489_v2  ;;  %v4491_v11 = vpop.f32.mrb[37].mxu1 }
 0x50a   : > { %5005 = vst [vmem:[%s8614_s19] sm:$0xff] %v4973_v38  ;;  %v4942_v43 = vadd.f32 %v6258_v36, %v4910_v58  ;;  %v4872_v29 = vmul.f32 %v8597_v24, %v4715_v39  ;;  %v6263_v38 = vld [vmem:[#allocation2 + $0x61] sm:$0xff] }
 0x50b   : > { %v4494_v19 = vpop.f32.mrb[38].mxu1 }
 0x50c   : > { %v4974_v14 = vmax.f32 %v4942_v43, 0.0  ;;  %v4911_v20 = vadd.f32 %v8603_v35, %v4872_v29  ;;  %v4720_v45 = vadd.f32 %v8274_v6, %v4494_v19  ;;  %v4496_v48 = vpop.f32.mrb[39].mxu1  ;;  %v6264_v19 = vld [vmem:[#allocation2 + $0x69] sm:$0xff] }
 0x50e   : > { %5006 = vst [vmem:[%s8614_s19 + $0x8] sm:$0xff] %v4974_v14  ;;  %v4943_v40 = vadd.f32 %v6259_v0, %v4911_v20  ;;  %v4873_v37 = vmul.f32 %v8597_v24, %v4720_v45 }
 0x50f   : > { %v4499_v52 = vpop.f32.mrb[40].mxu1 }
 0x510   : > { %v4975_v13 = vmax.f32 %v4943_v40, 0.0  ;;  %v4912_v51 = vadd.f32 %v8603_v35, %v4873_v37  ;;  %v4725_v12 = vadd.f32 %v8293_v41, %v4499_v52  ;;  %v4501_v16 = vpop.f32.mrb[41].mxu1  ;;  %v6265_v37 = vld [vmem:[#allocation2 + $0x79] sm:$0xff] }
 0x512   : > { %5007 = vst [vmem:[%s8614_s19 + $0x10] sm:$0xff] %v4975_v13  ;;  %v4944_v49 = vadd.f32 %v6260_v54, %v4912_v51  ;;  %v4874_v6 = vmul.f32 %v8597_v24, %v4725_v12 }
 0x513   : > { %v4504_v57 = vpop.f32.mrb[42].mxu1 }
 0x514   : > { %v4976_v32 = vmax.f32 %v4944_v49, 0.0  ;;  %v4913_v42 = vadd.f32 %v8603_v35, %v4874_v6  ;;  %v4730_v56 = vadd.f32 %v8288_v55, %v4504_v57  ;;  %v4506_v26 = vpop.f32.mrb[43].mxu1  ;;  %v6266_v49 = vld [vmem:[#allocation2 + $0x81] sm:$0xff] }
 0x516   : > { %5008 = vst [vmem:[%s8614_s19 + $0x18] sm:$0xff] %v4976_v32  ;;  %v4945_v8 = vadd.f32 %v6261_v44, %v4913_v42  ;;  %v4875_v41 = vmul.f32 %v8597_v24, %v4730_v56  ;;  %v6267_v44 = vld [vmem:[#allocation2 + $0x91] sm:$0xff] }
 0x517   : > { %v4509_v28 = vpop.f32.mrb[44].mxu1 }
 0x518   : > { %v4977_v21 = vmax.f32 %v4945_v8, 0.0  ;;  %v4914_v4 = vadd.f32 %v8603_v35, %v4875_v41  ;;  %v4735_v25 = vadd.f32 %v8314_v27, %v4509_v28  ;;  %v4511_v5 = vpop.f32.mrb[45].mxu1 }
 0x519   : > { %v6268_v5 = vld [vmem:[#allocation2 + $0x99] sm:$0xff] }
 0x51a   : > { %5009 = vst [vmem:[%s8614_s19 + $0x20] sm:$0xff] %v4977_v21  ;;  %v4946_v50 = vadd.f32 %v6262_v1, %v4914_v4  ;;  %v4876_v55 = vmul.f32 %v8597_v24, %v4735_v25 }
 0x51b   : > { %v4514_v62 = vpop.f32.mrb[46].mxu1 }
 0x51c   : > { %v4978_v47 = vmax.f32 %v4946_v50, 0.0  ;;  %v4915_v30 = vadd.f32 %v8603_v35, %v4876_v55  ;;  %v4740_v15 = vadd.f32 %v8312_v22, %v4514_v62  ;;  %v4516_v2 = vpop.f32.mrb[47].mxu1 }
 0x51e   : > { %5010 = vst [vmem:[%s8614_s19 + $0x28] sm:$0xff] %v4978_v47  ;;  %v4947_v58 = vadd.f32 %v6263_v38, %v4915_v30  ;;  %v4877_v27 = vmul.f32 %v8597_v24, %v4740_v15  ;;  %v6269_v15 = vld [vmem:[#allocation2 + $0xa9] sm:$0xff] }
 0x51f   : > { %v4519_v39 = vpop.f32.mrb[48].mxu1 }
 0x520   : > { %v4979_v11 = vmax.f32 %v4947_v58, 0.0  ;;  %v4916_v36 = vadd.f32 %v8603_v35, %v4877_v27  ;;  %v4745_v43 = vadd.f32 %v8336_v18, %v4519_v39  ;;  %v4521_v29 = vpop.f32.mrb[49].mxu1 }
 0x522   : > { %5011 = vst [vmem:[%s8614_s19 + $0x30] sm:$0xff] %v4979_v11  ;;  %v4948_v14 = vadd.f32 %v6264_v19, %v4916_v36  ;;  %v4878_v22 = vmul.f32 %v8597_v24, %v4745_v43  ;;  %v6270_v36 = vld [vmem:[#allocation2 + $0xb1] sm:$0xff] }
 0x523   : > { %v4524_v20 = vpop.f32.mrb[50].mxu1 }
 0x524   : > { %v4980_v45 = vmax.f32 %v4948_v14, 0.0  ;;  %v4917_v48 = vadd.f32 %v8603_v35, %v4878_v22  ;;  %v4750_v0 = vadd.f32 %v8333_v60, %v4524_v20  ;;  %v4526_v40 = vpop.f32.mrb[51].mxu1 }
 0x526   : > { %5012 = vst [vmem:[%s8614_s19 + $0x38] sm:$0xff] %v4980_v45  ;;  %v4949_v52 = vadd.f32 %v6265_v37, %v4917_v48  ;;  %v4879_v18 = vmul.f32 %v8597_v24, %v4750_v0  ;;  %v6271_v45 = vld [vmem:[#allocation2 + $0xc1] sm:$0xff] }
 0x527   : > { %v4529_v13 = vpop.f32.mrb[52].mxu1 }
 0x528   : > { %v4981_v51 = vmax.f32 %v4949_v52, 0.0  ;;  %v4918_v12 = vadd.f32 %v8603_v35, %v4879_v18  ;;  %v4755_v16 = vadd.f32 %v8360_v61, %v4529_v13  ;;  %v4531_v54 = vpop.f32.mrb[53].mxu1  ;;  %v6272_v13 = vld [vmem:[#allocation2 + $0xc9] sm:$0xff] }
 0x52a   : > { %5013 = vst [vmem:[%s8614_s19 + $0x40] sm:$0xff] %v4981_v51  ;;  %v4950_v6 = vadd.f32 %v6266_v49, %v4918_v12  ;;  %v4880_v60 = vmul.f32 %v8597_v24, %v4755_v16 }
 0x52b   : > { %v4534_v57 = vpop.f32.mrb[54].mxu1 }
 0x52c   : > { %v4982_v32 = vmax.f32 %v4950_v6, 0.0  ;;  %v4919_v42 = vadd.f32 %v8603_v35, %v4880_v60  ;;  %v4760_v56 = vadd.f32 %v8357_v7, %v4534_v57  ;;  %v4536_v26 = vpop.f32.mrb[55].mxu1  ;;  %v6273_v60 = vld [vmem:[#allocation2 + $0xd9] sm:$0xff] }
 0x52e   : > { %5014 = vst [vmem:[%s8614_s19 + $0x48] sm:$0xff] %v4982_v32  ;;  %v4951_v8 = vadd.f32 %v6267_v44, %v4919_v42  ;;  %v4881_v61 = vmul.f32 %v8597_v24, %v4760_v56 }
 0x52f   : > { %v4539_v41 = vpop.f32.mrb[56].mxu1 }
 0x530   : > { %v4983_v28 = vmax.f32 %v4951_v8, 0.0  ;;  %v4920_v21 = vadd.f32 %v8603_v35, %v4881_v61  ;;  %v4765_v4 = vadd.f32 %v8384_v17, %v4539_v41  ;;  %v4541_v25 = vpop.f32.mrb[57].mxu1  ;;  %v6274_v8 = vld [vmem:[#allocation2 + $0xe1] sm:$0xff] }
 0x532   : > { %5015 = vst [vmem:[%s8614_s19 + $0x50] sm:$0xff] %v4983_v28  ;;  %v4952_v1 = vadd.f32 %v6268_v5, %v4920_v21  ;;  %v4882_v7 = vmul.f32 %v8597_v24, %v4765_v4  ;;  %v6275_v5 = vld [vmem:[#allocation2 + $0xf1] sm:$0xff] }
 0x533   : > { %v4544_v50 = vpop.f32.mrb[58].mxu1 }
 0x534   : > { %v4984_v55 = vmax.f32 %v4952_v1, 0.0  ;;  %v4921_v62 = vadd.f32 %v8603_v35, %v4882_v7  ;;  %v4770_v47 = vadd.f32 %v8381_v3, %v4544_v50  ;;  %v4546_v30 = vpop.f32.mrb[59].mxu1 }
 0x535   : > { %v6276_v30 = vld [vmem:[#allocation2 + $0xf9] sm:$0xff] }
 0x536   : > { %5016 = vst [vmem:[%s8614_s19 + $0x58] sm:$0xff] %v4984_v55  ;;  %v4953_v2 = vadd.f32 %v6269_v15, %v4921_v62  ;;  %v4883_v17 = vmul.f32 %v8597_v24, %v4770_v47 }
 0x537   : > { %v4549_v38 = vpop.f32.mrb[60].mxu1 }
 0x538   : > { %v4985_v58 = vmax.f32 %v4953_v2, 0.0  ;;  %v4922_v27 = vadd.f32 %v8603_v35, %v4883_v17  ;;  %v4775_v39 = vadd.f32 %v8408_v34, %v4549_v38  ;;  %v4551_v11 = vpop.f32.mrb[61].mxu1 }
 0x53a   : > { %5017 = vst [vmem:[%s8614_s19 + $0x60] sm:$0xff] %v4985_v58  ;;  %v4954_v43 = vadd.f32 %v6270_v36, %v4922_v27  ;;  %v4884_v3 = vmul.f32 %v8597_v24, %v4775_v39  ;;  %v6277_v39 = vld [vmem:[#allocation2 + $0x109] sm:$0xff] }
 0x53b   : > { %v4554_v29 = vpop.f32.mrb[62].mxu1 }
 0x53c   : > { %v4986_v19 = vmax.f32 %v4954_v43, 0.0  ;;  %v4923_v14 = vadd.f32 %v8603_v35, %v4884_v3  ;;  %v4780_v22 = vadd.f32 %v8405_v63, %v4554_v29  ;;  %v4556_v20 = vpop.f32.mrb[63].mxu1 }
 0x53e   : > { %5018 = vst [vmem:[%s8614_s19 + $0x68] sm:$0xff] %v4986_v19  ;;  %v4955_v48 = vadd.f32 %v6271_v45, %v4923_v14  ;;  %v4885_v34 = vmul.f32 %v8597_v24, %v4780_v22  ;;  %v6278_v14 = vld [vmem:[#allocation2 + $0x111] sm:$0xff] }
 0x53f   : > { %v4559_v0 = vpop.f32.mrb[64].mxu1 }
 0x540   : > { %v4987_v40 = vmax.f32 %v4955_v48, 0.0  ;;  %v4924_v37 = vadd.f32 %v8603_v35, %v4885_v34  ;;  %v4785_v52 = vadd.f32 %v8432_v53, %v4559_v0  ;;  %v4561_v18 = vpop.f32.mrb[65].mxu1 }
 0x542   : > { %5019 = vst [vmem:[%s8614_s19 + $0x70] sm:$0xff] %v4987_v40  ;;  %v4956_v51 = vadd.f32 %v6272_v13, %v4924_v37  ;;  %v4886_v63 = vmul.f32 %v8597_v24, %v4785_v52  ;;  %v6279_v40 = vld [vmem:[#allocation2 + $0x121] sm:$0xff] }
 0x543   : > { %v4564_v12 = vpop.f32.mrb[66].mxu1 }
 0x544   : > { %v4988_v16 = vmax.f32 %v4956_v51, 0.0  ;;  %v4925_v54 = vadd.f32 %v8603_v35, %v4886_v63  ;;  %v4790_v49 = vadd.f32 %v8429_v10, %v4564_v12  ;;  %v4566_v6 = vpop.f32.mrb[67].mxu1  ;;  %v6280_v63 = vld [vmem:[#allocation2 + $0x129] sm:$0xff] }
 0x546   : > { %5020 = vst [vmem:[%s8614_s19 + $0x78] sm:$0xff] %v4988_v16  ;;  %v4957_v57 = vadd.f32 %v6273_v60, %v4925_v54  ;;  %v4887_v53 = vmul.f32 %v8597_v24, %v4790_v49 }
 0x547   : > { %v4569_v32 = vpop.f32.mrb[68].mxu1 }
 0x548   : > { %v4989_v42 = vmax.f32 %v4957_v57, 0.0  ;;  %v4926_v56 = vadd.f32 %v8603_v35, %v4887_v53  ;;  %v4795_v26 = vadd.f32 %v8456_v9, %v4569_v32  ;;  %v4571_v44 = vpop.f32.mrb[69].mxu1 }
 0x54a   : > { %5021 = vst [vmem:[%s8614_s19 + $0x80] sm:$0xff] %v4989_v42  ;;  %v4958_v61 = vadd.f32 %v6274_v8, %v4926_v56  ;;  %v4888_v10 = vmul.f32 %v8597_v24, %v4795_v26 }
 0x54b   : > { %v4574_v41 = vpop.f32.mrb[70].mxu1 }
 0x54c   : > { %v4990_v28 = vmax.f32 %v4958_v61, 0.0  ;;  %v4927_v21 = vadd.f32 %v8603_v35, %v4888_v10  ;;  %v4800_v4 = vadd.f32 %v8453_v31, %v4574_v41  ;;  %v4576_v25 = vpop.f32.mrb[71].mxu1 }
 0x54e   : > { %5022 = vst [vmem:[%s8614_s19 + $0x88] sm:$0xff] %v4990_v28  ;;  %v4959_v1 = vadd.f32 %v6275_v5, %v4927_v21  ;;  %v4889_v9 = vmul.f32 %v8597_v24, %v4800_v4 }
 0x54f   : > { %v4579_v7 = vpop.f32.mrb[72].mxu1 }
 0x550   : > { %v4991_v50 = vmax.f32 %v4959_v1, 0.0  ;;  %v4928_v55 = vadd.f32 %v8603_v35, %v4889_v9  ;;  %v4805_v62 = vadd.f32 %v8480_v46, %v4579_v7  ;;  %v4581_v47 = vpop.f32.mrb[73].mxu1 }
 0x552   : > { %5023 = vst [vmem:[%s8614_s19 + $0x90] sm:$0xff] %v4991_v50  ;;  %v4960_v15 = vadd.f32 %v6276_v30, %v4928_v55  ;;  %v4890_v31 = vmul.f32 %v8597_v24, %v4805_v62  ;;  %v6281_v62 = vld [vmem:[#allocation2 + $0x141] sm:$0xff] }
 0x553   : > { %v4584_v2 = vpop.f32.mrb[74].mxu1 }
 0x554   : > { %v4992_v17 = vmax.f32 %v4960_v15, 0.0  ;;  %v4929_v38 = vadd.f32 %v8603_v35, %v4890_v31  ;;  %v4810_v58 = vadd.f32 %v8477_v33, %v4584_v2  ;;  %v4586_v27 = vpop.f32.mrb[75].mxu1  ;;  %v6282_v15 = vld [vmem:[#allocation2 + $0x139] sm:$0xff] }
 0x556   : > { %5024 = vst [vmem:[%s8614_s19 + $0x98] sm:$0xff] %v4992_v17  ;;  %v4961_v11 = vadd.f32 %v6277_v39, %v4929_v38  ;;  %v4891_v46 = vmul.f32 %v8597_v24, %v4810_v58 }
 0x557   : > { %v4589_v36 = vpop.f32.mrb[76].mxu1 }
 0x558   : > { %v4993_v43 = vmax.f32 %v4961_v11, 0.0  ;;  %v4930_v3 = vadd.f32 %v8603_v35, %v4891_v46  ;;  %v4815_v29 = vadd.f32 %v8492_v23, %v4589_v36  ;;  %v4591_v19 = vpop.f32.mrb[77].mxu1 }
 0x559   : > { %v6284_v19 = vld [vmem:[#allocation2 + $0x151] sm:$0xff] }
 0x55a   : > { %5025 = vst [vmem:[%s8614_s19 + $0xa0] sm:$0xff] %v4993_v43  ;;  %v4962_v22 = vadd.f32 %v6278_v14, %v4930_v3  ;;  %v4892_v33 = vmul.f32 %v8597_v24, %v4815_v29  ;;  %v6283_v43 = vld [vmem:[#allocation2 + $0x159] sm:$0xff] }
 0x55b   : > { %v4594_v20 = vpop.f32.mrb[78].mxu1 }
 0x55c   : > { %v4994_v45 = vmax.f32 %v4962_v22, 0.0  ;;  %v4931_v48 = vadd.f32 %v8603_v35, %v4892_v33  ;;  %v4820_v34 = vadd.f32 %v8489_v59, %v4594_v20  ;;  %v4596_v0 = vpop.f32.mrb[79].mxu1 }
 0x55e   : > { %5026 = vst [vmem:[%s8614_s19 + $0xa8] sm:$0xff] %v4994_v45  ;;  %v4963_v37 = vadd.f32 %v6279_v40, %v4931_v48  ;;  %v4893_v23 = vmul.f32 %v8597_v24, %v4820_v34 }
 0x55f   : > { %v4599_v52 = vpop.f32.mrb[80].mxu1 }
 0x560   : > { %v4995_v18 = vmax.f32 %v4963_v37, 0.0  ;;  %v4932_v13 = vadd.f32 %v8603_v35, %v4893_v23  ;;  %v4601_v51 = vpop.f32.mrb[81].mxu1  ;;  %v6285_v23 = vld [vmem:[#allocation2 + $0x171] sm:$0xff] }
 0x562   : > { %5027 = vst [vmem:[%s8614_s19 + $0xb0] sm:$0xff] %v4995_v18  ;;  %v4964_v12 = vadd.f32 %v6280_v63, %v4932_v13  ;;  %v6286_v13 = vld [vmem:[#allocation2 + $0x169] sm:$0xff] }
 0x563   : > { %v4604_v16 = vpop.f32.mrb[82].mxu1 }
 0x564   : > { %v4996_v54 = vmax.f32 %v4964_v12, 0.0  ;;  %v4606_v49 = vpop.f32.mrb[83].mxu1 }
 0x566   : > { %5028 = vst [vmem:[%s8614_s19 + $0xb8] sm:$0xff] %v4996_v54 }
 0x567   : > { %v4609_v59 = vpop.f32.mrb[84].mxu1 }
 0x568   : > { %v4611_v6 = vpop.f32.mrb[85].mxu1 }
 0x56b   : > { %v4614_v60 = vpop.f32.mrb[86].mxu1 }
 0x56c   : > { %v4616_v57 = vpop.f32.mrb[87].mxu1 }
 0x56f   : > { %v4619_v53 = vpop.f32.mrb[88].mxu1 }
 0x570   : > { %v4621_v32 = vpop.f32.mrb[89].mxu1 }
 0x573   : > { %v4624_v42 = vpop.f32.mrb[90].mxu1 }
 0x574   : > { %v4626_v56 = vpop.f32.mrb[91].mxu1 }
 0x577   : > { %v4629_v26 = vpop.f32.mrb[92].mxu1 }
 0x578   : > { %v4631_v44 = vpop.f32.mrb[93].mxu1 }
 0x57b   : > { %v4634_v8 = vpop.f32.mrb[94].mxu1 }
 0x57c   : > { %v4636_v61 = vpop.f32.mrb[95].mxu1 }
 0x57f   : > { %v5355_v10 = vpop.f32.mrb[96].mxu1 }
 0x580   : > { %v4830_v41 = vadd.f32 %v5355_v10, %v4604_v16  ;;  %v4824_v28 = vpop.f32.mrb[97].mxu1 }
 0x581   : > { %v4825_v21 = vadd.f32 %v4824_v28, %v4599_v52 }
 0x582   : > { %v4895_v4 = vmul.f32 %v8597_v24, %v4830_v41 }
 0x583   : > { %v4894_v25 = vmul.f32 %v8597_v24, %v4825_v21  ;;  %v5358_v5 = vpop.f32.mrb[98].mxu1 }
 0x584   : > { %v4934_v1 = vadd.f32 %v8603_v35, %v4895_v4  ;;  %v4840_v9 = vadd.f32 %v5358_v5, %v4614_v60  ;;  %v4834_v7 = vpop.f32.mrb[99].mxu1  ;;  %v6288_v60 = vld [vmem:[#allocation2 + $0x181] sm:$0xff] }
 0x585   : > { %v4933_v50 = vadd.f32 %v8603_v35, %v4894_v25  ;;  %v4835_v55 = vadd.f32 %v4834_v7, %v4609_v59  ;;  %v6287_v59 = vld [vmem:[#allocation2 + $0x189] sm:$0xff] }
 0x586   : > { %v4966_v47 = vadd.f32 %v6281_v62, %v4934_v1  ;;  %v4897_v30 = vmul.f32 %v8597_v24, %v4840_v9 }
 0x587   : > { %v4965_v31 = vadd.f32 %v6282_v15, %v4933_v50  ;;  %v4896_v2 = vmul.f32 %v8597_v24, %v4835_v55  ;;  %v5361_v17 = vpop.f32.mrb[100].mxu1 }
 0x588   : > { %v4998_v38 = vmax.f32 %v4966_v47, 0.0  ;;  %v4936_v58 = vadd.f32 %v8603_v35, %v4897_v30  ;;  %v4850_v27 = vadd.f32 %v5361_v17, %v4624_v42  ;;  %v4844_v39 = vpop.f32.mrb[101].mxu1 }
 0x589   : > { %v4997_v11 = vmax.f32 %v4965_v31, 0.0  ;;  %v4935_v46 = vadd.f32 %v8603_v35, %v4896_v2  ;;  %v4845_v36 = vadd.f32 %v4844_v39, %v4619_v53 }
 0x58a   : > { %5030 = vst [vmem:[%s8614_s19 + $0xc8] sm:$0xff] %v4998_v38  ;;  %v4968_v3 = vadd.f32 %v6283_v43, %v4936_v58  ;;  %v4899_v29 = vmul.f32 %v8597_v24, %v4850_v27 }
 0x58b   : > { %5029 = vst [vmem:[%s8614_s19 + $0xc0] sm:$0xff] %v4997_v11  ;;  %v4967_v14 = vadd.f32 %v6284_v19, %v4935_v46  ;;  %v4898_v22 = vmul.f32 %v8597_v24, %v4845_v36  ;;  %v5364_v33 = vpop.f32.mrb[102].mxu1 }
 0x58c   : > { %v5000_v20 = vmax.f32 %v4968_v3, 0.0  ;;  %v4938_v45 = vadd.f32 %v8603_v35, %v4899_v29  ;;  %v4860_v48 = vadd.f32 %v5364_v33, %v4634_v8  ;;  %v4854_v34 = vpop.f32.mrb[103].mxu1 }
 0x58d   : > { %v4999_v0 = vmax.f32 %v4967_v14, 0.0  ;;  %v4937_v40 = vadd.f32 %v8603_v35, %v4898_v22  ;;  %v4855_v37 = vadd.f32 %v4854_v34, %v4629_v26 }
 0x58e   : > { %5032 = vst [vmem:[%s8614_s19 + $0xd8] sm:$0xff] %v5000_v20  ;;  %v4970_v52 = vadd.f32 %v6285_v23, %v4938_v45  ;;  %v4901_v18 = vmul.f32 %v8597_v24, %v4860_v48 }
 0x58f   : > { %5031 = vst [vmem:[%s8614_s19 + $0xd0] sm:$0xff] %v4999_v0  ;;  %v4969_v51 = vadd.f32 %v6286_v13, %v4937_v40  ;;  %v4900_v63 = vmul.f32 %v8597_v24, %v4855_v37 }
 0x590   : > { %v5002_v12 = vmax.f32 %v4970_v52, 0.0  ;;  %v4940_v16 = vadd.f32 %v8603_v35, %v4901_v18 }
 0x591   : > { %v5001_v54 = vmax.f32 %v4969_v51, 0.0  ;;  %v4939_v49 = vadd.f32 %v8603_v35, %v4900_v63 }
 0x592   : > { %5034 = vst [vmem:[%s8614_s19 + $0xe8] sm:$0xff] %v5002_v12  ;;  %v4972_v6 = vadd.f32 %v6287_v59, %v4940_v16 }
 0x593   : > { %5033 = vst [vmem:[%s8614_s19 + $0xe0] sm:$0xff] %v5001_v54  ;;  %v4971_v57 = vadd.f32 %v6288_v60, %v4939_v49 }
 0x594   : > { %v5004_v53 = vmax.f32 %v4972_v6, 0.0 }
 0x595   : > { %v5003_v32 = vmax.f32 %v4971_v57, 0.0 }
 0x596   : > { %5036 = vst [vmem:[%s8614_s19 + $0xf8] sm:$0xff] %v5004_v53 }
 0x597   : > { %5035 = vst [vmem:[%s8614_s19 + $0xf0] sm:$0xff] %v5003_v32 }
 0x598 PF: > { %s17_s24 = sadd.s32 1, %s6295_s24  }
 0x599   : > { %p14_p4 = scmp.ge.s32.totalorder %s17_s24, 4  }
 0x59b   :  { %16 = sbr.rel (!%p14_p4) target bundleno = 1 (0x1), region = 82 }

</bundles_post_ra>
